<compile_context>
chip_gen: v7x
topology: tpu7x:2x2x1
jax: 0.10.0
libtpu: 0.0.40
codegen_flags: <defaults>
</compile_context>

<pallas_src>
import functools

import jax
import jax.numpy as jnp
from jax.experimental import pallas as pl
from jax.experimental.pallas import tpu as pltpu

EXPANSION = 4
BN_EPS = 1e-5
VMEM_LIMIT = 64 * 1024 * 1024


# ---------------------------------------------------------------------------
# Pallas kernels
# ---------------------------------------------------------------------------
def _mm_bn_kernel(x_ref, w_ref, shift_ref, o_ref, *, relu):
    """y = x @ w + shift  (BN scale already folded into w), optional ReLU."""
    y = jnp.dot(x_ref[...], w_ref[...], preferred_element_type=jnp.float32)
    y = y + shift_ref[...]
    if relu:
        y = jnp.maximum(y, 0.0)
    o_ref[...] = y.astype(o_ref.dtype)


def _mm_bn_res_kernel(x_ref, w_ref, shift_ref, res_ref, o_ref):
    """y = relu(x @ w + shift + residual)   (identity shortcut fused)."""
    y = jnp.dot(x_ref[...], w_ref[...], preferred_element_type=jnp.float32)
    y = y + shift_ref[...] + res_ref[...].astype(jnp.float32)
    o_ref[...] = jnp.maximum(y, 0.0).astype(o_ref.dtype)


def _mm_bn_dual_kernel(x_ref, w_ref, shift_ref, xs_ref, ws_ref, shifts_ref, o_ref):
    """y = relu(x @ w + shift + xs @ ws + shifts)  (projection shortcut fused)."""
    y = jnp.dot(x_ref[...], w_ref[...], preferred_element_type=jnp.float32)
    y = y + shift_ref[...]
    y = y + jnp.dot(xs_ref[...], ws_ref[...], preferred_element_type=jnp.float32)
    y = y + shifts_ref[...]
    o_ref[...] = jnp.maximum(y, 0.0).astype(o_ref.dtype)


def _conv_taps_kernel(x_ref, w_ref, shift_ref, o_ref, *, KH, KW, Ho, Wo, row_tile):
    """3x3 (or space-to-depth-folded) conv as KH*KW accumulating matmuls.

    x_ref : (1, Hp, Wp, Cin)   padded input image block (VMEM, bf16)
    w_ref : (KH*KW, Cin, Cout) scale-folded weights
    o_ref : (1, Ho, Wo, Cout)
    """
    Cin = x_ref.shape[-1]
    Cout = o_ref.shape[-1]
    shift = shift_ref[...]  # (1, Cout) f32
    r0 = 0
    while r0 < Ho:                          # static Python loop (unrolled)
        rt = min(row_tile, Ho - r0)
        acc = jnp.zeros((rt * Wo, Cout), jnp.float32)
        for dh in range(KH):
            for dw in range(KW):
                xs = x_ref[:, r0 + dh:r0 + dh + rt, dw:dw + Wo, :]
                xs = xs.reshape(rt * Wo, Cin)
                acc = acc + jnp.dot(xs, w_ref[dh * KW + dw],
                                    preferred_element_type=jnp.float32)
        y = jnp.maximum(acc + shift, 0.0)
        o_ref[:, r0:r0 + rt, :, :] = y.reshape(1, rt, Wo, Cout).astype(o_ref.dtype)
        r0 += rt


# ---------------------------------------------------------------------------
# pallas_call wrappers
# ---------------------------------------------------------------------------
def fused_matmul_bn(x, w, shift, *, residual=None, shortcut=None, relu=True,
                    out_dtype=None, tm=512, tn=512):
    """Fused (x @ w + shift) [+ residual | + xs @ ws + shifts] [-> relu].

    x: (M, K), w: (K, N), shift: (N,).
    residual: (M, N) or None.  shortcut: (xs (M, Ks), ws (Ks, N), shifts (N,)).
    tm=512 targets v5e/v6e; pass tm=256 on v7x (64 MiB VMEM).
    """
    M, K = x.shape
    _, N = w.shape
    out_dtype = out_dtype if out_dtype is not None else x.dtype

    tm = min(tm, M)
    tn_eff = tn if (N > tn and N % tn == 0) else N
    grid = (pl.cdiv(M, tm), N // tn_eff)

    shift2 = shift.reshape(1, N).astype(jnp.float32)
    in_specs = [
        pl.BlockSpec((tm, K), lambda i, j: (i, 0)),
        pl.BlockSpec((K, tn_eff), lambda i, j: (0, j)),
        pl.BlockSpec((1, tn_eff), lambda i, j: (0, j)),
    ]
    args = [x, w, shift2]
    flops = 2 * M * K * N
    bytes_accessed = (x.size * x.dtype.itemsize + w.size * w.dtype.itemsize
                      + shift2.size * 4 + M * N * jnp.dtype(out_dtype).itemsize)

    if shortcut is not None:
        xs, ws, shifts = shortcut
        Ks = xs.shape[1]
        shifts2 = shifts.reshape(1, N).astype(jnp.float32)
        in_specs += [
            pl.BlockSpec((tm, Ks), lambda i, j: (i, 0)),
            pl.BlockSpec((Ks, tn_eff), lambda i, j: (0, j)),
            pl.BlockSpec((1, tn_eff), lambda i, j: (0, j)),
        ]
        args += [xs, ws, shifts2]
        kernel = _mm_bn_dual_kernel
        flops += 2 * M * Ks * N
        bytes_accessed += xs.size * xs.dtype.itemsize + ws.size * ws.dtype.itemsize
    elif residual is not None:
        in_specs.append(pl.BlockSpec((tm, tn_eff), lambda i, j: (i, j)))
        args.append(residual)
        kernel = _mm_bn_res_kernel
        bytes_accessed += residual.size * residual.dtype.itemsize
    else:
        kernel = functools.partial(_mm_bn_kernel, relu=relu)

    return pl.pallas_call(
        kernel,
        out_shape=jax.ShapeDtypeStruct((M, N), out_dtype),
        grid=grid,
        in_specs=in_specs,
        out_specs=pl.BlockSpec((tm, tn_eff), lambda i, j: (i, j)),
        compiler_params=pltpu.CompilerParams(
            dimension_semantics=("parallel", "parallel"),
            vmem_limit_bytes=VMEM_LIMIT,
        ),
        cost_estimate=pl.CostEstimate(flops=flops, transcendentals=0,
                                      bytes_accessed=bytes_accessed),
    )(*args)


def conv_taps_bn_relu(xp, w_taps, shift, KH, KW, Ho, Wo, out_dtype):
    """Stride-1 conv on a pre-padded NHWC input, taps accumulated in-kernel."""
    Nb, Hp, Wp, Cin = xp.shape
    T, _, Cout = w_taps.shape
    # Row chunking keeps the f32 accumulator small; chunk is 8-aligned.
    if Ho * Wo <= 1024:
        row_tile = Ho
    else:
        row_tile = max(8, (1024 // max(Wo, 1)) // 8 * 8)

    kernel = functools.partial(_conv_taps_kernel, KH=KH, KW=KW, Ho=Ho, Wo=Wo,
                               row_tile=row_tile)
    flops = 2 * Nb * Ho * Wo * T * Cin * Cout
    bytes_accessed = (xp.size * xp.dtype.itemsize
                      + w_taps.size * w_taps.dtype.itemsize
                      + Nb * Ho * Wo * Cout * jnp.dtype(out_dtype).itemsize)

    return pl.pallas_call(
        kernel,
        out_shape=jax.ShapeDtypeStruct((Nb, Ho, Wo, Cout), out_dtype),
        grid=(Nb,),
        in_specs=[
            pl.BlockSpec((1, Hp, Wp, Cin), lambda n: (n, 0, 0, 0)),
            pl.BlockSpec((T, Cin, Cout), lambda n: (0, 0, 0)),
            pl.BlockSpec((1, Cout), lambda n: (0, 0)),
        ],
        out_specs=pl.BlockSpec((1, Ho, Wo, Cout), lambda n: (n, 0, 0, 0)),
        compiler_params=pltpu.CompilerParams(
            dimension_semantics=("parallel",),
            vmem_limit_bytes=VMEM_LIMIT,
        ),
        cost_estimate=pl.CostEstimate(flops=flops, transcendentals=0,
                                      bytes_accessed=bytes_accessed),
    )(xp, w_taps, shift.reshape(1, Cout).astype(jnp.float32))


def conv3x3_bn_relu(x, w33, shift, stride):
    """3x3 conv (pad=1, any stride) + folded-BN shift + ReLU, no im2col in HBM.

    x: (N, H, W, Cin) bf16;  w33: (3, 3, Cin, Cout) scale-folded bf16.
    """
    N, H, W, Cin = x.shape
    Cout = w33.shape[-1]
    Ho = (H + 2 - 3) // stride + 1
    Wo = (W + 2 - 3) // stride + 1

    if stride == 1:
        xp = jnp.pad(x, ((0, 0), (1, 1), (1, 1), (0, 0)))
        w_taps = w33.reshape(9, Cin, Cout)
        KH = KW = 3
    else:
        # Rewrite strided conv as a stride-1 conv on a space-to-depth input.
        s = stride
        Hp = pl.cdiv(H + 2, s) * s
        Wp = pl.cdiv(W + 2, s) * s
        xp = jnp.pad(x, ((0, 0), (1, Hp - H - 1), (1, Wp - W - 1), (0, 0)))
        xp = xp.reshape(N, Hp // s, s, Wp // s, s, Cin)
        xp = xp.transpose(0, 1, 3, 2, 4, 5).reshape(N, Hp // s, Wp // s, s * s * Cin)
        Kp = (3 - 1) // s + 1
        wn = jnp.zeros((Kp, Kp, s, s, Cin, Cout), w33.dtype)
        for dh in range(3):
            for dw in range(3):
                wn = wn.at[dh // s, dw // s, dh % s, dw % s].set(w33[dh, dw])
        w_taps = wn.reshape(Kp * Kp, s * s * Cin, Cout)
        KH = KW = Kp

    out = conv_taps_bn_relu(xp, w_taps, shift, KH, KW, Ho, Wo, jnp.bfloat16)
    return out, Ho, Wo


# ---------------------------------------------------------------------------
# Parameters (deterministic, matches nn.Module __init__ shapes) + BN folding
# ---------------------------------------------------------------------------
def fold_bn(gamma, beta, mean, var, eps=BN_EPS):
    scale = gamma / jnp.sqrt(var + eps)
    shift = beta - mean * scale
    return scale, shift


def make_bottleneck_params(key, input_ch, output_ch, stride):
    out_exp = output_ch * EXPANSION
    ks = jax.random.split(key, 8)

    def bn_params(k, c):
        k1, k2, k3, k4 = jax.random.split(k, 4)
        gamma = 1.0 + 0.1 * jax.random.normal(k1, (c,), jnp.float32)
        beta = 0.1 * jax.random.normal(k2, (c,), jnp.float32)
        mean = 0.1 * jax.random.normal(k3, (c,), jnp.float32)
        var = 1.0 + 0.1 * jax.random.uniform(k4, (c,), jnp.float32)
        return gamma, beta, mean, var

    p = {}
    # conv1: 1x1  -> stored as (Cin, Cmid)
    p["w1"] = 0.1 * jax.random.normal(ks[0], (input_ch, output_ch), jnp.float32)
    p["bn1"] = bn_params(ks[1], output_ch)
    # conv2: 3x3  PyTorch (Cout, Cin, 3, 3) -> stored as (3, 3, Cin, Cout)
    w2 = 0.1 * jax.random.normal(ks[2], (output_ch, output_ch, 3, 3), jnp.float32)
    p["w2"] = jnp.transpose(w2, (2, 3, 1, 0))
    p["bn2"] = bn_params(ks[3], output_ch)
    # conv3: 1x1  -> (Cmid, Cexp)
    p["w3"] = 0.1 * jax.random.normal(ks[4], (output_ch, out_exp), jnp.float32)
    p["bn3"] = bn_params(ks[5], out_exp)

    p["has_shortcut"] = (stride != 1) or (input_ch != out_exp)
    if p["has_shortcut"]:
        p["ws"] = 0.1 * jax.random.normal(ks[6], (input_ch, out_exp), jnp.float32)
        p["bns"] = bn_params(ks[7], out_exp)
    return p


def fold_params(p):
    """Fold BN scale into weight columns (done once, offline), cast to bf16."""
    f = {"has_shortcut": p["has_shortcut"]}
    s1, b1 = fold_bn(*p["bn1"])
    f["w1"] = (p["w1"] * s1[None, :]).astype(jnp.bfloat16)
    f["b1"] = b1.astype(jnp.float32)
    s2, b2 = fold_bn(*p["bn2"])
    f["w2"] = (p["w2"] * s2[None, None, None, :]).astype(jnp.bfloat16)
    f["b2"] = b2.astype(jnp.float32)
    s3, b3 = fold_bn(*p["bn3"])
    f["w3"] = (p["w3"] * s3[None, :]).astype(jnp.bfloat16)
    f["b3"] = b3.astype(jnp.float32)
    if p["has_shortcut"]:
        ss, bs = fold_bn(*p["bns"])
        f["ws"] = (p["ws"] * ss[None, :]).astype(jnp.bfloat16)
        f["bs"] = bs.astype(jnp.float32)
    return f


# ---------------------------------------------------------------------------
# BottleNeck forward
# ---------------------------------------------------------------------------
def bottleneck_forward(x_nchw, params, stride):
    N, C, H, W = x_nchw.shape
    # TODO(synk): in a full ResNet keep activations NHWC (and >=128 channels for
    # lane-dense stores) end-to-end; the NCHW<->NHWC transposes here exist only
    # to match the PyTorch module boundary.
    x = jnp.transpose(x_nchw, (0, 2, 3, 1)).astype(jnp.bfloat16)   # NHWC, bf16

    Cmid = params["w1"].shape[1]
    Cexp = params["w3"].shape[1]

    # stage 1: 1x1 conv + (folded) BN + ReLU
    h1 = fused_matmul_bn(x.reshape(N * H * W, C), params["w1"], params["b1"],
                         relu=True, out_dtype=jnp.bfloat16)
    h1 = h1.reshape(N, H, W, Cmid)

    # stage 2: 3x3 conv (stride, pad=1) + BN + ReLU — taps fused, no im2col
    h2, Ho, Wo = conv3x3_bn_relu(h1, params["w2"], params["b2"], stride)
    h2f = h2.reshape(N * Ho * Wo, Cmid)

    # stage 3: 1x1 conv + BN fused with shortcut + residual add + final ReLU
    if params["has_shortcut"]:
        xs = x if stride == 1 else x[:, ::stride, ::stride, :]
        xs = xs.reshape(N * Ho * Wo, C)
        out = fused_matmul_bn(h2f, params["w3"], params["b3"],
                              shortcut=(xs, params["ws"], params["bs"]),
                              out_dtype=jnp.float32)
    else:
        res = x.reshape(N * Ho * Wo, Cexp)
        out = fused_matmul_bn(h2f, params["w3"], params["b3"], residual=res,
                              out_dtype=jnp.float32)

    out = out.reshape(N, Ho, Wo, Cexp)
    return jnp.transpose(out, (0, 3, 1, 2)).astype(x_nchw.dtype)   # back to NCHW


# ---------------------------------------------------------------------------
if __name__ == "__main__":
    key = jax.random.PRNGKey(0)
    k_x, k_p = jax.random.split(key)

    input_ch, output_ch, stride = 4, 4, 1
    x = jax.random.normal(k_x, (2, input_ch, 16, 16), jnp.float32)   # NCHW

    raw_params = make_bottleneck_params(k_p, input_ch, output_ch, stride)
    params = fold_params(raw_params)

    fwd = jax.jit(functools.partial(bottleneck_forward, params=params, stride=stride))
    y = jax.block_until_ready(fwd(x))

    expected_shape = (2, output_ch * EXPANSION, 16 // stride, 16 // stride)
    assert y.shape == expected_shape, (y.shape, expected_shape)
    assert bool(jnp.all(y >= 0.0))            # final ReLU
    assert bool(jnp.all(jnp.isfinite(y)))
    print("KERNEL_OK")
</pallas_src>

<mosaic_0001>
module attributes {stable_mosaic.version = 11 : i64} {
  func.func @_mm_bn_kernel(%arg0: i32, %arg1: i32, %arg2: memref<512x4xbf16, #tpu.memory_space<vmem>>, %arg3: memref<4x4xbf16, #tpu.memory_space<vmem>>, %arg4: memref<1x4xf32, #tpu.memory_space<vmem>>, %arg5: memref<512x4xbf16, #tpu.memory_space<vmem>>) attributes {dimension_semantics = [#tpu.dimension_semantics<parallel>, #tpu.dimension_semantics<parallel>], iteration_bounds = array<i64: 1, 1>, scalar_prefetch = 0 : i64, scratch_operands = 0 : i64, tpu.core_type = #tpu.core_type<tc>, window_params = [{transform_indices = @transform_0, window_bounds = array<i64: 512, 4>}, {transform_indices = @transform_1, window_bounds = array<i64: 4, 4>}, {transform_indices = @transform_2, window_bounds = array<i64: 1, 4>}, {transform_indices = @transform_3, window_bounds = array<i64: 512, 4>}]} {
    %c0 = arith.constant 0 : index
    %c0_0 = arith.constant 0 : index
    %0 = vector.load %arg2[%c0, %c0_0] : memref<512x4xbf16, #tpu.memory_space<vmem>>, vector<512x4xbf16>
    %c0_1 = arith.constant 0 : index
    %c0_2 = arith.constant 0 : index
    %1 = vector.load %arg3[%c0_1, %c0_2] : memref<4x4xbf16, #tpu.memory_space<vmem>>, vector<4x4xbf16>
    %cst = arith.constant dense<0.000000e+00> : vector<512x4xf32>
    %2 = tpu.matmul %0, %1, %cst {dimension_numbers = #tpu.dot_dimension_numbers<[1], [0], [0], [1], [0, 0, 1, 1], [], []>} : vector<512x4xbf16>, vector<4x4xbf16>, vector<512x4xf32> -> vector<512x4xf32>
    %c0_3 = arith.constant 0 : index
    %c0_4 = arith.constant 0 : index
    %3 = vector.load %arg4[%c0_3, %c0_4] : memref<1x4xf32, #tpu.memory_space<vmem>>, vector<1x4xf32>
    %4 = vector.broadcast %3 : vector<1x4xf32> to vector<512x4xf32>
    %5 = arith.addf %2, %4 : vector<512x4xf32>
    %cst_5 = arith.constant 0.000000e+00 : f32
    %6 = vector.broadcast %cst_5 : f32 to vector<512x4xf32>
    %7 = arith.maximumf %5, %6 : vector<512x4xf32>
    %8 = arith.truncf %7 : vector<512x4xf32> to vector<512x4xbf16>
    %c0_6 = arith.constant 0 : index
    %c0_7 = arith.constant 0 : index
    %9 = vector.load %arg5[%c0_6, %c0_7] : memref<512x4xbf16, #tpu.memory_space<vmem>>, vector<512x4xbf16>
    tpu.vector_store %arg5[%c0_6, %c0_7], %8 {strides = array<i32>} : memref<512x4xbf16, #tpu.memory_space<vmem>>, vector<512x4xbf16>,
    return
  }
  func.func @transform_0(%arg0: i32, %arg1: i32) -> (i32, i32) {
    %c0_i32 = arith.constant 0 : i32
    %c0_i32_0 = arith.constant 0 : i32
    return %arg0, %c0_i32 : i32, i32
  }
  func.func @transform_1(%arg0: i32, %arg1: i32) -> (i32, i32) {
    %c0_i32 = arith.constant 0 : i32
    %c0_i32_0 = arith.constant 0 : i32
    return %c0_i32, %arg1 : i32, i32
  }
  func.func @transform_2(%arg0: i32, %arg1: i32) -> (i32, i32) {
    %c0_i32 = arith.constant 0 : i32
    %c0_i32_0 = arith.constant 0 : i32
    return %c0_i32, %arg1 : i32, i32
  }
  func.func @transform_3(%arg0: i32, %arg1: i32) -> (i32, i32) {
    %c0_i32 = arith.constant 0 : i32
    return %arg0, %arg1 : i32, i32
  }
}

module attributes {stable_mosaic.version = 11 : i64} {
  func.func @_mm_bn_dual_kernel(%arg0: i32, %arg1: i32, %arg2: memref<512x4xbf16, #tpu.memory_space<vmem>>, %arg3: memref<4x16xbf16, #tpu.memory_space<vmem>>, %arg4: memref<1x16xf32, #tpu.memory_space<vmem>>, %arg5: memref<512x4xbf16, #tpu.memory_space<vmem>>, %arg6: memref<4x16xbf16, #tpu.memory_space<vmem>>, %arg7: memref<1x16xf32, #tpu.memory_space<vmem>>, %arg8: memref<512x16xf32, #tpu.memory_space<vmem>>) attributes {dimension_semantics = [#tpu.dimension_semantics<parallel>, #tpu.dimension_semantics<parallel>], iteration_bounds = array<i64: 1, 1>, scalar_prefetch = 0 : i64, scratch_operands = 0 : i64, tpu.core_type = #tpu.core_type<tc>, window_params = [{transform_indices = @transform_0, window_bounds = array<i64: 512, 4>}, {transform_indices = @transform_1, window_bounds = array<i64: 4, 16>}, {transform_indices = @transform_2, window_bounds = array<i64: 1, 16>}, {transform_indices = @transform_3, window_bounds = array<i64: 512, 4>}, {transform_indices = @transform_4, window_bounds = array<i64: 4, 16>}, {transform_indices = @transform_5, window_bounds = array<i64: 1, 16>}, {transform_indices = @transform_6, window_bounds = array<i64: 512, 16>}]} {
    %c0 = arith.constant 0 : index
    %c0_0 = arith.constant 0 : index
    %0 = vector.load %arg2[%c0, %c0_0] : memref<512x4xbf16, #tpu.memory_space<vmem>>, vector<512x4xbf16>
    %c0_1 = arith.constant 0 : index
    %c0_2 = arith.constant 0 : index
    %1 = vector.load %arg3[%c0_1, %c0_2] : memref<4x16xbf16, #tpu.memory_space<vmem>>, vector<4x16xbf16>
    %cst = arith.constant dense<0.000000e+00> : vector<512x16xf32>
    %2 = tpu.matmul %0, %1, %cst {dimension_numbers = #tpu.dot_dimension_numbers<[1], [0], [0], [1], [0, 0, 1, 1], [], []>} : vector<512x4xbf16>, vector<4x16xbf16>, vector<512x16xf32> -> vector<512x16xf32>
    %c0_3 = arith.constant 0 : index
    %c0_4 = arith.constant 0 : index
    %3 = vector.load %arg4[%c0_3, %c0_4] : memref<1x16xf32, #tpu.memory_space<vmem>>, vector<1x16xf32>
    %4 = vector.broadcast %3 : vector<1x16xf32> to vector<512x16xf32>
    %5 = arith.addf %2, %4 : vector<512x16xf32>
    %c0_5 = arith.constant 0 : index
    %c0_6 = arith.constant 0 : index
    %6 = vector.load %arg5[%c0_5, %c0_6] : memref<512x4xbf16, #tpu.memory_space<vmem>>, vector<512x4xbf16>
    %c0_7 = arith.constant 0 : index
    %c0_8 = arith.constant 0 : index
    %7 = vector.load %arg6[%c0_7, %c0_8] : memref<4x16xbf16, #tpu.memory_space<vmem>>, vector<4x16xbf16>
    %cst_9 = arith.constant dense<0.000000e+00> : vector<512x16xf32>
    %8 = tpu.matmul %6, %7, %cst_9 {dimension_numbers = #tpu.dot_dimension_numbers<[1], [0], [0], [1], [0, 0, 1, 1], [], []>} : vector<512x4xbf16>, vector<4x16xbf16>, vector<512x16xf32> -> vector<512x16xf32>
    %9 = arith.addf %5, %8 : vector<512x16xf32>
    %c0_10 = arith.constant 0 : index
    %c0_11 = arith.constant 0 : index
    %10 = vector.load %arg7[%c0_10, %c0_11] : memref<1x16xf32, #tpu.memory_space<vmem>>, vector<1x16xf32>
    %11 = vector.broadcast %10 : vector<1x16xf32> to vector<512x16xf32>
    %12 = arith.addf %9, %11 : vector<512x16xf32>
    %cst_12 = arith.constant 0.000000e+00 : f32
    %13 = vector.broadcast %cst_12 : f32 to vector<512x16xf32>
    %14 = arith.maximumf %12, %13 : vector<512x16xf32>
    %c0_13 = arith.constant 0 : index
    %c0_14 = arith.constant 0 : index
    %15 = vector.load %arg8[%c0_13, %c0_14] : memref<512x16xf32, #tpu.memory_space<vmem>>, vector<512x16xf32>
    tpu.vector_store %arg8[%c0_13, %c0_14], %14 {strides = array<i32>} : memref<512x16xf32, #tpu.memory_space<vmem>>, vector<512x16xf32>,
    return
  }
  func.func @transform_0(%arg0: i32, %arg1: i32) -> (i32, i32) {
    %c0_i32 = arith.constant 0 : i32
    %c0_i32_0 = arith.constant 0 : i32
    return %arg0, %c0_i32 : i32, i32
  }
  func.func @transform_1(%arg0: i32, %arg1: i32) -> (i32, i32) {
    %c0_i32 = arith.constant 0 : i32
    %c0_i32_0 = arith.constant 0 : i32
    return %c0_i32, %arg1 : i32, i32
  }
  func.func @transform_2(%arg0: i32, %arg1: i32) -> (i32, i32) {
    %c0_i32 = arith.constant 0 : i32
    %c0_i32_0 = arith.constant 0 : i32
    return %c0_i32, %arg1 : i32, i32
  }
  func.func @transform_3(%arg0: i32, %arg1: i32) -> (i32, i32) {
    %c0_i32 = arith.constant 0 : i32
    %c0_i32_0 = arith.constant 0 : i32
    return %arg0, %c0_i32 : i32, i32
  }
  func.func @transform_4(%arg0: i32, %arg1: i32) -> (i32, i32) {
    %c0_i32 = arith.constant 0 : i32
    %c0_i32_0 = arith.constant 0 : i32
    return %c0_i32, %arg1 : i32, i32
  }
  func.func @transform_5(%arg0: i32, %arg1: i32) -> (i32, i32) {
    %c0_i32 = arith.constant 0 : i32
    %c0_i32_0 = arith.constant 0 : i32
    return %c0_i32, %arg1 : i32, i32
  }
  func.func @transform_6(%arg0: i32, %arg1: i32) -> (i32, i32) {
    %c0_i32 = arith.constant 0 : i32
    return %arg0, %arg1 : i32, i32
  }
}

module attributes {stable_mosaic.version = 11 : i64} {
  func.func @_conv_taps_kernel(%arg0: i32, %arg1: memref<1x18x18x4xbf16, #tpu.memory_space<vmem>>, %arg2: memref<9x4x4xbf16, #tpu.memory_space<vmem>>, %arg3: memref<1x4xf32, #tpu.memory_space<vmem>>, %arg4: memref<1x16x16x4xbf16, #tpu.memory_space<vmem>>) attributes {dimension_semantics = [#tpu.dimension_semantics<parallel>], iteration_bounds = array<i64: 2>, scalar_prefetch = 0 : i64, scratch_operands = 0 : i64, tpu.core_type = #tpu.core_type<tc>, window_params = [{transform_indices = @transform_0, window_bounds = array<i64: 1, 18, 18, 4>}, {pipeline_mode = #tpu.pipeline_mode<synchronous>, transform_indices = @transform_1, window_bounds = array<i64: 9, 4, 4>}, {pipeline_mode = #tpu.pipeline_mode<synchronous>, transform_indices = @transform_2, window_bounds = array<i64: 1, 4>}, {transform_indices = @transform_3, window_bounds = array<i64: 1, 16, 16, 4>}]} {
    %c0 = arith.constant 0 : index
    %c0_0 = arith.constant 0 : index
    %0 = vector.load %arg3[%c0, %c0_0] : memref<1x4xf32, #tpu.memory_space<vmem>>, vector<1x4xf32>
    %cst = arith.constant 0.000000e+00 : f32
    %1 = vector.broadcast %cst : f32 to vector<256x4xf32>
    %c0_1 = arith.constant 0 : index
    %c0_2 = arith.constant 0 : index
    %c0_3 = arith.constant 0 : index
    %c0_4 = arith.constant 0 : index
    %2 = vector.load %arg1[%c0_1, %c0_2, %c0_3, %c0_4] : memref<1x18x18x4xbf16, #tpu.memory_space<vmem>>, vector<1x16x16x4xbf16>
    %3 = vector.shape_cast %2 : vector<1x16x16x4xbf16> to vector<256x4xbf16>
    %c0_5 = arith.constant 0 : index
    %c0_6 = arith.constant 0 : index
    %c0_7 = arith.constant 0 : index
    %4 = vector.load %arg2[%c0_5, %c0_6, %c0_7] : memref<9x4x4xbf16, #tpu.memory_space<vmem>>, vector<1x4x4xbf16>
    %5 = vector.shape_cast %4 : vector<1x4x4xbf16> to vector<4x4xbf16>
    %cst_8 = arith.constant dense<0.000000e+00> : vector<256x4xf32>
    %6 = tpu.matmul %3, %5, %cst_8 {dimension_numbers = #tpu.dot_dimension_numbers<[1], [0], [0], [1], [0, 0, 1, 1], [], []>} : vector<256x4xbf16>, vector<4x4xbf16>, vector<256x4xf32> -> vector<256x4xf32>
    %7 = arith.addf %1, %6 : vector<256x4xf32>
    %c0_9 = arith.constant 0 : index
    %c0_10 = arith.constant 0 : index
    %c1 = arith.constant 1 : index
    %c0_11 = arith.constant 0 : index
    %8 = vector.load %arg1[%c0_9, %c0_10, %c1, %c0_11] : memref<1x18x18x4xbf16, #tpu.memory_space<vmem>>, vector<1x16x16x4xbf16>
    %9 = vector.shape_cast %8 : vector<1x16x16x4xbf16> to vector<256x4xbf16>
    %c1_12 = arith.constant 1 : index
    %c0_13 = arith.constant 0 : index
    %c0_14 = arith.constant 0 : index
    %10 = vector.load %arg2[%c1_12, %c0_13, %c0_14] : memref<9x4x4xbf16, #tpu.memory_space<vmem>>, vector<1x4x4xbf16>
    %11 = vector.shape_cast %10 : vector<1x4x4xbf16> to vector<4x4xbf16>
    %cst_15 = arith.constant dense<0.000000e+00> : vector<256x4xf32>
    %12 = tpu.matmul %9, %11, %cst_15 {dimension_numbers = #tpu.dot_dimension_numbers<[1], [0], [0], [1], [0, 0, 1, 1], [], []>} : vector<256x4xbf16>, vector<4x4xbf16>, vector<256x4xf32> -> vector<256x4xf32>
    %13 = arith.addf %7, %12 : vector<256x4xf32>
    %c0_16 = arith.constant 0 : index
    %c0_17 = arith.constant 0 : index
    %c2 = arith.constant 2 : index
    %c0_18 = arith.constant 0 : index
    %14 = vector.load %arg1[%c0_16, %c0_17, %c2, %c0_18] : memref<1x18x18x4xbf16, #tpu.memory_space<vmem>>, vector<1x16x16x4xbf16>
    %15 = vector.shape_cast %14 : vector<1x16x16x4xbf16> to vector<256x4xbf16>
    %c2_19 = arith.constant 2 : index
    %c0_20 = arith.constant 0 : index
    %c0_21 = arith.constant 0 : index
    %16 = vector.load %arg2[%c2_19, %c0_20, %c0_21] : memref<9x4x4xbf16, #tpu.memory_space<vmem>>, vector<1x4x4xbf16>
    %17 = vector.shape_cast %16 : vector<1x4x4xbf16> to vector<4x4xbf16>
    %cst_22 = arith.constant dense<0.000000e+00> : vector<256x4xf32>
    %18 = tpu.matmul %15, %17, %cst_22 {dimension_numbers = #tpu.dot_dimension_numbers<[1], [0], [0], [1], [0, 0, 1, 1], [], []>} : vector<256x4xbf16>, vector<4x4xbf16>, vector<256x4xf32> -> vector<256x4xf32>
    %19 = arith.addf %13, %18 : vector<256x4xf32>
    %c0_23 = arith.constant 0 : index
    %c1_24 = arith.constant 1 : index
    %c0_25 = arith.constant 0 : index
    %c0_26 = arith.constant 0 : index
    %20 = vector.load %arg1[%c0_23, %c1_24, %c0_25, %c0_26] : memref<1x18x18x4xbf16, #tpu.memory_space<vmem>>, vector<1x16x16x4xbf16>
    %21 = vector.shape_cast %20 : vector<1x16x16x4xbf16> to vector<256x4xbf16>
    %c3 = arith.constant 3 : index
    %c0_27 = arith.constant 0 : index
    %c0_28 = arith.constant 0 : index
    %22 = vector.load %arg2[%c3, %c0_27, %c0_28] : memref<9x4x4xbf16, #tpu.memory_space<vmem>>, vector<1x4x4xbf16>
    %23 = vector.shape_cast %22 : vector<1x4x4xbf16> to vector<4x4xbf16>
    %cst_29 = arith.constant dense<0.000000e+00> : vector<256x4xf32>
    %24 = tpu.matmul %21, %23, %cst_29 {dimension_numbers = #tpu.dot_dimension_numbers<[1], [0], [0], [1], [0, 0, 1, 1], [], []>} : vector<256x4xbf16>, vector<4x4xbf16>, vector<256x4xf32> -> vector<256x4xf32>
    %25 = arith.addf %19, %24 : vector<256x4xf32>
    %c0_30 = arith.constant 0 : index
    %c1_31 = arith.constant 1 : index
    %c1_32 = arith.constant 1 : index
    %c0_33 = arith.constant 0 : index
    %26 = vector.load %arg1[%c0_30, %c1_31, %c1_32, %c0_33] : memref<1x18x18x4xbf16, #tpu.memory_space<vmem>>, vector<1x16x16x4xbf16>
    %27 = vector.shape_cast %26 : vector<1x16x16x4xbf16> to vector<256x4xbf16>
    %c4 = arith.constant 4 : index
    %c0_34 = arith.constant 0 : index
    %c0_35 = arith.constant 0 : index
    %28 = vector.load %arg2[%c4, %c0_34, %c0_35] : memref<9x4x4xbf16, #tpu.memory_space<vmem>>, vector<1x4x4xbf16>
    %29 = vector.shape_cast %28 : vector<1x4x4xbf16> to vector<4x4xbf16>
    %cst_36 = arith.constant dense<0.000000e+00> : vector<256x4xf32>
    %30 = tpu.matmul %27, %29, %cst_36 {dimension_numbers = #tpu.dot_dimension_numbers<[1], [0], [0], [1], [0, 0, 1, 1], [], []>} : vector<256x4xbf16>, vector<4x4xbf16>, vector<256x4xf32> -> vector<256x4xf32>
    %31 = arith.addf %25, %30 : vector<256x4xf32>
    %c0_37 = arith.constant 0 : index
    %c1_38 = arith.constant 1 : index
    %c2_39 = arith.constant 2 : index
    %c0_40 = arith.constant 0 : index
    %32 = vector.load %arg1[%c0_37, %c1_38, %c2_39, %c0_40] : memref<1x18x18x4xbf16, #tpu.memory_space<vmem>>, vector<1x16x16x4xbf16>
    %33 = vector.shape_cast %32 : vector<1x16x16x4xbf16> to vector<256x4xbf16>
    %c5 = arith.constant 5 : index
    %c0_41 = arith.constant 0 : index
    %c0_42 = arith.constant 0 : index
    %34 = vector.load %arg2[%c5, %c0_41, %c0_42] : memref<9x4x4xbf16, #tpu.memory_space<vmem>>, vector<1x4x4xbf16>
    %35 = vector.shape_cast %34 : vector<1x4x4xbf16> to vector<4x4xbf16>
    %cst_43 = arith.constant dense<0.000000e+00> : vector<256x4xf32>
    %36 = tpu.matmul %33, %35, %cst_43 {dimension_numbers = #tpu.dot_dimension_numbers<[1], [0], [0], [1], [0, 0, 1, 1], [], []>} : vector<256x4xbf16>, vector<4x4xbf16>, vector<256x4xf32> -> vector<256x4xf32>
    %37 = arith.addf %31, %36 : vector<256x4xf32>
    %c0_44 = arith.constant 0 : index
    %c2_45 = arith.constant 2 : index
    %c0_46 = arith.constant 0 : index
    %c0_47 = arith.constant 0 : index
    %38 = vector.load %arg1[%c0_44, %c2_45, %c0_46, %c0_47] : memref<1x18x18x4xbf16, #tpu.memory_space<vmem>>, vector<1x16x16x4xbf16>
    %39 = vector.shape_cast %38 : vector<1x16x16x4xbf16> to vector<256x4xbf16>
    %c6 = arith.constant 6 : index
    %c0_48 = arith.constant 0 : index
    %c0_49 = arith.constant 0 : index
    %40 = vector.load %arg2[%c6, %c0_48, %c0_49] : memref<9x4x4xbf16, #tpu.memory_space<vmem>>, vector<1x4x4xbf16>
    %41 = vector.shape_cast %40 : vector<1x4x4xbf16> to vector<4x4xbf16>
    %cst_50 = arith.constant dense<0.000000e+00> : vector<256x4xf32>
    %42 = tpu.matmul %39, %41, %cst_50 {dimension_numbers = #tpu.dot_dimension_numbers<[1], [0], [0], [1], [0, 0, 1, 1], [], []>} : vector<256x4xbf16>, vector<4x4xbf16>, vector<256x4xf32> -> vector<256x4xf32>
    %43 = arith.addf %37, %42 : vector<256x4xf32>
    %c0_51 = arith.constant 0 : index
    %c2_52 = arith.constant 2 : index
    %c1_53 = arith.constant 1 : index
    %c0_54 = arith.constant 0 : index
    %44 = vector.load %arg1[%c0_51, %c2_52, %c1_53, %c0_54] : memref<1x18x18x4xbf16, #tpu.memory_space<vmem>>, vector<1x16x16x4xbf16>
    %45 = vector.shape_cast %44 : vector<1x16x16x4xbf16> to vector<256x4xbf16>
    %c7 = arith.constant 7 : index
    %c0_55 = arith.constant 0 : index
    %c0_56 = arith.constant 0 : index
    %46 = vector.load %arg2[%c7, %c0_55, %c0_56] : memref<9x4x4xbf16, #tpu.memory_space<vmem>>, vector<1x4x4xbf16>
    %47 = vector.shape_cast %46 : vector<1x4x4xbf16> to vector<4x4xbf16>
    %cst_57 = arith.constant dense<0.000000e+00> : vector<256x4xf32>
    %48 = tpu.matmul %45, %47, %cst_57 {dimension_numbers = #tpu.dot_dimension_numbers<[1], [0], [0], [1], [0, 0, 1, 1], [], []>} : vector<256x4xbf16>, vector<4x4xbf16>, vector<256x4xf32> -> vector<256x4xf32>
    %49 = arith.addf %43, %48 : vector<256x4xf32>
    %c0_58 = arith.constant 0 : index
    %c2_59 = arith.constant 2 : index
    %c2_60 = arith.constant 2 : index
    %c0_61 = arith.constant 0 : index
    %50 = vector.load %arg1[%c0_58, %c2_59, %c2_60, %c0_61] : memref<1x18x18x4xbf16, #tpu.memory_space<vmem>>, vector<1x16x16x4xbf16>
    %51 = vector.shape_cast %50 : vector<1x16x16x4xbf16> to vector<256x4xbf16>
    %c8 = arith.constant 8 : index
    %c0_62 = arith.constant 0 : index
    %c0_63 = arith.constant 0 : index
    %52 = vector.load %arg2[%c8, %c0_62, %c0_63] : memref<9x4x4xbf16, #tpu.memory_space<vmem>>, vector<1x4x4xbf16>
    %53 = vector.shape_cast %52 : vector<1x4x4xbf16> to vector<4x4xbf16>
    %cst_64 = arith.constant dense<0.000000e+00> : vector<256x4xf32>
    %54 = tpu.matmul %51, %53, %cst_64 {dimension_numbers = #tpu.dot_dimension_numbers<[1], [0], [0], [1], [0, 0, 1, 1], [], []>} : vector<256x4xbf16>, vector<4x4xbf16>, vector<256x4xf32> -> vector<256x4xf32>
    %55 = arith.addf %49, %54 : vector<256x4xf32>
    %56 = vector.broadcast %0 : vector<1x4xf32> to vector<256x4xf32>
    %57 = arith.addf %55, %56 : vector<256x4xf32>
    %cst_65 = arith.constant 0.000000e+00 : f32
    %58 = vector.broadcast %cst_65 : f32 to vector<256x4xf32>
    %59 = arith.maximumf %57, %58 : vector<256x4xf32>
    %60 = vector.shape_cast %59 : vector<256x4xf32> to vector<1x16x16x4xf32>
    %61 = arith.truncf %60 : vector<1x16x16x4xf32> to vector<1x16x16x4xbf16>
    %c0_66 = arith.constant 0 : index
    %c0_67 = arith.constant 0 : index
    %c0_68 = arith.constant 0 : index
    %c0_69 = arith.constant 0 : index
    %62 = vector.load %arg4[%c0_66, %c0_67, %c0_68, %c0_69] : memref<1x16x16x4xbf16, #tpu.memory_space<vmem>>, vector<1x16x16x4xbf16>
    tpu.vector_store %arg4[%c0_66, %c0_67, %c0_68, %c0_69], %61 {strides = array<i32>} : memref<1x16x16x4xbf16, #tpu.memory_space<vmem>>, vector<1x16x16x4xbf16>,
    return
  }
  func.func @transform_0(%arg0: i32) -> (i32, i32, i32, i32) {
    %c0_i32 = arith.constant 0 : i32
    %c0_i32_0 = arith.constant 0 : i32
    %c0_i32_1 = arith.constant 0 : i32
    %c0_i32_2 = arith.constant 0 : i32
    return %arg0, %c0_i32, %c0_i32_0, %c0_i32_1 : i32, i32, i32, i32
  }
  func.func @transform_1(%arg0: i32) -> (i32, i32, i32) {
    %c0_i32 = arith.constant 0 : i32
    %c0_i32_0 = arith.constant 0 : i32
    %c0_i32_1 = arith.constant 0 : i32
    %c0_i32_2 = arith.constant 0 : i32
    return %c0_i32, %c0_i32_0, %c0_i32_1 : i32, i32, i32
  }
  func.func @transform_2(%arg0: i32) -> (i32, i32) {
    %c0_i32 = arith.constant 0 : i32
    %c0_i32_0 = arith.constant 0 : i32
    %c0_i32_1 = arith.constant 0 : i32
    return %c0_i32, %c0_i32_0 : i32, i32
  }
  func.func @transform_3(%arg0: i32) -> (i32, i32, i32, i32) {
    %c0_i32 = arith.constant 0 : i32
    %c0_i32_0 = arith.constant 0 : i32
    %c0_i32_1 = arith.constant 0 : i32
    %c0_i32_2 = arith.constant 0 : i32
    return %arg0, %c0_i32, %c0_i32_0, %c0_i32_1 : i32, i32, i32, i32
  }
}

</mosaic_0001>

<bundles_post_ra>
// kernel: bottleneck_forward.3
= control target key start
LH: loop header
LB: loop body
LE: loop exit
PB: predicated region body
PF: predicated region fallthrough
CT: control target
= control target key end

     0   :  { %8 = vsyncpa [#allocation3], 0  ;;  %s1755_s0 = inlined_call_operand.hbm [shape: bf16[512,4], index: 0, kind: input, shape index: {}]   ;;  %s1756_s1 = inlined_call_operand.hbm [shape: bf16[4,4], index: 1, kind: input, shape index: {}]   ;;  %s1757_s2 = inlined_call_operand.hbm [shape: f32[1,4], index: 2, kind: input, shape index: {}]   ;;  %s1758_s3 = inlined_call_operand.hbm [shape: bf16[512,4], index: 3, kind: output, shape index: {}]  }
   0x1   :  { %9 = vsyncpa [#allocation6], 0 }
   0x2   :  { %10 = vsyncpa [#allocation4], 0  ;;  %s1506_s12 = smov [#allocation5]   ;;  %s1507_s14 = smov [#allocation2]  }
   0x3   :  { %s29_s13 = sshll.u32 %s1506_s12, 4  ;;  %s16_s15 = sshll.u32 %s1507_s14, 4  ;;  %s30_s13 = int_to_ptr.vmem [resolvable:$true] %s29_s13  ;;  %s1532_s15 = int_to_ptr.vmem [resolvable:$true] %s16_s15 }
   0x4   :  { %s1412_s18 = scalar_lea.hbm %s1756_s1, 32 }
   0x5   :  { %p1413_p0 = scmp.ne.s32.totalorder %s1756_s1, %s1412_s18  ;;  %p1416_p1 = scmp.lt.u32.totalorder %s1412_s18, %s1756_s1 }
   0x7   :  { %p1418_p2 = pnand %p1416_p1, %p1413_p0 }
   0x9   :  { %1421 = shalt.err (!%p1418_p2)
}
   0xa   :  { %s1422_s23 = scalar_lea.vmem %s30_s13, 32  ;;  %p1427_p4 = scmp.lt.s32.totalorder %s30_s13, %s30_s13 }
   0xb   :  { %p1423_p3 = scmp.ne.s32.totalorder %s30_s13, %s1422_s23  ;;  %p1428_p5 = scmp.lt.s32.totalorder %s1422_s23, %s1422_s23 }
   0xd   :  { %p1429_p6 = por %p1428_p5, %p1427_p4 }
   0xf   :  { %p1430_p7 = pnand %p1429_p6, %p1423_p3 }
  0x11   :  { %1433 = shalt.err (!%p1430_p7)
}
  0x12   :  { %32 = dma.hbm_to_vmem [thread:$0]  %s1756_s1, 32, %s30_s13, [#allocation6]  }
  0x13   :  { %s1434_s28 = scalar_lea.hbm %s1755_s0, 4096 }
  0x14   :  { %p1435_p8 = scmp.ne.s32.totalorder %s1755_s0, %s1434_s28  ;;  %p1438_p9 = scmp.lt.u32.totalorder %s1434_s28, %s1755_s0 }
  0x16   :  { %p1440_p10 = pnand %p1438_p9, %p1435_p8 }
  0x18   :  { %1443 = shalt.err (!%p1440_p10)
}
  0x19   :  { %s1444_s6 = scalar_lea.vmem %s1532_s15, 4096  ;;  %p1449_p12 = scmp.lt.s32.totalorder %s1532_s15, %s1532_s15 }
  0x1a   :  { %p1445_p11 = scmp.ne.s32.totalorder %s1532_s15, %s1444_s6  ;;  %p1450_p13 = scmp.lt.s32.totalorder %s1444_s6, %s1444_s6 }
  0x1c   :  { %p1451_p0 = por %p1450_p13, %p1449_p12 }
  0x1e   :  { %p1452_p1 = pnand %p1451_p0, %p1445_p11 }
  0x20   :  { %1455 = shalt.err (!%p1452_p1)
}
  0x21   :  { %s1508_s1 = smov 64   ;;  %s1509_s7 = smov 4  }
  0x22   :  { %22 = dma.hbm_to_vmem [thread:$0]  %s1755_s0, 4096, %s1532_s15, [#allocation3], %s1508_s1, %s1508_s1, %s1509_s7  }
  0x23   :  { %s1510_s10 = smov [#allocation7]   ;;  %s1456_s14 = scalar_lea.hbm %s1757_s2, 16 }
  0x24   :  { %s39_s11 = sshll.u32 %s1510_s10, 4  ;;  %p1457_p2 = scmp.ne.s32.totalorder %s1757_s2, %s1456_s14  ;;  %s40_s11 = int_to_ptr.vmem [resolvable:$true] %s39_s11 }
  0x25   :  { %p1460_p3 = scmp.lt.u32.totalorder %s1456_s14, %s1757_s2 }
  0x27   :  { %p1462_p4 = pnand %p1460_p3, %p1457_p2 }
  0x29   :  { %1465 = shalt.err (!%p1462_p4)
}
  0x2a   :  { %s1466_s20 = scalar_lea.vmem %s40_s11, 16  ;;  %s1470_s0 = scalar_lea.vmem %s40_s11, 32 }
  0x2b   :  { %p1467_p5 = scmp.ne.s32.totalorder %s40_s11, %s1466_s20  ;;  %p1471_p6 = scmp.lt.s32.totalorder %s40_s11, %s40_s11 }
  0x2c   :  { %p1472_p7 = scmp.lt.s32.totalorder %s1470_s0, %s1466_s20 }
  0x2e   :  { %p1473_p8 = por %p1472_p7, %p1471_p6 }
  0x30   :  { %p1474_p9 = pnand %p1473_p8, %p1467_p5 }
  0x32   :  { %1477 = shalt.err (!%p1474_p9)
}
  0x33   :  { %42 = dma.hbm_to_vmem [thread:$0]  %s1757_s2, 16, %s40_s11, [#allocation6]  }
  0x34   :  { %1500 = dma.done.wait [#allocation3], 4096  }
  0x35   :  { %1501 = vsyncadd [#allocation3], 4294963200 }
  0x36   :  { %1502 = dma.done.wait [#allocation6], 48  }
  0x37   :  { %1503 = vsyncadd [#allocation6], 4294967248  ;;  %vm382_vm0 = vcmask 1041408   ;;  %vm285_vm1 = vcmask 31744   ;;  %v117_v0 = vld [vmem:[#allocation5] sm:$0x3] }
  0x38   :  { %1372 = vmatprep.subr.msk.bf16.mxu0 %vm382_vm0, %v117_v0  ;;  %1373 = vmatprep.subr.msk.bf16.mxu1 %vm382_vm0, %v117_v0  ;;  %v384_v1 = vsel %vm382_vm0, %v117_v0, 0  ;;  %v1380_v2 = vld [vmem:[#allocation2] sm:$0xff]   ;;  %v1382_v4 = vld [vmem:[#allocation2 + $0x8] sm:$0xff]   ;;  %v1384_v6 = vld [vmem:[#allocation2 + $0x10] sm:$0xff]   ;;  %vm995_vm2 = vcmask 27648   ;;  %s1511_s2 = smov [#allocation8]  }
  0x39   :  { %1305 = vmatpush3.bf16.msra.mxu0 %v384_v1  ;;  %1371 = vmatpush3.bf16.msra.mxu1 %v384_v1  ;;  %v1381_v3 = vld [vmem:[#allocation2 + $0x80] sm:$0xff]   ;;  %v1383_v5 = vld [vmem:[#allocation2 + $0x88] sm:$0xff]   ;;  %v1385_v7 = vld [vmem:[#allocation2 + $0x90] sm:$0xff]   ;;  %s1065_s22 = sshll.u32 %s1511_s2, 4  ;;  %s1066_s22 = int_to_ptr.vmem [resolvable:$true] %s1065_s22 }
  0x3a   :  { %1306 = vmatprep.mubr.msk.bf16.mxu0 %vm285_vm1, %v1380_v2  ;;  %1338 = vmatprep.mubr.msk.bf16.mxu1 %vm285_vm1, %v1381_v3  ;;  %v1386_v8 = vld [vmem:[#allocation2 + $0x18] sm:$0xff]   ;;  %v1388_v10 = vld [vmem:[#allocation2 + $0x20] sm:$0xff]   ;;  %v1390_v12 = vld [vmem:[#allocation2 + $0x28] sm:$0xff]   ;;  %s1478_s23 = scalar_lea.vmem %s1066_s22, 4096  ;;  %p1483_p11 = scmp.lt.s32.totalorder %s1066_s22, %s1066_s22 }
  0x3b   :  { %v1387_v9 = vld [vmem:[#allocation2 + $0x98] sm:$0xff]   ;;  %v1389_v11 = vld [vmem:[#allocation2 + $0xa0] sm:$0xff]   ;;  %v1391_v13 = vld [vmem:[#allocation2 + $0xa8] sm:$0xff]   ;;  %p1479_p10 = scmp.ne.s32.totalorder %s1066_s22, %s1478_s23  ;;  %p1484_p12 = scmp.lt.s32.totalorder %s1478_s23, %s1478_s23 }
  0x3c   :  { %1307 = vmatmul.mubr.msk.bf16.vlgmr.msra.gmra.mrb[0].mxu0 %vm285_vm1, %v1382_v4  ;;  %1339 = vmatmul.mubr.msk.bf16.vlgmr.msra.gmra.mrb[0].mxu1 %vm285_vm1, %v1383_v5  ;;  %v1392_v14 = vld [vmem:[#allocation2 + $0x30] sm:$0xff]   ;;  %v1394_v16 = vld [vmem:[#allocation2 + $0x38] sm:$0xff]   ;;  %v1396_v18 = vld [vmem:[#allocation2 + $0x40] sm:$0xff]  }
  0x3d   :  { %1310 = vmatprep.mubr.msk.bf16.mxu0 %vm285_vm1, %v1384_v6  ;;  %1342 = vmatprep.mubr.msk.bf16.mxu1 %vm285_vm1, %v1385_v7  ;;  %v1393_v15 = vld [vmem:[#allocation2 + $0xb0] sm:$0xff]   ;;  %v1395_v17 = vld [vmem:[#allocation2 + $0xb8] sm:$0xff]   ;;  %v1397_v19 = vld [vmem:[#allocation2 + $0xc0] sm:$0xff]   ;;  %p1485_p13 = por %p1484_p12, %p1483_p11 }
  0x3e   :  { %v1398_v20 = vld [vmem:[#allocation2 + $0x48] sm:$0xff]   ;;  %v1400_v22 = vld [vmem:[#allocation2 + $0x50] sm:$0xff]   ;;  %v1402_v24 = vld [vmem:[#allocation2 + $0x58] sm:$0xff]  }
  0x3f   :  { %v1399_v21 = vld [vmem:[#allocation2 + $0xc8] sm:$0xff]   ;;  %v1401_v23 = vld [vmem:[#allocation2 + $0xd0] sm:$0xff]   ;;  %v1403_v25 = vld [vmem:[#allocation2 + $0xd8] sm:$0xff]   ;;  %p1486_p0 = pnand %p1485_p13, %p1479_p10 }
  0x40   :  { %v1404_v26 = vld [vmem:[#allocation2 + $0x60] sm:$0xff]   ;;  %v1406_v28 = vld [vmem:[#allocation2 + $0x68] sm:$0xff]   ;;  %v1408_v30 = vld [vmem:[#allocation2 + $0x70] sm:$0xff]  }
  0x41   :  { %v1405_v27 = vld [vmem:[#allocation2 + $0xe0] sm:$0xff]   ;;  %v1407_v29 = vld [vmem:[#allocation2 + $0xe8] sm:$0xff]   ;;  %v1409_v31 = vld [vmem:[#allocation2 + $0xf0] sm:$0xff]  }
  0x42   :  { %v1410_v32 = vld [vmem:[#allocation2 + $0x78] sm:$0xff]   ;;  %v1610_v34 = vld [vmem:[#allocation7] ss:$0 sm:$0xff] }
  0x43   :  { %v1411_v33 = vld [vmem:[#allocation2 + $0xf8] sm:$0xff]  }
  0x44   :  { %1311 = vmatmul.mubr.msk.bf16.gmra.mrb[4].mxu0 %vm285_vm1, %v1386_v8  ;;  %1343 = vmatmul.mubr.msk.bf16.gmra.mrb[4].mxu1 %vm285_vm1, %v1387_v9 }
  0x45   :  { %1314 = vmatprep.mubr.msk.bf16.mxu0 %vm285_vm1, %v1388_v10  ;;  %1346 = vmatprep.mubr.msk.bf16.mxu1 %vm285_vm1, %v1389_v11 }
  0x4c   :  { %1315 = vmatmul.mubr.msk.bf16.gmra.mrb[8].mxu0 %vm285_vm1, %v1390_v12  ;;  %1347 = vmatmul.mubr.msk.bf16.gmra.mrb[8].mxu1 %vm285_vm1, %v1391_v13 }
  0x4d   :  { %1318 = vmatprep.mubr.msk.bf16.mxu0 %vm285_vm1, %v1392_v14  ;;  %1350 = vmatprep.mubr.msk.bf16.mxu1 %vm285_vm1, %v1393_v15 }
  0x54   :  { %1319 = vmatmul.mubr.msk.bf16.gmra.mrb[12].mxu0 %vm285_vm1, %v1394_v16  ;;  %1351 = vmatmul.mubr.msk.bf16.gmra.mrb[12].mxu1 %vm285_vm1, %v1395_v17 }
  0x55   :  { %1322 = vmatprep.mubr.msk.bf16.mxu0 %vm285_vm1, %v1396_v18  ;;  %1354 = vmatprep.mubr.msk.bf16.mxu1 %vm285_vm1, %v1397_v19 }
  0x5c   :  { %1323 = vmatmul.mubr.msk.bf16.gmra.mrb[16].mxu0 %vm285_vm1, %v1398_v20  ;;  %1355 = vmatmul.mubr.msk.bf16.gmra.mrb[16].mxu1 %vm285_vm1, %v1399_v21 }
  0x5d   :  { %1326 = vmatprep.mubr.msk.bf16.mxu0 %vm285_vm1, %v1400_v22  ;;  %1358 = vmatprep.mubr.msk.bf16.mxu1 %vm285_vm1, %v1401_v23 }
  0x64   :  { %1327 = vmatmul.mubr.msk.bf16.gmra.mrb[20].mxu0 %vm285_vm1, %v1402_v24  ;;  %1359 = vmatmul.mubr.msk.bf16.gmra.mrb[20].mxu1 %vm285_vm1, %v1403_v25 }
  0x65   :  { %1330 = vmatprep.mubr.msk.bf16.mxu0 %vm285_vm1, %v1404_v26  ;;  %1362 = vmatprep.mubr.msk.bf16.mxu1 %vm285_vm1, %v1405_v27 }
  0x6c   :  { %1331 = vmatmul.mubr.msk.bf16.gmra.mrb[24].mxu0 %vm285_vm1, %v1406_v28  ;;  %1363 = vmatmul.mubr.msk.bf16.gmra.mrb[24].mxu1 %vm285_vm1, %v1407_v29 }
  0x6d   :  { %1334 = vmatprep.mubr.msk.bf16.mxu0 %vm285_vm1, %v1408_v30  ;;  %1366 = vmatprep.mubr.msk.bf16.mxu1 %vm285_vm1, %v1409_v31 }
  0x74   :  { %1335 = vmatmul.mubr.msk.bf16.gmra.mrb[28].mxu0 %vm285_vm1, %v1410_v32  ;;  %1367 = vmatmul.mubr.msk.bf16.gmra.mrb[28].mxu1 %vm285_vm1, %v1411_v33 }
 0x10f   :  { %v1308_v35 = vpop.f32.mrb[0].mxu0  ;;  %v1340_v37 = vpop.f32.mrb[0].mxu1 }
 0x110   :  { %v429_v36 = vadd.f32 %v1308_v35, %v1610_v34  ;;  %v420_v38 = vpop.f32.mrb[1].mxu0  ;;  %v557_v39 = vadd.f32 %v1340_v37, %v1610_v34  ;;  %v548_v41 = vpop.f32.mrb[1].mxu1 }
 0x111   :  { %v421_v40 = vadd.f32 %v1610_v34, %v420_v38  ;;  %v1309_v42 = vpop.f32.mrb[2].mxu0  ;;  %v549_v44 = vadd.f32 %v1610_v34, %v548_v41  ;;  %v1341_v46 = vpop.f32.mrb[2].mxu1 }
 0x112   :  { %v677_v43 = vmax.f32 %v429_v36, 0.0  ;;  %v432_v45 = vadd.f32 %v1309_v42, %v1610_v34  ;;  %v423_v47 = vpop.f32.mrb[3].mxu0  ;;  %v709_v48 = vmax.f32 %v557_v39, 0.0  ;;  %v560_v50 = vadd.f32 %v1341_v46, %v1610_v34  ;;  %v551_v52 = vpop.f32.mrb[3].mxu1 }
 0x113   :  { %v675_v49 = vmax.f32 %v421_v40, 0.0  ;;  %v424_v51 = vadd.f32 %v1610_v34, %v423_v47  ;;  %v707_v54 = vmax.f32 %v549_v44, 0.0  ;;  %v552_v56 = vadd.f32 %v1610_v34, %v551_v52 }
 0x114   :  { %v1209_v53 = vpack.c.bf16 %v677_v43, %v677_v43  ;;  %v678_v55 = vmax.f32 %v432_v45, 0.0  ;;  %v1241_v57 = vpack.c.bf16 %v709_v48, %v709_v48  ;;  %v710_v59 = vmax.f32 %v560_v50, 0.0 }
 0x115   :  { %v1207_v58 = vpack.c.bf16 %v675_v49, %v675_v49  ;;  %v676_v60 = vmax.f32 %v424_v51, 0.0  ;;  %v1239_v61 = vpack.c.bf16 %v707_v54, %v707_v54  ;;  %v708_v63 = vmax.f32 %v552_v56, 0.0 }
 0x116   :  { %998 = vst.msk [vmem:[#allocation8 + $0x8] sm:$0xf] %vm995_vm2, %v1209_v53  ;;  %v1210_v62 = vpack.c.bf16 %v678_v55, %v678_v55  ;;  %1030 = vst.msk [vmem:[#allocation8 + $0x88] sm:$0xf] %vm995_vm2, %v1241_v57  ;;  %v1242_v0 = vpack.c.bf16 %v710_v59, %v710_v59 }
 0x117   :  { %996 = vst.msk [vmem:[#allocation8] sm:$0xf] %vm995_vm2, %v1207_v58  ;;  %v1208_v1 = vpack.c.bf16 %v676_v60, %v676_v60  ;;  %v1312_v2 = vpop.f32.mrb[4].mxu0  ;;  %1028 = vst.msk [vmem:[#allocation8 + $0x80] sm:$0xf] %vm995_vm2, %v1239_v61  ;;  %v1240_v3 = vpack.c.bf16 %v708_v63, %v708_v63  ;;  %v1344_v5 = vpop.f32.mrb[4].mxu1 }
 0x118   :  { %999 = vst.msk [vmem:[#allocation8 + $0xc] sm:$0xf] %vm995_vm2, %v1210_v62  ;;  %v445_v4 = vadd.f32 %v1312_v2, %v1610_v34  ;;  %v436_v6 = vpop.f32.mrb[5].mxu0  ;;  %1031 = vst.msk [vmem:[#allocation8 + $0x8c] sm:$0xf] %vm995_vm2, %v1242_v0  ;;  %v573_v7 = vadd.f32 %v1344_v5, %v1610_v34  ;;  %v564_v9 = vpop.f32.mrb[5].mxu1 }
 0x119   :  { %997 = vst.msk [vmem:[#allocation8 + $0x4] sm:$0xf] %vm995_vm2, %v1208_v1  ;;  %v437_v8 = vadd.f32 %v1610_v34, %v436_v6  ;;  %v1313_v10 = vpop.f32.mrb[6].mxu0  ;;  %1029 = vst.msk [vmem:[#allocation8 + $0x84] sm:$0xf] %vm995_vm2, %v1240_v3  ;;  %v565_v12 = vadd.f32 %v1610_v34, %v564_v9  ;;  %v1345_v14 = vpop.f32.mrb[6].mxu1 }
 0x11a   :  { %v681_v11 = vmax.f32 %v445_v4, 0.0  ;;  %v448_v13 = vadd.f32 %v1313_v10, %v1610_v34  ;;  %v439_v15 = vpop.f32.mrb[7].mxu0  ;;  %v713_v16 = vmax.f32 %v573_v7, 0.0  ;;  %v576_v18 = vadd.f32 %v1345_v14, %v1610_v34  ;;  %v567_v20 = vpop.f32.mrb[7].mxu1 }
 0x11b   :  { %v679_v17 = vmax.f32 %v437_v8, 0.0  ;;  %v440_v19 = vadd.f32 %v1610_v34, %v439_v15  ;;  %v711_v22 = vmax.f32 %v565_v12, 0.0  ;;  %v568_v24 = vadd.f32 %v1610_v34, %v567_v20 }
 0x11c   :  { %v1213_v21 = vpack.c.bf16 %v681_v11, %v681_v11  ;;  %v682_v23 = vmax.f32 %v448_v13, 0.0  ;;  %v1245_v25 = vpack.c.bf16 %v713_v16, %v713_v16  ;;  %v714_v27 = vmax.f32 %v576_v18, 0.0 }
 0x11d   :  { %v1211_v26 = vpack.c.bf16 %v679_v17, %v679_v17  ;;  %v680_v28 = vmax.f32 %v440_v19, 0.0  ;;  %v1243_v29 = vpack.c.bf16 %v711_v22, %v711_v22  ;;  %v712_v31 = vmax.f32 %v568_v24, 0.0 }
 0x11e   :  { %1002 = vst.msk [vmem:[#allocation8 + $0x18] sm:$0xf] %vm995_vm2, %v1213_v21  ;;  %v1214_v30 = vpack.c.bf16 %v682_v23, %v682_v23  ;;  %1034 = vst.msk [vmem:[#allocation8 + $0x98] sm:$0xf] %vm995_vm2, %v1245_v25  ;;  %v1246_v32 = vpack.c.bf16 %v714_v27, %v714_v27 }
 0x11f   :  { %1000 = vst.msk [vmem:[#allocation8 + $0x10] sm:$0xf] %vm995_vm2, %v1211_v26  ;;  %v1212_v33 = vpack.c.bf16 %v680_v28, %v680_v28  ;;  %v1316_v35 = vpop.f32.mrb[8].mxu0  ;;  %1032 = vst.msk [vmem:[#allocation8 + $0x90] sm:$0xf] %vm995_vm2, %v1243_v29  ;;  %v1244_v36 = vpack.c.bf16 %v712_v31, %v712_v31  ;;  %v1348_v38 = vpop.f32.mrb[8].mxu1 }
 0x120   :  { %1003 = vst.msk [vmem:[#allocation8 + $0x1c] sm:$0xf] %vm995_vm2, %v1214_v30  ;;  %v461_v37 = vadd.f32 %v1316_v35, %v1610_v34  ;;  %v452_v39 = vpop.f32.mrb[9].mxu0  ;;  %1035 = vst.msk [vmem:[#allocation8 + $0x9c] sm:$0xf] %vm995_vm2, %v1246_v32  ;;  %v589_v40 = vadd.f32 %v1348_v38, %v1610_v34  ;;  %v580_v42 = vpop.f32.mrb[9].mxu1 }
 0x121   :  { %1001 = vst.msk [vmem:[#allocation8 + $0x14] sm:$0xf] %vm995_vm2, %v1212_v33  ;;  %v453_v41 = vadd.f32 %v1610_v34, %v452_v39  ;;  %v1317_v43 = vpop.f32.mrb[10].mxu0  ;;  %1033 = vst.msk [vmem:[#allocation8 + $0x94] sm:$0xf] %vm995_vm2, %v1244_v36  ;;  %v581_v45 = vadd.f32 %v1610_v34, %v580_v42  ;;  %v1349_v47 = vpop.f32.mrb[10].mxu1 }
 0x122   :  { %v685_v44 = vmax.f32 %v461_v37, 0.0  ;;  %v464_v46 = vadd.f32 %v1317_v43, %v1610_v34  ;;  %v455_v48 = vpop.f32.mrb[11].mxu0  ;;  %v717_v49 = vmax.f32 %v589_v40, 0.0  ;;  %v592_v51 = vadd.f32 %v1349_v47, %v1610_v34  ;;  %v583_v53 = vpop.f32.mrb[11].mxu1 }
 0x123   :  { %v683_v50 = vmax.f32 %v453_v41, 0.0  ;;  %v456_v52 = vadd.f32 %v1610_v34, %v455_v48  ;;  %v715_v55 = vmax.f32 %v581_v45, 0.0  ;;  %v584_v57 = vadd.f32 %v1610_v34, %v583_v53 }
 0x124   :  { %v1217_v54 = vpack.c.bf16 %v685_v44, %v685_v44  ;;  %v686_v56 = vmax.f32 %v464_v46, 0.0  ;;  %v1249_v58 = vpack.c.bf16 %v717_v49, %v717_v49  ;;  %v718_v60 = vmax.f32 %v592_v51, 0.0 }
 0x125   :  { %v1215_v59 = vpack.c.bf16 %v683_v50, %v683_v50  ;;  %v684_v61 = vmax.f32 %v456_v52, 0.0  ;;  %v1247_v62 = vpack.c.bf16 %v715_v55, %v715_v55  ;;  %v716_v0 = vmax.f32 %v584_v57, 0.0 }
 0x126   :  { %1006 = vst.msk [vmem:[#allocation8 + $0x28] sm:$0xf] %vm995_vm2, %v1217_v54  ;;  %v1218_v63 = vpack.c.bf16 %v686_v56, %v686_v56  ;;  %1038 = vst.msk [vmem:[#allocation8 + $0xa8] sm:$0xf] %vm995_vm2, %v1249_v58  ;;  %v1250_v1 = vpack.c.bf16 %v718_v60, %v718_v60 }
 0x127   :  { %1004 = vst.msk [vmem:[#allocation8 + $0x20] sm:$0xf] %vm995_vm2, %v1215_v59  ;;  %v1216_v2 = vpack.c.bf16 %v684_v61, %v684_v61  ;;  %v1320_v3 = vpop.f32.mrb[12].mxu0  ;;  %1036 = vst.msk [vmem:[#allocation8 + $0xa0] sm:$0xf] %vm995_vm2, %v1247_v62  ;;  %v1248_v4 = vpack.c.bf16 %v716_v0, %v716_v0  ;;  %v1352_v6 = vpop.f32.mrb[12].mxu1 }
 0x128   :  { %1007 = vst.msk [vmem:[#allocation8 + $0x2c] sm:$0xf] %vm995_vm2, %v1218_v63  ;;  %v477_v5 = vadd.f32 %v1320_v3, %v1610_v34  ;;  %v468_v7 = vpop.f32.mrb[13].mxu0  ;;  %1039 = vst.msk [vmem:[#allocation8 + $0xac] sm:$0xf] %vm995_vm2, %v1250_v1  ;;  %v605_v8 = vadd.f32 %v1352_v6, %v1610_v34  ;;  %v596_v10 = vpop.f32.mrb[13].mxu1 }
 0x129   :  { %1005 = vst.msk [vmem:[#allocation8 + $0x24] sm:$0xf] %vm995_vm2, %v1216_v2  ;;  %v469_v9 = vadd.f32 %v1610_v34, %v468_v7  ;;  %v1321_v11 = vpop.f32.mrb[14].mxu0  ;;  %1037 = vst.msk [vmem:[#allocation8 + $0xa4] sm:$0xf] %vm995_vm2, %v1248_v4  ;;  %v597_v13 = vadd.f32 %v1610_v34, %v596_v10  ;;  %v1353_v15 = vpop.f32.mrb[14].mxu1 }
 0x12a   :  { %v689_v12 = vmax.f32 %v477_v5, 0.0  ;;  %v480_v14 = vadd.f32 %v1321_v11, %v1610_v34  ;;  %v471_v16 = vpop.f32.mrb[15].mxu0  ;;  %v721_v17 = vmax.f32 %v605_v8, 0.0  ;;  %v608_v19 = vadd.f32 %v1353_v15, %v1610_v34  ;;  %v599_v21 = vpop.f32.mrb[15].mxu1 }
 0x12b   :  { %v687_v18 = vmax.f32 %v469_v9, 0.0  ;;  %v472_v20 = vadd.f32 %v1610_v34, %v471_v16  ;;  %v719_v23 = vmax.f32 %v597_v13, 0.0  ;;  %v600_v25 = vadd.f32 %v1610_v34, %v599_v21 }
 0x12c   :  { %v1221_v22 = vpack.c.bf16 %v689_v12, %v689_v12  ;;  %v690_v24 = vmax.f32 %v480_v14, 0.0  ;;  %v1253_v26 = vpack.c.bf16 %v721_v17, %v721_v17  ;;  %v722_v28 = vmax.f32 %v608_v19, 0.0 }
 0x12d   :  { %v1219_v27 = vpack.c.bf16 %v687_v18, %v687_v18  ;;  %v688_v29 = vmax.f32 %v472_v20, 0.0  ;;  %v1251_v30 = vpack.c.bf16 %v719_v23, %v719_v23  ;;  %v720_v32 = vmax.f32 %v600_v25, 0.0 }
 0x12e   :  { %1010 = vst.msk [vmem:[#allocation8 + $0x38] sm:$0xf] %vm995_vm2, %v1221_v22  ;;  %v1222_v31 = vpack.c.bf16 %v690_v24, %v690_v24  ;;  %1042 = vst.msk [vmem:[#allocation8 + $0xb8] sm:$0xf] %vm995_vm2, %v1253_v26  ;;  %v1254_v33 = vpack.c.bf16 %v722_v28, %v722_v28 }
 0x12f   :  { %1008 = vst.msk [vmem:[#allocation8 + $0x30] sm:$0xf] %vm995_vm2, %v1219_v27  ;;  %v1220_v35 = vpack.c.bf16 %v688_v29, %v688_v29  ;;  %v1324_v36 = vpop.f32.mrb[16].mxu0  ;;  %1040 = vst.msk [vmem:[#allocation8 + $0xb0] sm:$0xf] %vm995_vm2, %v1251_v30  ;;  %v1252_v37 = vpack.c.bf16 %v720_v32, %v720_v32  ;;  %v1356_v39 = vpop.f32.mrb[16].mxu1 }
 0x130   :  { %1011 = vst.msk [vmem:[#allocation8 + $0x3c] sm:$0xf] %vm995_vm2, %v1222_v31  ;;  %v493_v38 = vadd.f32 %v1324_v36, %v1610_v34  ;;  %v484_v40 = vpop.f32.mrb[17].mxu0  ;;  %1043 = vst.msk [vmem:[#allocation8 + $0xbc] sm:$0xf] %vm995_vm2, %v1254_v33  ;;  %v621_v41 = vadd.f32 %v1356_v39, %v1610_v34  ;;  %v612_v43 = vpop.f32.mrb[17].mxu1 }
 0x131   :  { %1009 = vst.msk [vmem:[#allocation8 + $0x34] sm:$0xf] %vm995_vm2, %v1220_v35  ;;  %v485_v42 = vadd.f32 %v1610_v34, %v484_v40  ;;  %v1325_v44 = vpop.f32.mrb[18].mxu0  ;;  %1041 = vst.msk [vmem:[#allocation8 + $0xb4] sm:$0xf] %vm995_vm2, %v1252_v37  ;;  %v613_v46 = vadd.f32 %v1610_v34, %v612_v43  ;;  %v1357_v48 = vpop.f32.mrb[18].mxu1 }
 0x132   :  { %v693_v45 = vmax.f32 %v493_v38, 0.0  ;;  %v496_v47 = vadd.f32 %v1325_v44, %v1610_v34  ;;  %v487_v49 = vpop.f32.mrb[19].mxu0  ;;  %v725_v50 = vmax.f32 %v621_v41, 0.0  ;;  %v624_v52 = vadd.f32 %v1357_v48, %v1610_v34  ;;  %v615_v54 = vpop.f32.mrb[19].mxu1 }
 0x133   :  { %v691_v51 = vmax.f32 %v485_v42, 0.0  ;;  %v488_v53 = vadd.f32 %v1610_v34, %v487_v49  ;;  %v723_v56 = vmax.f32 %v613_v46, 0.0  ;;  %v616_v58 = vadd.f32 %v1610_v34, %v615_v54 }
 0x134   :  { %v1225_v55 = vpack.c.bf16 %v693_v45, %v693_v45  ;;  %v694_v57 = vmax.f32 %v496_v47, 0.0  ;;  %v1257_v59 = vpack.c.bf16 %v725_v50, %v725_v50  ;;  %v726_v61 = vmax.f32 %v624_v52, 0.0 }
 0x135   :  { %v1223_v60 = vpack.c.bf16 %v691_v51, %v691_v51  ;;  %v692_v62 = vmax.f32 %v488_v53, 0.0  ;;  %v1255_v63 = vpack.c.bf16 %v723_v56, %v723_v56  ;;  %v724_v1 = vmax.f32 %v616_v58, 0.0 }
 0x136   :  { %1014 = vst.msk [vmem:[#allocation8 + $0x48] sm:$0xf] %vm995_vm2, %v1225_v55  ;;  %v1226_v0 = vpack.c.bf16 %v694_v57, %v694_v57  ;;  %1046 = vst.msk [vmem:[#allocation8 + $0xc8] sm:$0xf] %vm995_vm2, %v1257_v59  ;;  %v1258_v2 = vpack.c.bf16 %v726_v61, %v726_v61 }
 0x137   :  { %1012 = vst.msk [vmem:[#allocation8 + $0x40] sm:$0xf] %vm995_vm2, %v1223_v60  ;;  %v1224_v3 = vpack.c.bf16 %v692_v62, %v692_v62  ;;  %v1328_v4 = vpop.f32.mrb[20].mxu0  ;;  %1044 = vst.msk [vmem:[#allocation8 + $0xc0] sm:$0xf] %vm995_vm2, %v1255_v63  ;;  %v1256_v5 = vpack.c.bf16 %v724_v1, %v724_v1  ;;  %v1360_v7 = vpop.f32.mrb[20].mxu1 }
 0x138   :  { %1015 = vst.msk [vmem:[#allocation8 + $0x4c] sm:$0xf] %vm995_vm2, %v1226_v0  ;;  %v509_v6 = vadd.f32 %v1328_v4, %v1610_v34  ;;  %v500_v8 = vpop.f32.mrb[21].mxu0  ;;  %1047 = vst.msk [vmem:[#allocation8 + $0xcc] sm:$0xf] %vm995_vm2, %v1258_v2  ;;  %v637_v9 = vadd.f32 %v1360_v7, %v1610_v34  ;;  %v628_v11 = vpop.f32.mrb[21].mxu1 }
 0x139   :  { %1013 = vst.msk [vmem:[#allocation8 + $0x44] sm:$0xf] %vm995_vm2, %v1224_v3  ;;  %v501_v10 = vadd.f32 %v1610_v34, %v500_v8  ;;  %v1329_v12 = vpop.f32.mrb[22].mxu0  ;;  %1045 = vst.msk [vmem:[#allocation8 + $0xc4] sm:$0xf] %vm995_vm2, %v1256_v5  ;;  %v629_v14 = vadd.f32 %v1610_v34, %v628_v11  ;;  %v1361_v16 = vpop.f32.mrb[22].mxu1 }
 0x13a   :  { %v697_v13 = vmax.f32 %v509_v6, 0.0  ;;  %v512_v15 = vadd.f32 %v1329_v12, %v1610_v34  ;;  %v503_v17 = vpop.f32.mrb[23].mxu0  ;;  %v729_v18 = vmax.f32 %v637_v9, 0.0  ;;  %v640_v20 = vadd.f32 %v1361_v16, %v1610_v34  ;;  %v631_v22 = vpop.f32.mrb[23].mxu1 }
 0x13b   :  { %v695_v19 = vmax.f32 %v501_v10, 0.0  ;;  %v504_v21 = vadd.f32 %v1610_v34, %v503_v17  ;;  %v727_v24 = vmax.f32 %v629_v14, 0.0  ;;  %v632_v26 = vadd.f32 %v1610_v34, %v631_v22 }
 0x13c   :  { %v1229_v23 = vpack.c.bf16 %v697_v13, %v697_v13  ;;  %v698_v25 = vmax.f32 %v512_v15, 0.0  ;;  %v1261_v27 = vpack.c.bf16 %v729_v18, %v729_v18  ;;  %v730_v29 = vmax.f32 %v640_v20, 0.0 }
 0x13d   :  { %v1227_v28 = vpack.c.bf16 %v695_v19, %v695_v19  ;;  %v696_v30 = vmax.f32 %v504_v21, 0.0  ;;  %v1259_v31 = vpack.c.bf16 %v727_v24, %v727_v24  ;;  %v728_v33 = vmax.f32 %v632_v26, 0.0 }
 0x13e   :  { %1018 = vst.msk [vmem:[#allocation8 + $0x58] sm:$0xf] %vm995_vm2, %v1229_v23  ;;  %v1230_v32 = vpack.c.bf16 %v698_v25, %v698_v25  ;;  %1050 = vst.msk [vmem:[#allocation8 + $0xd8] sm:$0xf] %vm995_vm2, %v1261_v27  ;;  %v1262_v35 = vpack.c.bf16 %v730_v29, %v730_v29 }
 0x13f   :  { %1016 = vst.msk [vmem:[#allocation8 + $0x50] sm:$0xf] %vm995_vm2, %v1227_v28  ;;  %v1228_v36 = vpack.c.bf16 %v696_v30, %v696_v30  ;;  %v1332_v37 = vpop.f32.mrb[24].mxu0  ;;  %1048 = vst.msk [vmem:[#allocation8 + $0xd0] sm:$0xf] %vm995_vm2, %v1259_v31  ;;  %v1260_v38 = vpack.c.bf16 %v728_v33, %v728_v33  ;;  %v1364_v40 = vpop.f32.mrb[24].mxu1 }
 0x140   :  { %1019 = vst.msk [vmem:[#allocation8 + $0x5c] sm:$0xf] %vm995_vm2, %v1230_v32  ;;  %v525_v39 = vadd.f32 %v1332_v37, %v1610_v34  ;;  %v516_v41 = vpop.f32.mrb[25].mxu0  ;;  %1051 = vst.msk [vmem:[#allocation8 + $0xdc] sm:$0xf] %vm995_vm2, %v1262_v35  ;;  %v653_v42 = vadd.f32 %v1364_v40, %v1610_v34  ;;  %v644_v44 = vpop.f32.mrb[25].mxu1 }
 0x141   :  { %1017 = vst.msk [vmem:[#allocation8 + $0x54] sm:$0xf] %vm995_vm2, %v1228_v36  ;;  %v517_v43 = vadd.f32 %v1610_v34, %v516_v41  ;;  %v1333_v45 = vpop.f32.mrb[26].mxu0  ;;  %1049 = vst.msk [vmem:[#allocation8 + $0xd4] sm:$0xf] %vm995_vm2, %v1260_v38  ;;  %v645_v47 = vadd.f32 %v1610_v34, %v644_v44  ;;  %v1365_v49 = vpop.f32.mrb[26].mxu1 }
 0x142   :  { %v701_v46 = vmax.f32 %v525_v39, 0.0  ;;  %v528_v48 = vadd.f32 %v1333_v45, %v1610_v34  ;;  %v519_v50 = vpop.f32.mrb[27].mxu0  ;;  %v733_v51 = vmax.f32 %v653_v42, 0.0  ;;  %v656_v53 = vadd.f32 %v1365_v49, %v1610_v34  ;;  %v647_v55 = vpop.f32.mrb[27].mxu1 }
 0x143   :  { %v699_v52 = vmax.f32 %v517_v43, 0.0  ;;  %v520_v54 = vadd.f32 %v1610_v34, %v519_v50  ;;  %v731_v57 = vmax.f32 %v645_v47, 0.0  ;;  %v648_v59 = vadd.f32 %v1610_v34, %v647_v55 }
 0x144   :  { %v1233_v56 = vpack.c.bf16 %v701_v46, %v701_v46  ;;  %v702_v58 = vmax.f32 %v528_v48, 0.0  ;;  %v1265_v60 = vpack.c.bf16 %v733_v51, %v733_v51  ;;  %v734_v62 = vmax.f32 %v656_v53, 0.0 }
 0x145   :  { %v1231_v61 = vpack.c.bf16 %v699_v52, %v699_v52  ;;  %v700_v63 = vmax.f32 %v520_v54, 0.0  ;;  %v1263_v0 = vpack.c.bf16 %v731_v57, %v731_v57  ;;  %v732_v2 = vmax.f32 %v648_v59, 0.0 }
 0x146   :  { %1022 = vst.msk [vmem:[#allocation8 + $0x68] sm:$0xf] %vm995_vm2, %v1233_v56  ;;  %v1234_v1 = vpack.c.bf16 %v702_v58, %v702_v58  ;;  %1054 = vst.msk [vmem:[#allocation8 + $0xe8] sm:$0xf] %vm995_vm2, %v1265_v60  ;;  %v1266_v3 = vpack.c.bf16 %v734_v62, %v734_v62 }
 0x147   :  { %1020 = vst.msk [vmem:[#allocation8 + $0x60] sm:$0xf] %vm995_vm2, %v1231_v61  ;;  %v1232_v4 = vpack.c.bf16 %v700_v63, %v700_v63  ;;  %v1336_v5 = vpop.f32.mrb[28].mxu0  ;;  %1052 = vst.msk [vmem:[#allocation8 + $0xe0] sm:$0xf] %vm995_vm2, %v1263_v0  ;;  %v1264_v6 = vpack.c.bf16 %v732_v2, %v732_v2  ;;  %v1368_v8 = vpop.f32.mrb[28].mxu1 }
 0x148   :  { %1023 = vst.msk [vmem:[#allocation8 + $0x6c] sm:$0xf] %vm995_vm2, %v1234_v1  ;;  %v541_v7 = vadd.f32 %v1336_v5, %v1610_v34  ;;  %v532_v9 = vpop.f32.mrb[29].mxu0  ;;  %1055 = vst.msk [vmem:[#allocation8 + $0xec] sm:$0xf] %vm995_vm2, %v1266_v3  ;;  %v669_v10 = vadd.f32 %v1368_v8, %v1610_v34  ;;  %v660_v12 = vpop.f32.mrb[29].mxu1 }
 0x149   :  { %1021 = vst.msk [vmem:[#allocation8 + $0x64] sm:$0xf] %vm995_vm2, %v1232_v4  ;;  %v533_v11 = vadd.f32 %v1610_v34, %v532_v9  ;;  %v1337_v13 = vpop.f32.mrb[30].mxu0  ;;  %1053 = vst.msk [vmem:[#allocation8 + $0xe4] sm:$0xf] %vm995_vm2, %v1264_v6  ;;  %v661_v15 = vadd.f32 %v1610_v34, %v660_v12  ;;  %v1369_v17 = vpop.f32.mrb[30].mxu1 }
 0x14a   :  { %v705_v14 = vmax.f32 %v541_v7, 0.0  ;;  %v544_v16 = vadd.f32 %v1337_v13, %v1610_v34  ;;  %v535_v18 = vpop.f32.mrb[31].mxu0  ;;  %v737_v19 = vmax.f32 %v669_v10, 0.0  ;;  %v672_v21 = vadd.f32 %v1369_v17, %v1610_v34  ;;  %v663_v23 = vpop.f32.mrb[31].mxu1 }
 0x14b   :  { %v703_v20 = vmax.f32 %v533_v11, 0.0  ;;  %v536_v22 = vadd.f32 %v1610_v34, %v535_v18  ;;  %v735_v25 = vmax.f32 %v661_v15, 0.0  ;;  %v664_v27 = vadd.f32 %v1610_v34, %v663_v23 }
 0x14c   :  { %v1237_v24 = vpack.c.bf16 %v705_v14, %v705_v14  ;;  %v706_v26 = vmax.f32 %v544_v16, 0.0  ;;  %v1269_v28 = vpack.c.bf16 %v737_v19, %v737_v19  ;;  %v738_v30 = vmax.f32 %v672_v21, 0.0 }
 0x14d   :  { %v1235_v29 = vpack.c.bf16 %v703_v20, %v703_v20  ;;  %v704_v31 = vmax.f32 %v536_v22, 0.0  ;;  %v1267_v32 = vpack.c.bf16 %v735_v25, %v735_v25  ;;  %v736_v35 = vmax.f32 %v664_v27, 0.0 }
 0x14e   :  { %1026 = vst.msk [vmem:[#allocation8 + $0x78] sm:$0xf] %vm995_vm2, %v1237_v24  ;;  %v1238_v33 = vpack.c.bf16 %v706_v26, %v706_v26  ;;  %1058 = vst.msk [vmem:[#allocation8 + $0xf8] sm:$0xf] %vm995_vm2, %v1269_v28  ;;  %v1270_v36 = vpack.c.bf16 %v738_v30, %v738_v30 }
 0x14f   :  { %1024 = vst.msk [vmem:[#allocation8 + $0x70] sm:$0xf] %vm995_vm2, %v1235_v29  ;;  %v1236_v37 = vpack.c.bf16 %v704_v31, %v704_v31  ;;  %1056 = vst.msk [vmem:[#allocation8 + $0xf0] sm:$0xf] %vm995_vm2, %v1267_v32  ;;  %v1268_v34 = vpack.c.bf16 %v736_v35, %v736_v35 }
 0x150   :  { %1027 = vst.msk [vmem:[#allocation8 + $0x7c] sm:$0xf] %vm995_vm2, %v1238_v33  ;;  %1059 = vst.msk [vmem:[#allocation8 + $0xfc] sm:$0xf] %vm995_vm2, %v1270_v36 }
 0x151   :  { %1025 = vst.msk [vmem:[#allocation8 + $0x74] sm:$0xf] %vm995_vm2, %v1236_v37  ;;  %1057 = vst.msk [vmem:[#allocation8 + $0xf4] sm:$0xf] %vm995_vm2, %v1268_v34 }
 0x152   :  { %1489 = shalt.err (!%p1486_p0)
}
 0x153   :  { %s1490_s26 = scalar_lea.hbm %s1758_s3, 4096 }
 0x154   :  { %p1491_p1 = scmp.ne.s32.totalorder %s1758_s3, %s1490_s26  ;;  %p1494_p2 = scmp.lt.u32.totalorder %s1490_s26, %s1758_s3 }
 0x156   :  { %p1496_p3 = pnand %p1494_p2, %p1491_p1 }
 0x158   :  { %1499 = shalt.err (!%p1496_p3)
}
 0x159   :  { %1071 = dma.vmem_to_hbm [thread:$0]  %s1066_s22, 4096, %s1758_s3, [#allocation4], %s1508_s1, %s1508_s1, %s1509_s7  }
 0x15a   :  { %1504 = dma.done.wait [#allocation4], 4096  }
 0x15b   :  { %1505 = vsyncadd [#allocation4], 4294963200 }
 0x15c   :  { %1075 = vsyncpa [#allocation3], 1 }
 0x15d   :  { %1076 = vsyncpa [#allocation6], 1 }
 0x15e   :  { %1077 = vsyncpa [#allocation4], 1 }

// kernel: bottleneck_forward.5
= control target key start
LH: loop header
LB: loop body
LE: loop exit
PB: predicated region body
PF: predicated region fallthrough
CT: control target
= control target key end

     0   :  { %11 = vsyncpa [#allocation3], 0  ;;  %s2705_s0 = inlined_call_operand.hbm [shape: bf16[512,4], index: 0, kind: input, shape index: {}]   ;;  %s2706_s1 = inlined_call_operand.hbm [shape: bf16[4,16], index: 1, kind: input, shape index: {}]   ;;  %s2707_s2 = inlined_call_operand.hbm [shape: f32[1,16], index: 2, kind: input, shape index: {}]   ;;  %s2708_s3 = inlined_call_operand.hbm [shape: bf16[512,4], index: 3, kind: input, shape index: {}]   ;;  %s2709_s4 = inlined_call_operand.hbm [shape: bf16[4,16], index: 4, kind: input, shape index: {}]   ;;  %s2710_s5 = inlined_call_operand.hbm [shape: f32[1,16], index: 5, kind: input, shape index: {}]   ;;  %s2711_s6 = inlined_call_operand.hbm [shape: f32[512,16], index: 6, kind: output, shape index: {}]  }
   0x1   :  { %12 = vsyncpa [#allocation6], 0 }
   0x2   :  { %13 = vsyncpa [#allocation9], 0 }
   0x3   :  { %14 = vsyncpa [#allocation12], 0 }
   0x4   :  { %15 = vsyncpa [#allocation4], 0  ;;  %s2315_s21 = smov [#allocation5]   ;;  %s2151_s25 = scalar_lea.hbm %s2706_s1, 32 }
   0x5   :  { %s34_s22 = sshll.u32 %s2315_s21, 4  ;;  %p2152_p0 = scmp.ne.s32.totalorder %s2706_s1, %s2151_s25  ;;  %s35_s22 = int_to_ptr.vmem [resolvable:$true] %s34_s22 }
   0x6   :  { %p2155_p1 = scmp.lt.u32.totalorder %s2151_s25, %s2706_s1 }
   0x8   :  { %p2157_p2 = pnand %p2155_p1, %p2152_p0 }
   0xa   :  { %2160 = shalt.err (!%p2157_p2)
}
   0xb   :  { %s2161_s30 = scalar_lea.vmem %s35_s22, 32  ;;  %p2166_p4 = scmp.lt.s32.totalorder %s35_s22, %s35_s22 }
   0xc   :  { %p2162_p3 = scmp.ne.s32.totalorder %s35_s22, %s2161_s30  ;;  %p2167_p5 = scmp.lt.s32.totalorder %s2161_s30, %s2161_s30 }
   0xe   :  { %p2168_p6 = por %p2167_p5, %p2166_p4 }
  0x10   :  { %p2169_p7 = pnand %p2168_p6, %p2162_p3 }
  0x12   :  { %2172 = shalt.err (!%p2169_p7)
}
  0x13   :  { %37 = dma.hbm_to_vmem [thread:$0]  %s2706_s1, 32, %s35_s22, [#allocation6]  }
  0x14   :  { %s2316_s9 = smov [#allocation8]   ;;  %s2317_s11 = smov [#allocation2]  }
  0x15   :  { %s53_s10 = sshll.u32 %s2316_s9, 4  ;;  %s21_s12 = sshll.u32 %s2317_s11, 4  ;;  %s54_s10 = int_to_ptr.vmem [resolvable:$true] %s53_s10  ;;  %s22_s12 = int_to_ptr.vmem [resolvable:$true] %s21_s12 }
  0x16   :  { %s2173_s15 = scalar_lea.hbm %s2708_s3, 4096 }
  0x17   :  { %p2174_p8 = scmp.ne.s32.totalorder %s2708_s3, %s2173_s15  ;;  %p2177_p9 = scmp.lt.u32.totalorder %s2173_s15, %s2708_s3 }
  0x19   :  { %p2179_p10 = pnand %p2177_p9, %p2174_p8 }
  0x1b   :  { %2182 = shalt.err (!%p2179_p10)
}
  0x1c   :  { %s2183_s1 = scalar_lea.vmem %s54_s10, 4096  ;;  %p2188_p12 = scmp.lt.s32.totalorder %s54_s10, %s54_s10 }
  0x1d   :  { %p2184_p11 = scmp.ne.s32.totalorder %s54_s10, %s2183_s1  ;;  %p2189_p13 = scmp.lt.s32.totalorder %s2183_s1, %s2183_s1 }
  0x1f   :  { %p2190_p0 = por %p2189_p13, %p2188_p12 }
  0x21   :  { %p2191_p1 = pnand %p2190_p0, %p2184_p11 }
  0x23   :  { %2194 = shalt.err (!%p2191_p1)
}
  0x24   :  { %s2318_s20 = smov 64   ;;  %s2319_s21 = smov 4  }
  0x25   :  { %59 = dma.hbm_to_vmem [thread:$0]  %s2708_s3, 4096, %s54_s10, [#allocation9], %s2318_s20, %s2318_s20, %s2319_s21  }
  0x26   :  { %s2195_s26 = scalar_lea.hbm %s2705_s0, 4096 }
  0x27   :  { %p2196_p2 = scmp.ne.s32.totalorder %s2705_s0, %s2195_s26  ;;  %p2199_p3 = scmp.lt.u32.totalorder %s2195_s26, %s2705_s0 }
  0x29   :  { %p2201_p4 = pnand %p2199_p3, %p2196_p2 }
  0x2b   :  { %2204 = shalt.err (!%p2201_p4)
}
  0x2c   :  { %s2205_s7 = scalar_lea.vmem %s22_s12, 4096  ;;  %p2210_p6 = scmp.lt.s32.totalorder %s22_s12, %s22_s12 }
  0x2d   :  { %p2206_p5 = scmp.ne.s32.totalorder %s22_s12, %s2205_s7  ;;  %p2211_p7 = scmp.lt.s32.totalorder %s2205_s7, %s2205_s7 }
  0x2f   :  { %p2212_p8 = por %p2211_p7, %p2210_p6 }
  0x31   :  { %p2213_p9 = pnand %p2212_p8, %p2206_p5 }
  0x33   :  { %2216 = shalt.err (!%p2213_p9)
}
  0x34   :  { %27 = dma.hbm_to_vmem [thread:$0]  %s2705_s0, 4096, %s22_s12, [#allocation3], %s2318_s20, %s2318_s20, %s2319_s21  }
  0x35   :  { %s2320_s9 = smov [#allocation7]   ;;  %s2321_s11 = smov [#allocation10]  }
  0x36   :  { %s44_s10 = sshll.u32 %s2320_s9, 4  ;;  %s66_s13 = sshll.u32 %s2321_s11, 4  ;;  %s45_s10 = int_to_ptr.vmem [resolvable:$true] %s44_s10  ;;  %s67_s13 = int_to_ptr.vmem [resolvable:$true] %s66_s13 }
  0x37   :  { %s2217_s16 = scalar_lea.hbm %s2707_s2, 16 }
  0x38   :  { %p2218_p10 = scmp.ne.s32.totalorder %s2707_s2, %s2217_s16  ;;  %p2221_p11 = scmp.lt.u32.totalorder %s2217_s16, %s2707_s2 }
  0x3a   :  { %p2223_p12 = pnand %p2221_p11, %p2218_p10 }
  0x3c   :  { %2226 = shalt.err (!%p2223_p12)
}
  0x3d   :  { %s2227_s0 = scalar_lea.vmem %s45_s10, 16  ;;  %s2231_s12 = scalar_lea.vmem %s45_s10, 32 }
  0x3e   :  { %p2228_p13 = scmp.ne.s32.totalorder %s45_s10, %s2227_s0  ;;  %p2232_p0 = scmp.lt.s32.totalorder %s45_s10, %s45_s10 }
  0x3f   :  { %p2233_p1 = scmp.lt.s32.totalorder %s2231_s12, %s2227_s0 }
  0x41   :  { %p2234_p2 = por %p2233_p1, %p2232_p0 }
  0x43   :  { %p2235_p3 = pnand %p2234_p2, %p2228_p13 }
  0x45   :  { %2238 = shalt.err (!%p2235_p3)
}
  0x46   :  { %47 = dma.hbm_to_vmem [thread:$0]  %s2707_s2, 16, %s45_s10, [#allocation6]  }
  0x47   :  { %s2239_s24 = scalar_lea.hbm %s2709_s4, 32 }
  0x48   :  { %p2240_p4 = scmp.ne.s32.totalorder %s2709_s4, %s2239_s24  ;;  %p2243_p5 = scmp.lt.u32.totalorder %s2239_s24, %s2709_s4 }
  0x4a   :  { %p2245_p6 = pnand %p2243_p5, %p2240_p4 }
  0x4c   :  { %2248 = shalt.err (!%p2245_p6)
}
  0x4d   :  { %s2249_s29 = scalar_lea.vmem %s67_s13, 32  ;;  %p2254_p8 = scmp.lt.s32.totalorder %s67_s13, %s67_s13 }
  0x4e   :  { %p2250_p7 = scmp.ne.s32.totalorder %s67_s13, %s2249_s29  ;;  %p2255_p9 = scmp.lt.s32.totalorder %s2249_s29, %s2249_s29 }
  0x50   :  { %p2256_p10 = por %p2255_p9, %p2254_p8 }
  0x52   :  { %p2257_p11 = pnand %p2256_p10, %p2250_p7 }
  0x54   :  { %2260 = shalt.err (!%p2257_p11)
}
  0x55   :  { %69 = dma.hbm_to_vmem [thread:$0]  %s2709_s4, 32, %s67_s13, [#allocation9]  }
  0x56   :  { %s2322_s7 = smov [#allocation11]   ;;  %s2261_s10 = scalar_lea.hbm %s2710_s5, 16 }
  0x57   :  { %s76_s3 = sshll.u32 %s2322_s7, 4  ;;  %p2262_p12 = scmp.ne.s32.totalorder %s2710_s5, %s2261_s10  ;;  %s77_s3 = int_to_ptr.vmem [resolvable:$true] %s76_s3 }
  0x58   :  { %p2265_p13 = scmp.lt.u32.totalorder %s2261_s10, %s2710_s5 }
  0x5a   :  { %p2267_p0 = pnand %p2265_p13, %p2262_p12 }
  0x5c   :  { %2270 = shalt.err (!%p2267_p0)
}
  0x5d   :  { %s2271_s17 = scalar_lea.vmem %s77_s3, 16  ;;  %s2275_s4 = scalar_lea.vmem %s77_s3, 32 }
  0x5e   :  { %p2272_p1 = scmp.ne.s32.totalorder %s77_s3, %s2271_s17  ;;  %p2276_p2 = scmp.lt.s32.totalorder %s77_s3, %s77_s3 }
  0x5f   :  { %p2277_p3 = scmp.lt.s32.totalorder %s2275_s4, %s2271_s17 }
  0x61   :  { %p2278_p4 = por %p2277_p3, %p2276_p2 }
  0x63   :  { %p2279_p5 = pnand %p2278_p4, %p2272_p1 }
  0x65   :  { %2282 = shalt.err (!%p2279_p5)
}
  0x66   :  { %79 = dma.hbm_to_vmem [thread:$0]  %s2710_s5, 16, %s77_s3, [#allocation12]  }
  0x67   :  { %2305 = dma.done.wait [#allocation3], 4096  }
  0x68   :  { %2306 = vsyncadd [#allocation3], 4294963200 }
  0x69   :  { %2307 = dma.done.wait [#allocation6], 48  }
  0x6a   :  { %2308 = vsyncadd [#allocation6], 4294967248 }
  0x6b   :  { %2309 = dma.done.wait [#allocation9], 4128  }
  0x6c   :  { %2310 = vsyncadd [#allocation9], 4294963168 }
  0x6d   :  { %2311 = dma.done.wait [#allocation12], 16  }
  0x6e   :  { %2312 = vsyncadd [#allocation12], 4294967280  ;;  %vm428_vm0 = vcmask 1041408   ;;  %vm331_vm1 = vcmask 31744   ;;  %v163_v0 = vld [vmem:[#allocation5] sm:$0x3] }
  0x6f   :  { %v785_v1 = vld [vmem:[#allocation10] sm:$0x3]  ;;  %2074 = vmatprep.subr.msk.bf16.mxu1 %vm428_vm0, %v163_v0  ;;  %v430_v2 = vsel %vm428_vm0, %v163_v0, 0  ;;  %v2089_v6 = vld [vmem:[#allocation2 + $0x8] sm:$0xff]   ;;  %v2091_v8 = vld [vmem:[#allocation2 + $0x10] sm:$0xff]   ;;  %vm1533_vm2 = vcmask 130048  }
  0x70   :  { %2075 = vmatprep.subr.msk.bf16.mxu0 %vm428_vm0, %v785_v1  ;;  %v1043_v3 = vsel %vm428_vm0, %v785_v1, 0  ;;  %v2087_v4 = vld [vmem:[#allocation2] sm:$0xff]   ;;  %1815 = vmatpush3.bf16.msra.mxu1 %v430_v2  ;;  %v2090_v7 = vld [vmem:[#allocation8 + $0x8] sm:$0xff]   ;;  %v2092_v9 = vld [vmem:[#allocation8 + $0x10] sm:$0xff]   ;;  %s2323_s5 = smov [#allocation13]  }
  0x71   :  { %v2088_v5 = vld [vmem:[#allocation8] sm:$0xff]   ;;  %1881 = vmatpush3.bf16.msra.mxu0 %v1043_v3  ;;  %1816 = vmatprep.mubr.msk.bf16.mxu1 %vm331_vm1, %v2087_v4  ;;  %v2093_v10 = vld [vmem:[#allocation2 + $0x18] sm:$0xff]   ;;  %v2098_v15 = vld [vmem:[#allocation8 + $0x28] sm:$0xff]   ;;  %s1603_s19 = sshll.u32 %s2323_s5, 4  ;;  %s1604_s19 = int_to_ptr.vmem [resolvable:$true] %s1603_s19 }
  0x72   :  { %1882 = vmatprep.mubr.msk.bf16.mxu0 %vm331_vm1, %v2088_v5  ;;  %v2094_v11 = vld [vmem:[#allocation8 + $0x18] sm:$0xff]   ;;  %v2096_v13 = vld [vmem:[#allocation8 + $0x20] sm:$0xff]   ;;  %v2099_v16 = vld [vmem:[#allocation2 + $0x30] sm:$0xff]   ;;  %s2283_s1 = scalar_lea.vmem %s1604_s19, 8192  ;;  %p2288_p7 = scmp.lt.s32.totalorder %s1604_s19, %s1604_s19 }
  0x73   :  { %1817 = vmatmul.mubr.msk.bf16.vlgmr.msra.gmra.mrb[0].mxu1 %vm331_vm1, %v2089_v6  ;;  %v2095_v12 = vld [vmem:[#allocation2 + $0x20] sm:$0xff]   ;;  %v2097_v14 = vld [vmem:[#allocation2 + $0x28] sm:$0xff]   ;;  %v2100_v17 = vld [vmem:[#allocation8 + $0x30] sm:$0xff]   ;;  %p2284_p6 = scmp.ne.s32.totalorder %s1604_s19, %s2283_s1  ;;  %p2289_p8 = scmp.lt.s32.totalorder %s2283_s1, %s2283_s1 }
  0x74   :  { %1883 = vmatmul.mubr.msk.bf16.vlgmr.msra.gmra.mrb[0].mxu0 %vm331_vm1, %v2090_v7  ;;  %1820 = vmatprep.mubr.msk.bf16.mxu1 %vm331_vm1, %v2091_v8  ;;  %v2101_v18 = vld [vmem:[#allocation2 + $0x38] sm:$0xff]   ;;  %v2103_v20 = vld [vmem:[#allocation2 + $0x40] sm:$0xff]   ;;  %v2105_v22 = vld [vmem:[#allocation2 + $0x48] sm:$0xff]  }
  0x75   :  { %1886 = vmatprep.mubr.msk.bf16.mxu0 %vm331_vm1, %v2092_v9  ;;  %v2102_v19 = vld [vmem:[#allocation8 + $0x38] sm:$0xff]   ;;  %v2104_v21 = vld [vmem:[#allocation8 + $0x40] sm:$0xff]   ;;  %v2106_v23 = vld [vmem:[#allocation8 + $0x48] sm:$0xff]   ;;  %p2290_p9 = por %p2289_p8, %p2288_p7 }
  0x76   :  { %v2107_v24 = vld [vmem:[#allocation2 + $0x50] sm:$0xff]   ;;  %v2109_v26 = vld [vmem:[#allocation2 + $0x58] sm:$0xff]   ;;  %v2111_v28 = vld [vmem:[#allocation2 + $0x60] sm:$0xff]  }
  0x77   :  { %v2108_v25 = vld [vmem:[#allocation8 + $0x50] sm:$0xff]   ;;  %v2110_v27 = vld [vmem:[#allocation8 + $0x58] sm:$0xff]   ;;  %v2112_v29 = vld [vmem:[#allocation8 + $0x60] sm:$0xff]   ;;  %p2291_p10 = pnand %p2290_p9, %p2284_p6 }
  0x78   :  { %v2113_v30 = vld [vmem:[#allocation2 + $0x68] sm:$0xff]   ;;  %v2115_v32 = vld [vmem:[#allocation2 + $0x70] sm:$0xff]   ;;  %v2117_v34 = vld [vmem:[#allocation2 + $0x78] sm:$0xff]  }
  0x79   :  { %v2114_v31 = vld [vmem:[#allocation8 + $0x68] sm:$0xff]   ;;  %v2116_v33 = vld [vmem:[#allocation8 + $0x70] sm:$0xff]   ;;  %v2118_v35 = vld [vmem:[#allocation8 + $0x78] sm:$0xff]  }
  0x7a   :  { %v2119_v36 = vld [vmem:[#allocation2 + $0x80] sm:$0xff]   ;;  %v2121_v38 = vld [vmem:[#allocation2 + $0x88] sm:$0xff]   ;;  %v2123_v40 = vld [vmem:[#allocation2 + $0x90] sm:$0xff]  }
  0x7b   :  { %1821 = vmatmul.mubr.msk.bf16.gmra.mrb[4].mxu1 %vm331_vm1, %v2093_v10  ;;  %v2120_v37 = vld [vmem:[#allocation8 + $0x80] sm:$0xff]   ;;  %v2122_v39 = vld [vmem:[#allocation8 + $0x88] sm:$0xff]   ;;  %v2124_v41 = vld [vmem:[#allocation8 + $0x90] sm:$0xff]  }
  0x7c   :  { %1887 = vmatmul.mubr.msk.bf16.gmra.mrb[4].mxu0 %vm331_vm1, %v2094_v11  ;;  %1824 = vmatprep.mubr.msk.bf16.mxu1 %vm331_vm1, %v2095_v12  ;;  %v2125_v42 = vld [vmem:[#allocation2 + $0x98] sm:$0xff]   ;;  %v2127_v44 = vld [vmem:[#allocation2 + $0xa0] sm:$0xff]   ;;  %v2129_v46 = vld [vmem:[#allocation2 + $0xa8] sm:$0xff]  }
  0x7d   :  { %1890 = vmatprep.mubr.msk.bf16.mxu0 %vm331_vm1, %v2096_v13  ;;  %v2126_v43 = vld [vmem:[#allocation8 + $0x98] sm:$0xff]   ;;  %v2128_v45 = vld [vmem:[#allocation8 + $0xa0] sm:$0xff]   ;;  %v2130_v47 = vld [vmem:[#allocation8 + $0xa8] sm:$0xff]  }
  0x7e   :  { %v2131_v48 = vld [vmem:[#allocation2 + $0xb0] sm:$0xff]   ;;  %v2133_v50 = vld [vmem:[#allocation2 + $0xb8] sm:$0xff]   ;;  %v2135_v52 = vld [vmem:[#allocation2 + $0xc0] sm:$0xff]  }
  0x7f   :  { %v2132_v49 = vld [vmem:[#allocation8 + $0xb0] sm:$0xff]   ;;  %v2134_v51 = vld [vmem:[#allocation8 + $0xb8] sm:$0xff]   ;;  %v2136_v53 = vld [vmem:[#allocation8 + $0xc0] sm:$0xff]  }
  0x80   :  { %v2137_v54 = vld [vmem:[#allocation2 + $0xc8] sm:$0xff]   ;;  %v2139_v56 = vld [vmem:[#allocation2 + $0xd0] sm:$0xff]   ;;  %v2141_v58 = vld [vmem:[#allocation2 + $0xd8] sm:$0xff]  }
  0x81   :  { %v2138_v55 = vld [vmem:[#allocation8 + $0xc8] sm:$0xff]   ;;  %v2140_v57 = vld [vmem:[#allocation8 + $0xd0] sm:$0xff]   ;;  %v2142_v59 = vld [vmem:[#allocation8 + $0xd8] sm:$0xff]  }
  0x82   :  { %v2143_v60 = vld [vmem:[#allocation2 + $0xe0] sm:$0xff]   ;;  %v2145_v62 = vld [vmem:[#allocation2 + $0xe8] sm:$0xff]   ;;  %v2147_v0 = vld [vmem:[#allocation2 + $0xf0] sm:$0xff]  }
  0x83   :  { %1825 = vmatmul.mubr.msk.bf16.gmra.mrb[8].mxu1 %vm331_vm1, %v2097_v14  ;;  %v2144_v61 = vld [vmem:[#allocation8 + $0xe0] sm:$0xff]   ;;  %v2146_v63 = vld [vmem:[#allocation8 + $0xe8] sm:$0xff]   ;;  %v2148_v1 = vld [vmem:[#allocation8 + $0xf0] sm:$0xff]  }
  0x84   :  { %1891 = vmatmul.mubr.msk.bf16.gmra.mrb[8].mxu0 %vm331_vm1, %v2098_v15  ;;  %1828 = vmatprep.mubr.msk.bf16.mxu1 %vm331_vm1, %v2099_v16  ;;  %v2149_v2 = vld [vmem:[#allocation2 + $0xf8] sm:$0xff]   ;;  %v2497_v4 = vld [vmem:[#allocation7] ss:$0 sm:$0xff]  ;;  %v2500_v9 = vld [vmem:[#allocation11] ss:$0 sm:$0xff] }
  0x85   :  { %1894 = vmatprep.mubr.msk.bf16.mxu0 %vm331_vm1, %v2100_v17  ;;  %v2150_v3 = vld [vmem:[#allocation8 + $0xf8] sm:$0xff]  }
  0x8b   :  { %1829 = vmatmul.mubr.msk.bf16.gmra.mrb[12].mxu1 %vm331_vm1, %v2101_v18 }
  0x8c   :  { %1895 = vmatmul.mubr.msk.bf16.gmra.mrb[12].mxu0 %vm331_vm1, %v2102_v19  ;;  %1832 = vmatprep.mubr.msk.bf16.mxu1 %vm331_vm1, %v2103_v20 }
  0x8d   :  { %1898 = vmatprep.mubr.msk.bf16.mxu0 %vm331_vm1, %v2104_v21 }
  0x93   :  { %1833 = vmatmul.mubr.msk.bf16.gmra.mrb[16].mxu1 %vm331_vm1, %v2105_v22 }
  0x94   :  { %1899 = vmatmul.mubr.msk.bf16.gmra.mrb[16].mxu0 %vm331_vm1, %v2106_v23  ;;  %1836 = vmatprep.mubr.msk.bf16.mxu1 %vm331_vm1, %v2107_v24 }
  0x95   :  { %1902 = vmatprep.mubr.msk.bf16.mxu0 %vm331_vm1, %v2108_v25 }
  0x9b   :  { %1837 = vmatmul.mubr.msk.bf16.gmra.mrb[20].mxu1 %vm331_vm1, %v2109_v26 }
  0x9c   :  { %1903 = vmatmul.mubr.msk.bf16.gmra.mrb[20].mxu0 %vm331_vm1, %v2110_v27  ;;  %1840 = vmatprep.mubr.msk.bf16.mxu1 %vm331_vm1, %v2111_v28 }
  0x9d   :  { %1906 = vmatprep.mubr.msk.bf16.mxu0 %vm331_vm1, %v2112_v29 }
  0xa3   :  { %1841 = vmatmul.mubr.msk.bf16.gmra.mrb[24].mxu1 %vm331_vm1, %v2113_v30 }
  0xa4   :  { %1907 = vmatmul.mubr.msk.bf16.gmra.mrb[24].mxu0 %vm331_vm1, %v2114_v31  ;;  %1844 = vmatprep.mubr.msk.bf16.mxu1 %vm331_vm1, %v2115_v32 }
  0xa5   :  { %1910 = vmatprep.mubr.msk.bf16.mxu0 %vm331_vm1, %v2116_v33 }
  0xab   :  { %1845 = vmatmul.mubr.msk.bf16.gmra.mrb[28].mxu1 %vm331_vm1, %v2117_v34 }
  0xac   :  { %1911 = vmatmul.mubr.msk.bf16.gmra.mrb[28].mxu0 %vm331_vm1, %v2118_v35  ;;  %1848 = vmatprep.mubr.msk.bf16.mxu1 %vm331_vm1, %v2119_v36 }
  0xad   :  { %1914 = vmatprep.mubr.msk.bf16.mxu0 %vm331_vm1, %v2120_v37 }
  0xb3   :  { %1849 = vmatmul.mubr.msk.bf16.gmra.mrb[32].mxu1 %vm331_vm1, %v2121_v38 }
  0xb4   :  { %1915 = vmatmul.mubr.msk.bf16.gmra.mrb[32].mxu0 %vm331_vm1, %v2122_v39  ;;  %1852 = vmatprep.mubr.msk.bf16.mxu1 %vm331_vm1, %v2123_v40 }
  0xb5   :  { %1918 = vmatprep.mubr.msk.bf16.mxu0 %vm331_vm1, %v2124_v41 }
  0xbb   :  { %1853 = vmatmul.mubr.msk.bf16.gmra.mrb[36].mxu1 %vm331_vm1, %v2125_v42 }
  0xbc   :  { %1919 = vmatmul.mubr.msk.bf16.gmra.mrb[36].mxu0 %vm331_vm1, %v2126_v43  ;;  %1856 = vmatprep.mubr.msk.bf16.mxu1 %vm331_vm1, %v2127_v44 }
  0xbd   :  { %1922 = vmatprep.mubr.msk.bf16.mxu0 %vm331_vm1, %v2128_v45 }
  0xc3   :  { %1857 = vmatmul.mubr.msk.bf16.gmra.mrb[40].mxu1 %vm331_vm1, %v2129_v46 }
  0xc4   :  { %1923 = vmatmul.mubr.msk.bf16.gmra.mrb[40].mxu0 %vm331_vm1, %v2130_v47  ;;  %1860 = vmatprep.mubr.msk.bf16.mxu1 %vm331_vm1, %v2131_v48 }
  0xc5   :  { %1926 = vmatprep.mubr.msk.bf16.mxu0 %vm331_vm1, %v2132_v49 }
  0xcb   :  { %1861 = vmatmul.mubr.msk.bf16.gmra.mrb[44].mxu1 %vm331_vm1, %v2133_v50 }
  0xcc   :  { %1927 = vmatmul.mubr.msk.bf16.gmra.mrb[44].mxu0 %vm331_vm1, %v2134_v51  ;;  %1864 = vmatprep.mubr.msk.bf16.mxu1 %vm331_vm1, %v2135_v52 }
  0xcd   :  { %1930 = vmatprep.mubr.msk.bf16.mxu0 %vm331_vm1, %v2136_v53 }
  0xd3   :  { %1865 = vmatmul.mubr.msk.bf16.gmra.mrb[48].mxu1 %vm331_vm1, %v2137_v54 }
  0xd4   :  { %1931 = vmatmul.mubr.msk.bf16.gmra.mrb[48].mxu0 %vm331_vm1, %v2138_v55  ;;  %1868 = vmatprep.mubr.msk.bf16.mxu1 %vm331_vm1, %v2139_v56 }
  0xd5   :  { %1934 = vmatprep.mubr.msk.bf16.mxu0 %vm331_vm1, %v2140_v57 }
  0xdb   :  { %1869 = vmatmul.mubr.msk.bf16.gmra.mrb[52].mxu1 %vm331_vm1, %v2141_v58 }
  0xdc   :  { %1935 = vmatmul.mubr.msk.bf16.gmra.mrb[52].mxu0 %vm331_vm1, %v2142_v59  ;;  %1872 = vmatprep.mubr.msk.bf16.mxu1 %vm331_vm1, %v2143_v60 }
  0xdd   :  { %1938 = vmatprep.mubr.msk.bf16.mxu0 %vm331_vm1, %v2144_v61 }
  0xe3   :  { %1873 = vmatmul.mubr.msk.bf16.gmra.mrb[56].mxu1 %vm331_vm1, %v2145_v62 }
  0xe4   :  { %1939 = vmatmul.mubr.msk.bf16.gmra.mrb[56].mxu0 %vm331_vm1, %v2146_v63  ;;  %1876 = vmatprep.mubr.msk.bf16.mxu1 %vm331_vm1, %v2147_v0 }
  0xe5   :  { %1942 = vmatprep.mubr.msk.bf16.mxu0 %vm331_vm1, %v2148_v1 }
  0xeb   :  { %1877 = vmatmul.mubr.msk.bf16.gmra.mrb[60].mxu1 %vm331_vm1, %v2149_v2 }
  0xec   :  { %1943 = vmatmul.mubr.msk.bf16.gmra.mrb[60].mxu0 %vm331_vm1, %v2150_v3 }
 0x146   :  { %v1818_v5 = vpop.f32.mrb[0].mxu1 }
 0x147   :  { %v475_v6 = vadd.f32 %v1818_v5, %v2497_v4  ;;  %v1884_v7 = vpop.f32.mrb[0].mxu0  ;;  %v466_v8 = vpop.f32.mrb[1].mxu1 }
 0x148   :  { %v467_v10 = vadd.f32 %v2497_v4, %v466_v8  ;;  %v1079_v11 = vpop.f32.mrb[1].mxu0  ;;  %v1819_v12 = vpop.f32.mrb[2].mxu1 }
 0x149   :  { %v1336_v13 = vadd.f32 %v1884_v7, %v475_v6  ;;  %v478_v14 = vadd.f32 %v1819_v12, %v2497_v4  ;;  %v1885_v15 = vpop.f32.mrb[2].mxu0  ;;  %v469_v16 = vpop.f32.mrb[3].mxu1 }
 0x14a   :  { %v1334_v17 = vadd.f32 %v1079_v11, %v467_v10  ;;  %v470_v18 = vadd.f32 %v2497_v4, %v469_v16  ;;  %v1082_v19 = vpop.f32.mrb[3].mxu0 }
 0x14b   :  { %v1407_v20 = vadd.f32 %v2500_v9, %v1336_v13  ;;  %v1337_v21 = vadd.f32 %v1885_v15, %v478_v14 }
 0x14c   :  { %v1405_v22 = vadd.f32 %v2500_v9, %v1334_v17  ;;  %v1335_v23 = vadd.f32 %v1082_v19, %v470_v18 }
 0x14d   :  { %v1471_v24 = vmax.f32 %v1407_v20, 0.0  ;;  %v1408_v25 = vadd.f32 %v2500_v9, %v1337_v21 }
 0x14e   :  { %v1469_v26 = vmax.f32 %v1405_v22, 0.0  ;;  %v1406_v27 = vadd.f32 %v2500_v9, %v1335_v23  ;;  %v1822_v28 = vpop.f32.mrb[4].mxu1 }
 0x14f   :  { %1536 = vst.msk [vmem:[#allocation13 + $0x10] sm:$0xff] %vm1533_vm2, %v1471_v24  ;;  %v1472_v29 = vmax.f32 %v1408_v25, 0.0  ;;  %v491_v30 = vadd.f32 %v1822_v28, %v2497_v4  ;;  %v1888_v31 = vpop.f32.mrb[4].mxu0  ;;  %v482_v32 = vpop.f32.mrb[5].mxu1 }
 0x150   :  { %1534 = vst.msk [vmem:[#allocation13] sm:$0xff] %vm1533_vm2, %v1469_v26  ;;  %v1470_v33 = vmax.f32 %v1406_v27, 0.0  ;;  %v483_v34 = vadd.f32 %v2497_v4, %v482_v32  ;;  %v1095_v35 = vpop.f32.mrb[5].mxu0  ;;  %v1823_v36 = vpop.f32.mrb[6].mxu1 }
 0x151   :  { %1537 = vst.msk [vmem:[#allocation13 + $0x18] sm:$0xff] %vm1533_vm2, %v1472_v29  ;;  %v1340_v37 = vadd.f32 %v1888_v31, %v491_v30  ;;  %v494_v38 = vadd.f32 %v1823_v36, %v2497_v4  ;;  %v1889_v39 = vpop.f32.mrb[6].mxu0  ;;  %v485_v40 = vpop.f32.mrb[7].mxu1 }
 0x152   :  { %1535 = vst.msk [vmem:[#allocation13 + $0x8] sm:$0xff] %vm1533_vm2, %v1470_v33  ;;  %v1338_v41 = vadd.f32 %v1095_v35, %v483_v34  ;;  %v486_v42 = vadd.f32 %v2497_v4, %v485_v40  ;;  %v1098_v43 = vpop.f32.mrb[7].mxu0 }
 0x153   :  { %v1411_v44 = vadd.f32 %v2500_v9, %v1340_v37  ;;  %v1341_v45 = vadd.f32 %v1889_v39, %v494_v38 }
 0x154   :  { %v1409_v46 = vadd.f32 %v2500_v9, %v1338_v41  ;;  %v1339_v47 = vadd.f32 %v1098_v43, %v486_v42 }
 0x155   :  { %v1475_v48 = vmax.f32 %v1411_v44, 0.0  ;;  %v1412_v49 = vadd.f32 %v2500_v9, %v1341_v45 }
 0x156   :  { %v1473_v50 = vmax.f32 %v1409_v46, 0.0  ;;  %v1410_v51 = vadd.f32 %v2500_v9, %v1339_v47  ;;  %v1826_v52 = vpop.f32.mrb[8].mxu1 }
 0x157   :  { %1540 = vst.msk [vmem:[#allocation13 + $0x30] sm:$0xff] %vm1533_vm2, %v1475_v48  ;;  %v1476_v53 = vmax.f32 %v1412_v49, 0.0  ;;  %v507_v54 = vadd.f32 %v1826_v52, %v2497_v4  ;;  %v1892_v55 = vpop.f32.mrb[8].mxu0  ;;  %v498_v56 = vpop.f32.mrb[9].mxu1 }
 0x158   :  { %1538 = vst.msk [vmem:[#allocation13 + $0x20] sm:$0xff] %vm1533_vm2, %v1473_v50  ;;  %v1474_v57 = vmax.f32 %v1410_v51, 0.0  ;;  %v499_v58 = vadd.f32 %v2497_v4, %v498_v56  ;;  %v1111_v59 = vpop.f32.mrb[9].mxu0  ;;  %v1827_v60 = vpop.f32.mrb[10].mxu1 }
 0x159   :  { %1541 = vst.msk [vmem:[#allocation13 + $0x38] sm:$0xff] %vm1533_vm2, %v1476_v53  ;;  %v1344_v61 = vadd.f32 %v1892_v55, %v507_v54  ;;  %v510_v62 = vadd.f32 %v1827_v60, %v2497_v4  ;;  %v1893_v63 = vpop.f32.mrb[10].mxu0  ;;  %v501_v0 = vpop.f32.mrb[11].mxu1 }
 0x15a   :  { %1539 = vst.msk [vmem:[#allocation13 + $0x28] sm:$0xff] %vm1533_vm2, %v1474_v57  ;;  %v1342_v1 = vadd.f32 %v1111_v59, %v499_v58  ;;  %v502_v2 = vadd.f32 %v2497_v4, %v501_v0  ;;  %v1114_v3 = vpop.f32.mrb[11].mxu0 }
 0x15b   :  { %v1415_v5 = vadd.f32 %v2500_v9, %v1344_v61  ;;  %v1345_v6 = vadd.f32 %v1893_v63, %v510_v62 }
 0x15c   :  { %v1413_v7 = vadd.f32 %v2500_v9, %v1342_v1  ;;  %v1343_v8 = vadd.f32 %v1114_v3, %v502_v2 }
 0x15d   :  { %v1479_v10 = vmax.f32 %v1415_v5, 0.0  ;;  %v1416_v11 = vadd.f32 %v2500_v9, %v1345_v6 }
 0x15e   :  { %v1477_v12 = vmax.f32 %v1413_v7, 0.0  ;;  %v1414_v13 = vadd.f32 %v2500_v9, %v1343_v8  ;;  %v1830_v14 = vpop.f32.mrb[12].mxu1 }
 0x15f   :  { %1544 = vst.msk [vmem:[#allocation13 + $0x50] sm:$0xff] %vm1533_vm2, %v1479_v10  ;;  %v1480_v15 = vmax.f32 %v1416_v11, 0.0  ;;  %v523_v16 = vadd.f32 %v1830_v14, %v2497_v4  ;;  %v1896_v17 = vpop.f32.mrb[12].mxu0  ;;  %v514_v18 = vpop.f32.mrb[13].mxu1 }
 0x160   :  { %1542 = vst.msk [vmem:[#allocation13 + $0x40] sm:$0xff] %vm1533_vm2, %v1477_v12  ;;  %v1478_v19 = vmax.f32 %v1414_v13, 0.0  ;;  %v515_v20 = vadd.f32 %v2497_v4, %v514_v18  ;;  %v1127_v21 = vpop.f32.mrb[13].mxu0  ;;  %v1831_v22 = vpop.f32.mrb[14].mxu1 }
 0x161   :  { %1545 = vst.msk [vmem:[#allocation13 + $0x58] sm:$0xff] %vm1533_vm2, %v1480_v15  ;;  %v1348_v23 = vadd.f32 %v1896_v17, %v523_v16  ;;  %v526_v24 = vadd.f32 %v1831_v22, %v2497_v4  ;;  %v1897_v25 = vpop.f32.mrb[14].mxu0  ;;  %v517_v26 = vpop.f32.mrb[15].mxu1 }
 0x162   :  { %1543 = vst.msk [vmem:[#allocation13 + $0x48] sm:$0xff] %vm1533_vm2, %v1478_v19  ;;  %v1346_v27 = vadd.f32 %v1127_v21, %v515_v20  ;;  %v518_v28 = vadd.f32 %v2497_v4, %v517_v26  ;;  %v1130_v29 = vpop.f32.mrb[15].mxu0 }
 0x163   :  { %v1419_v30 = vadd.f32 %v2500_v9, %v1348_v23  ;;  %v1349_v31 = vadd.f32 %v1897_v25, %v526_v24 }
 0x164   :  { %v1417_v32 = vadd.f32 %v2500_v9, %v1346_v27  ;;  %v1347_v33 = vadd.f32 %v1130_v29, %v518_v28 }
 0x165   :  { %v1483_v34 = vmax.f32 %v1419_v30, 0.0  ;;  %v1420_v35 = vadd.f32 %v2500_v9, %v1349_v31 }
 0x166   :  { %v1481_v36 = vmax.f32 %v1417_v32, 0.0  ;;  %v1418_v37 = vadd.f32 %v2500_v9, %v1347_v33  ;;  %v1834_v38 = vpop.f32.mrb[16].mxu1 }
 0x167   :  { %1548 = vst.msk [vmem:[#allocation13 + $0x70] sm:$0xff] %vm1533_vm2, %v1483_v34  ;;  %v1484_v39 = vmax.f32 %v1420_v35, 0.0  ;;  %v539_v40 = vadd.f32 %v1834_v38, %v2497_v4  ;;  %v1900_v41 = vpop.f32.mrb[16].mxu0  ;;  %v530_v42 = vpop.f32.mrb[17].mxu1 }
 0x168   :  { %1546 = vst.msk [vmem:[#allocation13 + $0x60] sm:$0xff] %vm1533_vm2, %v1481_v36  ;;  %v1482_v43 = vmax.f32 %v1418_v37, 0.0  ;;  %v531_v44 = vadd.f32 %v2497_v4, %v530_v42  ;;  %v1143_v45 = vpop.f32.mrb[17].mxu0  ;;  %v1835_v46 = vpop.f32.mrb[18].mxu1 }
 0x169   :  { %1549 = vst.msk [vmem:[#allocation13 + $0x78] sm:$0xff] %vm1533_vm2, %v1484_v39  ;;  %v1352_v47 = vadd.f32 %v1900_v41, %v539_v40  ;;  %v542_v48 = vadd.f32 %v1835_v46, %v2497_v4  ;;  %v1901_v49 = vpop.f32.mrb[18].mxu0  ;;  %v533_v50 = vpop.f32.mrb[19].mxu1 }
 0x16a   :  { %1547 = vst.msk [vmem:[#allocation13 + $0x68] sm:$0xff] %vm1533_vm2, %v1482_v43  ;;  %v1350_v51 = vadd.f32 %v1143_v45, %v531_v44  ;;  %v534_v52 = vadd.f32 %v2497_v4, %v533_v50  ;;  %v1146_v53 = vpop.f32.mrb[19].mxu0 }
 0x16b   :  { %v1423_v54 = vadd.f32 %v2500_v9, %v1352_v47  ;;  %v1353_v55 = vadd.f32 %v1901_v49, %v542_v48 }
 0x16c   :  { %v1421_v56 = vadd.f32 %v2500_v9, %v1350_v51  ;;  %v1351_v57 = vadd.f32 %v1146_v53, %v534_v52 }
 0x16d   :  { %v1487_v58 = vmax.f32 %v1423_v54, 0.0  ;;  %v1424_v59 = vadd.f32 %v2500_v9, %v1353_v55 }
 0x16e   :  { %v1485_v60 = vmax.f32 %v1421_v56, 0.0  ;;  %v1422_v61 = vadd.f32 %v2500_v9, %v1351_v57  ;;  %v1838_v62 = vpop.f32.mrb[20].mxu1 }
 0x16f   :  { %1552 = vst.msk [vmem:[#allocation13 + $0x90] sm:$0xff] %vm1533_vm2, %v1487_v58  ;;  %v1488_v63 = vmax.f32 %v1424_v59, 0.0  ;;  %v555_v0 = vadd.f32 %v1838_v62, %v2497_v4  ;;  %v1904_v1 = vpop.f32.mrb[20].mxu0  ;;  %v546_v2 = vpop.f32.mrb[21].mxu1 }
 0x170   :  { %1550 = vst.msk [vmem:[#allocation13 + $0x80] sm:$0xff] %vm1533_vm2, %v1485_v60  ;;  %v1486_v3 = vmax.f32 %v1422_v61, 0.0  ;;  %v547_v5 = vadd.f32 %v2497_v4, %v546_v2  ;;  %v1159_v6 = vpop.f32.mrb[21].mxu0  ;;  %v1839_v7 = vpop.f32.mrb[22].mxu1 }
 0x171   :  { %1553 = vst.msk [vmem:[#allocation13 + $0x98] sm:$0xff] %vm1533_vm2, %v1488_v63  ;;  %v1356_v8 = vadd.f32 %v1904_v1, %v555_v0  ;;  %v558_v10 = vadd.f32 %v1839_v7, %v2497_v4  ;;  %v1905_v11 = vpop.f32.mrb[22].mxu0  ;;  %v549_v12 = vpop.f32.mrb[23].mxu1 }
 0x172   :  { %1551 = vst.msk [vmem:[#allocation13 + $0x88] sm:$0xff] %vm1533_vm2, %v1486_v3  ;;  %v1354_v13 = vadd.f32 %v1159_v6, %v547_v5  ;;  %v550_v14 = vadd.f32 %v2497_v4, %v549_v12  ;;  %v1162_v15 = vpop.f32.mrb[23].mxu0 }
 0x173   :  { %v1427_v16 = vadd.f32 %v2500_v9, %v1356_v8  ;;  %v1357_v17 = vadd.f32 %v1905_v11, %v558_v10 }
 0x174   :  { %v1425_v18 = vadd.f32 %v2500_v9, %v1354_v13  ;;  %v1355_v19 = vadd.f32 %v1162_v15, %v550_v14 }
 0x175   :  { %v1491_v20 = vmax.f32 %v1427_v16, 0.0  ;;  %v1428_v21 = vadd.f32 %v2500_v9, %v1357_v17 }
 0x176   :  { %v1489_v22 = vmax.f32 %v1425_v18, 0.0  ;;  %v1426_v23 = vadd.f32 %v2500_v9, %v1355_v19  ;;  %v1842_v24 = vpop.f32.mrb[24].mxu1 }
 0x177   :  { %1556 = vst.msk [vmem:[#allocation13 + $0xb0] sm:$0xff] %vm1533_vm2, %v1491_v20  ;;  %v1492_v25 = vmax.f32 %v1428_v21, 0.0  ;;  %v571_v26 = vadd.f32 %v1842_v24, %v2497_v4  ;;  %v1908_v27 = vpop.f32.mrb[24].mxu0  ;;  %v562_v28 = vpop.f32.mrb[25].mxu1 }
 0x178   :  { %1554 = vst.msk [vmem:[#allocation13 + $0xa0] sm:$0xff] %vm1533_vm2, %v1489_v22  ;;  %v1490_v29 = vmax.f32 %v1426_v23, 0.0  ;;  %v563_v30 = vadd.f32 %v2497_v4, %v562_v28  ;;  %v1175_v31 = vpop.f32.mrb[25].mxu0  ;;  %v1843_v32 = vpop.f32.mrb[26].mxu1 }
 0x179   :  { %1557 = vst.msk [vmem:[#allocation13 + $0xb8] sm:$0xff] %vm1533_vm2, %v1492_v25  ;;  %v1360_v33 = vadd.f32 %v1908_v27, %v571_v26  ;;  %v574_v34 = vadd.f32 %v1843_v32, %v2497_v4  ;;  %v1909_v35 = vpop.f32.mrb[26].mxu0  ;;  %v565_v36 = vpop.f32.mrb[27].mxu1 }
 0x17a   :  { %1555 = vst.msk [vmem:[#allocation13 + $0xa8] sm:$0xff] %vm1533_vm2, %v1490_v29  ;;  %v1358_v37 = vadd.f32 %v1175_v31, %v563_v30  ;;  %v566_v38 = vadd.f32 %v2497_v4, %v565_v36  ;;  %v1178_v39 = vpop.f32.mrb[27].mxu0 }
 0x17b   :  { %v1431_v40 = vadd.f32 %v2500_v9, %v1360_v33  ;;  %v1361_v41 = vadd.f32 %v1909_v35, %v574_v34 }
 0x17c   :  { %v1429_v42 = vadd.f32 %v2500_v9, %v1358_v37  ;;  %v1359_v43 = vadd.f32 %v1178_v39, %v566_v38 }
 0x17d   :  { %v1495_v44 = vmax.f32 %v1431_v40, 0.0  ;;  %v1432_v45 = vadd.f32 %v2500_v9, %v1361_v41 }
 0x17e   :  { %v1493_v46 = vmax.f32 %v1429_v42, 0.0  ;;  %v1430_v47 = vadd.f32 %v2500_v9, %v1359_v43  ;;  %v1846_v48 = vpop.f32.mrb[28].mxu1 }
 0x17f   :  { %1560 = vst.msk [vmem:[#allocation13 + $0xd0] sm:$0xff] %vm1533_vm2, %v1495_v44  ;;  %v1496_v49 = vmax.f32 %v1432_v45, 0.0  ;;  %v587_v50 = vadd.f32 %v1846_v48, %v2497_v4  ;;  %v1912_v51 = vpop.f32.mrb[28].mxu0  ;;  %v578_v52 = vpop.f32.mrb[29].mxu1 }
 0x180   :  { %1558 = vst.msk [vmem:[#allocation13 + $0xc0] sm:$0xff] %vm1533_vm2, %v1493_v46  ;;  %v1494_v53 = vmax.f32 %v1430_v47, 0.0  ;;  %v579_v54 = vadd.f32 %v2497_v4, %v578_v52  ;;  %v1191_v55 = vpop.f32.mrb[29].mxu0  ;;  %v1847_v56 = vpop.f32.mrb[30].mxu1 }
 0x181   :  { %1561 = vst.msk [vmem:[#allocation13 + $0xd8] sm:$0xff] %vm1533_vm2, %v1496_v49  ;;  %v1364_v57 = vadd.f32 %v1912_v51, %v587_v50  ;;  %v590_v58 = vadd.f32 %v1847_v56, %v2497_v4  ;;  %v1913_v59 = vpop.f32.mrb[30].mxu0  ;;  %v581_v60 = vpop.f32.mrb[31].mxu1 }
 0x182   :  { %1559 = vst.msk [vmem:[#allocation13 + $0xc8] sm:$0xff] %vm1533_vm2, %v1494_v53  ;;  %v1362_v61 = vadd.f32 %v1191_v55, %v579_v54  ;;  %v582_v62 = vadd.f32 %v2497_v4, %v581_v60  ;;  %v1194_v63 = vpop.f32.mrb[31].mxu0 }
 0x183   :  { %v1435_v0 = vadd.f32 %v2500_v9, %v1364_v57  ;;  %v1365_v1 = vadd.f32 %v1913_v59, %v590_v58 }
 0x184   :  { %v1433_v2 = vadd.f32 %v2500_v9, %v1362_v61  ;;  %v1363_v3 = vadd.f32 %v1194_v63, %v582_v62 }
 0x185   :  { %v1499_v5 = vmax.f32 %v1435_v0, 0.0  ;;  %v1436_v6 = vadd.f32 %v2500_v9, %v1365_v1 }
 0x186   :  { %v1497_v7 = vmax.f32 %v1433_v2, 0.0  ;;  %v1434_v8 = vadd.f32 %v2500_v9, %v1363_v3  ;;  %v1850_v10 = vpop.f32.mrb[32].mxu1 }
 0x187   :  { %1564 = vst.msk [vmem:[#allocation13 + $0xf0] sm:$0xff] %vm1533_vm2, %v1499_v5  ;;  %v1500_v11 = vmax.f32 %v1436_v6, 0.0  ;;  %v603_v12 = vadd.f32 %v1850_v10, %v2497_v4  ;;  %v1916_v13 = vpop.f32.mrb[32].mxu0  ;;  %v594_v14 = vpop.f32.mrb[33].mxu1 }
 0x188   :  { %1562 = vst.msk [vmem:[#allocation13 + $0xe0] sm:$0xff] %vm1533_vm2, %v1497_v7  ;;  %v1498_v15 = vmax.f32 %v1434_v8, 0.0  ;;  %v595_v16 = vadd.f32 %v2497_v4, %v594_v14  ;;  %v1207_v17 = vpop.f32.mrb[33].mxu0  ;;  %v1851_v18 = vpop.f32.mrb[34].mxu1 }
 0x189   :  { %1565 = vst.msk [vmem:[#allocation13 + $0xf8] sm:$0xff] %vm1533_vm2, %v1500_v11  ;;  %v1368_v19 = vadd.f32 %v1916_v13, %v603_v12  ;;  %v606_v20 = vadd.f32 %v1851_v18, %v2497_v4  ;;  %v1917_v21 = vpop.f32.mrb[34].mxu0  ;;  %v597_v22 = vpop.f32.mrb[35].mxu1 }
 0x18a   :  { %1563 = vst.msk [vmem:[#allocation13 + $0xe8] sm:$0xff] %vm1533_vm2, %v1498_v15  ;;  %v1366_v23 = vadd.f32 %v1207_v17, %v595_v16  ;;  %v598_v24 = vadd.f32 %v2497_v4, %v597_v22  ;;  %v1210_v25 = vpop.f32.mrb[35].mxu0 }
 0x18b   :  { %v1439_v26 = vadd.f32 %v2500_v9, %v1368_v19  ;;  %v1369_v27 = vadd.f32 %v1917_v21, %v606_v20 }
 0x18c   :  { %v1437_v28 = vadd.f32 %v2500_v9, %v1366_v23  ;;  %v1367_v29 = vadd.f32 %v1210_v25, %v598_v24 }
 0x18d   :  { %v1503_v30 = vmax.f32 %v1439_v26, 0.0  ;;  %v1440_v31 = vadd.f32 %v2500_v9, %v1369_v27 }
 0x18e   :  { %v1501_v32 = vmax.f32 %v1437_v28, 0.0  ;;  %v1438_v33 = vadd.f32 %v2500_v9, %v1367_v29  ;;  %v1854_v34 = vpop.f32.mrb[36].mxu1 }
 0x18f   :  { %1568 = vst.msk [vmem:[#allocation13 + $0x110] sm:$0xff] %vm1533_vm2, %v1503_v30  ;;  %v1504_v35 = vmax.f32 %v1440_v31, 0.0  ;;  %v619_v36 = vadd.f32 %v1854_v34, %v2497_v4  ;;  %v1920_v37 = vpop.f32.mrb[36].mxu0  ;;  %v610_v38 = vpop.f32.mrb[37].mxu1 }
 0x190   :  { %1566 = vst.msk [vmem:[#allocation13 + $0x100] sm:$0xff] %vm1533_vm2, %v1501_v32  ;;  %v1502_v39 = vmax.f32 %v1438_v33, 0.0  ;;  %v611_v40 = vadd.f32 %v2497_v4, %v610_v38  ;;  %v1223_v41 = vpop.f32.mrb[37].mxu0  ;;  %v1855_v42 = vpop.f32.mrb[38].mxu1 }
 0x191   :  { %1569 = vst.msk [vmem:[#allocation13 + $0x118] sm:$0xff] %vm1533_vm2, %v1504_v35  ;;  %v1372_v43 = vadd.f32 %v1920_v37, %v619_v36  ;;  %v622_v44 = vadd.f32 %v1855_v42, %v2497_v4  ;;  %v1921_v45 = vpop.f32.mrb[38].mxu0  ;;  %v613_v46 = vpop.f32.mrb[39].mxu1 }
 0x192   :  { %1567 = vst.msk [vmem:[#allocation13 + $0x108] sm:$0xff] %vm1533_vm2, %v1502_v39  ;;  %v1370_v47 = vadd.f32 %v1223_v41, %v611_v40  ;;  %v614_v48 = vadd.f32 %v2497_v4, %v613_v46  ;;  %v1226_v49 = vpop.f32.mrb[39].mxu0 }
 0x193   :  { %v1443_v50 = vadd.f32 %v2500_v9, %v1372_v43  ;;  %v1373_v51 = vadd.f32 %v1921_v45, %v622_v44 }
 0x194   :  { %v1441_v52 = vadd.f32 %v2500_v9, %v1370_v47  ;;  %v1371_v53 = vadd.f32 %v1226_v49, %v614_v48 }
 0x195   :  { %v1507_v54 = vmax.f32 %v1443_v50, 0.0  ;;  %v1444_v55 = vadd.f32 %v2500_v9, %v1373_v51 }
 0x196   :  { %v1505_v56 = vmax.f32 %v1441_v52, 0.0  ;;  %v1442_v57 = vadd.f32 %v2500_v9, %v1371_v53  ;;  %v1858_v58 = vpop.f32.mrb[40].mxu1 }
 0x197   :  { %1572 = vst.msk [vmem:[#allocation13 + $0x130] sm:$0xff] %vm1533_vm2, %v1507_v54  ;;  %v1508_v59 = vmax.f32 %v1444_v55, 0.0  ;;  %v635_v60 = vadd.f32 %v1858_v58, %v2497_v4  ;;  %v1924_v61 = vpop.f32.mrb[40].mxu0  ;;  %v626_v62 = vpop.f32.mrb[41].mxu1 }
 0x198   :  { %1570 = vst.msk [vmem:[#allocation13 + $0x120] sm:$0xff] %vm1533_vm2, %v1505_v56  ;;  %v1506_v63 = vmax.f32 %v1442_v57, 0.0  ;;  %v627_v0 = vadd.f32 %v2497_v4, %v626_v62  ;;  %v1239_v1 = vpop.f32.mrb[41].mxu0  ;;  %v1859_v2 = vpop.f32.mrb[42].mxu1 }
 0x199   :  { %1573 = vst.msk [vmem:[#allocation13 + $0x138] sm:$0xff] %vm1533_vm2, %v1508_v59  ;;  %v1376_v3 = vadd.f32 %v1924_v61, %v635_v60  ;;  %v638_v5 = vadd.f32 %v1859_v2, %v2497_v4  ;;  %v1925_v6 = vpop.f32.mrb[42].mxu0  ;;  %v629_v7 = vpop.f32.mrb[43].mxu1 }
 0x19a   :  { %1571 = vst.msk [vmem:[#allocation13 + $0x128] sm:$0xff] %vm1533_vm2, %v1506_v63  ;;  %v1374_v8 = vadd.f32 %v1239_v1, %v627_v0  ;;  %v630_v10 = vadd.f32 %v2497_v4, %v629_v7  ;;  %v1242_v11 = vpop.f32.mrb[43].mxu0 }
 0x19b   :  { %v1447_v12 = vadd.f32 %v2500_v9, %v1376_v3  ;;  %v1377_v13 = vadd.f32 %v1925_v6, %v638_v5 }
 0x19c   :  { %v1445_v14 = vadd.f32 %v2500_v9, %v1374_v8  ;;  %v1375_v15 = vadd.f32 %v1242_v11, %v630_v10 }
 0x19d   :  { %v1511_v16 = vmax.f32 %v1447_v12, 0.0  ;;  %v1448_v17 = vadd.f32 %v2500_v9, %v1377_v13 }
 0x19e   :  { %v1509_v18 = vmax.f32 %v1445_v14, 0.0  ;;  %v1446_v19 = vadd.f32 %v2500_v9, %v1375_v15  ;;  %v1862_v20 = vpop.f32.mrb[44].mxu1 }
 0x19f   :  { %1576 = vst.msk [vmem:[#allocation13 + $0x150] sm:$0xff] %vm1533_vm2, %v1511_v16  ;;  %v1512_v21 = vmax.f32 %v1448_v17, 0.0  ;;  %v651_v22 = vadd.f32 %v1862_v20, %v2497_v4  ;;  %v1928_v23 = vpop.f32.mrb[44].mxu0  ;;  %v642_v24 = vpop.f32.mrb[45].mxu1 }
 0x1a0   :  { %1574 = vst.msk [vmem:[#allocation13 + $0x140] sm:$0xff] %vm1533_vm2, %v1509_v18  ;;  %v1510_v25 = vmax.f32 %v1446_v19, 0.0  ;;  %v643_v26 = vadd.f32 %v2497_v4, %v642_v24  ;;  %v1255_v27 = vpop.f32.mrb[45].mxu0  ;;  %v1863_v28 = vpop.f32.mrb[46].mxu1 }
 0x1a1   :  { %1577 = vst.msk [vmem:[#allocation13 + $0x158] sm:$0xff] %vm1533_vm2, %v1512_v21  ;;  %v1380_v29 = vadd.f32 %v1928_v23, %v651_v22  ;;  %v654_v30 = vadd.f32 %v1863_v28, %v2497_v4  ;;  %v1929_v31 = vpop.f32.mrb[46].mxu0  ;;  %v645_v32 = vpop.f32.mrb[47].mxu1 }
 0x1a2   :  { %1575 = vst.msk [vmem:[#allocation13 + $0x148] sm:$0xff] %vm1533_vm2, %v1510_v25  ;;  %v1378_v33 = vadd.f32 %v1255_v27, %v643_v26  ;;  %v646_v34 = vadd.f32 %v2497_v4, %v645_v32  ;;  %v1258_v35 = vpop.f32.mrb[47].mxu0 }
 0x1a3   :  { %v1451_v36 = vadd.f32 %v2500_v9, %v1380_v29  ;;  %v1381_v37 = vadd.f32 %v1929_v31, %v654_v30 }
 0x1a4   :  { %v1449_v38 = vadd.f32 %v2500_v9, %v1378_v33  ;;  %v1379_v39 = vadd.f32 %v1258_v35, %v646_v34 }
 0x1a5   :  { %v1515_v40 = vmax.f32 %v1451_v36, 0.0  ;;  %v1452_v41 = vadd.f32 %v2500_v9, %v1381_v37 }
 0x1a6   :  { %v1513_v42 = vmax.f32 %v1449_v38, 0.0  ;;  %v1450_v43 = vadd.f32 %v2500_v9, %v1379_v39  ;;  %v1866_v44 = vpop.f32.mrb[48].mxu1 }
 0x1a7   :  { %1580 = vst.msk [vmem:[#allocation13 + $0x170] sm:$0xff] %vm1533_vm2, %v1515_v40  ;;  %v1516_v45 = vmax.f32 %v1452_v41, 0.0  ;;  %v667_v46 = vadd.f32 %v1866_v44, %v2497_v4  ;;  %v1932_v47 = vpop.f32.mrb[48].mxu0  ;;  %v658_v48 = vpop.f32.mrb[49].mxu1 }
 0x1a8   :  { %1578 = vst.msk [vmem:[#allocation13 + $0x160] sm:$0xff] %vm1533_vm2, %v1513_v42  ;;  %v1514_v49 = vmax.f32 %v1450_v43, 0.0  ;;  %v659_v50 = vadd.f32 %v2497_v4, %v658_v48  ;;  %v1271_v51 = vpop.f32.mrb[49].mxu0  ;;  %v1867_v52 = vpop.f32.mrb[50].mxu1 }
 0x1a9   :  { %1581 = vst.msk [vmem:[#allocation13 + $0x178] sm:$0xff] %vm1533_vm2, %v1516_v45  ;;  %v1384_v53 = vadd.f32 %v1932_v47, %v667_v46  ;;  %v670_v54 = vadd.f32 %v1867_v52, %v2497_v4  ;;  %v1933_v55 = vpop.f32.mrb[50].mxu0  ;;  %v661_v56 = vpop.f32.mrb[51].mxu1 }
 0x1aa   :  { %1579 = vst.msk [vmem:[#allocation13 + $0x168] sm:$0xff] %vm1533_vm2, %v1514_v49  ;;  %v1382_v57 = vadd.f32 %v1271_v51, %v659_v50  ;;  %v662_v58 = vadd.f32 %v2497_v4, %v661_v56  ;;  %v1274_v59 = vpop.f32.mrb[51].mxu0 }
 0x1ab   :  { %v1455_v60 = vadd.f32 %v2500_v9, %v1384_v53  ;;  %v1385_v61 = vadd.f32 %v1933_v55, %v670_v54 }
 0x1ac   :  { %v1453_v62 = vadd.f32 %v2500_v9, %v1382_v57  ;;  %v1383_v63 = vadd.f32 %v1274_v59, %v662_v58 }
 0x1ad   :  { %v1519_v0 = vmax.f32 %v1455_v60, 0.0  ;;  %v1456_v1 = vadd.f32 %v2500_v9, %v1385_v61 }
 0x1ae   :  { %v1517_v2 = vmax.f32 %v1453_v62, 0.0  ;;  %v1454_v3 = vadd.f32 %v2500_v9, %v1383_v63  ;;  %v1870_v5 = vpop.f32.mrb[52].mxu1 }
 0x1af   :  { %1584 = vst.msk [vmem:[#allocation13 + $0x190] sm:$0xff] %vm1533_vm2, %v1519_v0  ;;  %v1520_v6 = vmax.f32 %v1456_v1, 0.0  ;;  %v683_v7 = vadd.f32 %v1870_v5, %v2497_v4  ;;  %v1936_v8 = vpop.f32.mrb[52].mxu0  ;;  %v674_v10 = vpop.f32.mrb[53].mxu1 }
 0x1b0   :  { %1582 = vst.msk [vmem:[#allocation13 + $0x180] sm:$0xff] %vm1533_vm2, %v1517_v2  ;;  %v1518_v11 = vmax.f32 %v1454_v3, 0.0  ;;  %v675_v12 = vadd.f32 %v2497_v4, %v674_v10  ;;  %v1287_v13 = vpop.f32.mrb[53].mxu0  ;;  %v1871_v14 = vpop.f32.mrb[54].mxu1 }
 0x1b1   :  { %1585 = vst.msk [vmem:[#allocation13 + $0x198] sm:$0xff] %vm1533_vm2, %v1520_v6  ;;  %v1388_v15 = vadd.f32 %v1936_v8, %v683_v7  ;;  %v686_v16 = vadd.f32 %v1871_v14, %v2497_v4  ;;  %v1937_v17 = vpop.f32.mrb[54].mxu0  ;;  %v677_v18 = vpop.f32.mrb[55].mxu1 }
 0x1b2   :  { %1583 = vst.msk [vmem:[#allocation13 + $0x188] sm:$0xff] %vm1533_vm2, %v1518_v11  ;;  %v1386_v19 = vadd.f32 %v1287_v13, %v675_v12  ;;  %v678_v20 = vadd.f32 %v2497_v4, %v677_v18  ;;  %v1290_v21 = vpop.f32.mrb[55].mxu0 }
 0x1b3   :  { %v1459_v22 = vadd.f32 %v2500_v9, %v1388_v15  ;;  %v1389_v23 = vadd.f32 %v1937_v17, %v686_v16 }
 0x1b4   :  { %v1457_v24 = vadd.f32 %v2500_v9, %v1386_v19  ;;  %v1387_v25 = vadd.f32 %v1290_v21, %v678_v20 }
 0x1b5   :  { %v1523_v26 = vmax.f32 %v1459_v22, 0.0  ;;  %v1460_v27 = vadd.f32 %v2500_v9, %v1389_v23 }
 0x1b6   :  { %v1521_v28 = vmax.f32 %v1457_v24, 0.0  ;;  %v1458_v29 = vadd.f32 %v2500_v9, %v1387_v25  ;;  %v1874_v30 = vpop.f32.mrb[56].mxu1 }
 0x1b7   :  { %1588 = vst.msk [vmem:[#allocation13 + $0x1b0] sm:$0xff] %vm1533_vm2, %v1523_v26  ;;  %v1524_v31 = vmax.f32 %v1460_v27, 0.0  ;;  %v699_v32 = vadd.f32 %v1874_v30, %v2497_v4  ;;  %v1940_v33 = vpop.f32.mrb[56].mxu0  ;;  %v690_v34 = vpop.f32.mrb[57].mxu1 }
 0x1b8   :  { %1586 = vst.msk [vmem:[#allocation13 + $0x1a0] sm:$0xff] %vm1533_vm2, %v1521_v28  ;;  %v1522_v35 = vmax.f32 %v1458_v29, 0.0  ;;  %v691_v36 = vadd.f32 %v2497_v4, %v690_v34  ;;  %v1303_v37 = vpop.f32.mrb[57].mxu0  ;;  %v1875_v38 = vpop.f32.mrb[58].mxu1 }
 0x1b9   :  { %1589 = vst.msk [vmem:[#allocation13 + $0x1b8] sm:$0xff] %vm1533_vm2, %v1524_v31  ;;  %v1392_v39 = vadd.f32 %v1940_v33, %v699_v32  ;;  %v702_v40 = vadd.f32 %v1875_v38, %v2497_v4  ;;  %v1941_v41 = vpop.f32.mrb[58].mxu0  ;;  %v693_v42 = vpop.f32.mrb[59].mxu1 }
 0x1ba   :  { %1587 = vst.msk [vmem:[#allocation13 + $0x1a8] sm:$0xff] %vm1533_vm2, %v1522_v35  ;;  %v1390_v43 = vadd.f32 %v1303_v37, %v691_v36  ;;  %v694_v44 = vadd.f32 %v2497_v4, %v693_v42  ;;  %v1306_v45 = vpop.f32.mrb[59].mxu0 }
 0x1bb   :  { %v1463_v46 = vadd.f32 %v2500_v9, %v1392_v39  ;;  %v1393_v47 = vadd.f32 %v1941_v41, %v702_v40 }
 0x1bc   :  { %v1461_v48 = vadd.f32 %v2500_v9, %v1390_v43  ;;  %v1391_v49 = vadd.f32 %v1306_v45, %v694_v44 }
 0x1bd   :  { %v1527_v50 = vmax.f32 %v1463_v46, 0.0  ;;  %v1464_v51 = vadd.f32 %v2500_v9, %v1393_v47 }
 0x1be   :  { %v1525_v52 = vmax.f32 %v1461_v48, 0.0  ;;  %v1462_v53 = vadd.f32 %v2500_v9, %v1391_v49  ;;  %v1878_v54 = vpop.f32.mrb[60].mxu1 }
 0x1bf   :  { %1592 = vst.msk [vmem:[#allocation13 + $0x1d0] sm:$0xff] %vm1533_vm2, %v1527_v50  ;;  %v1528_v55 = vmax.f32 %v1464_v51, 0.0  ;;  %v715_v56 = vadd.f32 %v1878_v54, %v2497_v4  ;;  %v1944_v57 = vpop.f32.mrb[60].mxu0  ;;  %v706_v58 = vpop.f32.mrb[61].mxu1 }
 0x1c0   :  { %1590 = vst.msk [vmem:[#allocation13 + $0x1c0] sm:$0xff] %vm1533_vm2, %v1525_v52  ;;  %v1526_v59 = vmax.f32 %v1462_v53, 0.0  ;;  %v707_v60 = vadd.f32 %v2497_v4, %v706_v58  ;;  %v1319_v61 = vpop.f32.mrb[61].mxu0  ;;  %v1879_v62 = vpop.f32.mrb[62].mxu1 }
 0x1c1   :  { %1593 = vst.msk [vmem:[#allocation13 + $0x1d8] sm:$0xff] %vm1533_vm2, %v1528_v55  ;;  %v1396_v63 = vadd.f32 %v1944_v57, %v715_v56  ;;  %v718_v0 = vadd.f32 %v1879_v62, %v2497_v4  ;;  %v1945_v1 = vpop.f32.mrb[62].mxu0  ;;  %v709_v2 = vpop.f32.mrb[63].mxu1 }
 0x1c2   :  { %1591 = vst.msk [vmem:[#allocation13 + $0x1c8] sm:$0xff] %vm1533_vm2, %v1526_v59  ;;  %v1394_v3 = vadd.f32 %v1319_v61, %v707_v60  ;;  %v710_v5 = vadd.f32 %v2497_v4, %v709_v2  ;;  %v1322_v6 = vpop.f32.mrb[63].mxu0 }
 0x1c3   :  { %v1467_v7 = vadd.f32 %v2500_v9, %v1396_v63  ;;  %v1397_v8 = vadd.f32 %v1945_v1, %v718_v0 }
 0x1c4   :  { %v1465_v10 = vadd.f32 %v2500_v9, %v1394_v3  ;;  %v1395_v11 = vadd.f32 %v1322_v6, %v710_v5 }
 0x1c5   :  { %v1531_v12 = vmax.f32 %v1467_v7, 0.0  ;;  %v1468_v13 = vadd.f32 %v2500_v9, %v1397_v8 }
 0x1c6   :  { %v1529_v14 = vmax.f32 %v1465_v10, 0.0  ;;  %v1466_v15 = vadd.f32 %v2500_v9, %v1395_v11 }
 0x1c7   :  { %1596 = vst.msk [vmem:[#allocation13 + $0x1f0] sm:$0xff] %vm1533_vm2, %v1531_v12  ;;  %v1532_v16 = vmax.f32 %v1468_v13, 0.0 }
 0x1c8   :  { %1594 = vst.msk [vmem:[#allocation13 + $0x1e0] sm:$0xff] %vm1533_vm2, %v1529_v14  ;;  %v1530_v4 = vmax.f32 %v1466_v15, 0.0 }
 0x1c9   :  { %1597 = vst.msk [vmem:[#allocation13 + $0x1f8] sm:$0xff] %vm1533_vm2, %v1532_v16 }
 0x1ca   :  { %1595 = vst.msk [vmem:[#allocation13 + $0x1e8] sm:$0xff] %vm1533_vm2, %v1530_v4 }
 0x1cb   :  { %2294 = shalt.err (!%p2291_p10)
}
 0x1cc   :  { %s2295_s20 = scalar_lea.hbm %s2711_s6, 8192 }
 0x1cd   :  { %p2296_p11 = scmp.ne.s32.totalorder %s2711_s6, %s2295_s20  ;;  %p2299_p12 = scmp.lt.u32.totalorder %s2295_s20, %s2711_s6 }
 0x1cf   :  { %p2301_p13 = pnand %p2299_p12, %p2296_p11 }
 0x1d1   :  { %2304 = shalt.err (!%p2301_p13)
}
 0x1d2   :  { %s2324_s25 = smov 128   ;;  %s2325_s26 = smov 8  }
 0x1d3   :  { %1609 = dma.vmem_to_hbm [thread:$0]  %s1604_s19, 8192, %s2711_s6, [#allocation4], %s2324_s25, %s2324_s25, %s2325_s26  }
 0x1d4   :  { %2313 = dma.done.wait [#allocation4], 8192  }
 0x1d5   :  { %2314 = vsyncadd [#allocation4], 4294959104 }
 0x1d6   :  { %1613 = vsyncpa [#allocation3], 1 }
 0x1d7   :  { %1614 = vsyncpa [#allocation6], 1 }
 0x1d8   :  { %1615 = vsyncpa [#allocation9], 1 }
 0x1d9   :  { %1616 = vsyncpa [#allocation12], 1 }
 0x1da   :  { %1617 = vsyncpa [#allocation4], 1 }

// kernel: bottleneck_forward.4
= control target key start
LH: loop header
LB: loop body
LE: loop exit
PB: predicated region body
PF: predicated region fallthrough
CT: control target
= control target key end

     0   :  { %8 = vsyncpa [#allocation3], 0  ;;  %s8866_s0 = inlined_call_operand.hbm [shape: bf16[2,18,18,4], index: 0, kind: input, shape index: {}]   ;;  %s8867_s1 = inlined_call_operand.hbm [shape: bf16[9,4,4], index: 1, kind: input, shape index: {}]   ;;  %s8868_s2 = inlined_call_operand.hbm [shape: f32[1,4], index: 2, kind: input, shape index: {}]   ;;  %s8869_s3 = inlined_call_operand.hbm [shape: bf16[2,16,16,4], index: 3, kind: output, shape index: {}]  }
   0x1   :  { %10 = vsyncpa [#allocation3 + $0x1], 0 }
   0x2   :  { %11 = vsyncpa [#allocation6], 0 }
   0x3   :  { %12 = vsyncpa [#allocation4], 0 }
   0x4   :  { %14 = vsyncpa [#allocation4 + $0x1], 0  ;;  %s6817_s12 = smov 0   ;;  %s6819_s13 = smov 0  }
   0x5   :  { %s6821_s14 = smov 0   ;;  %s6823_s15 = smov 0  }
   0x6 LB: > { %s6838_s16 = sadd.s32 4294967295, %s6785_s15   ;;  %s5114_s17 = sadd.s32 4294967294, %s6785_s15   ;;  %s6785_s15 = sphi %s6823_s15, %s8975_s15   ;;  %s6781_s14 = sphi %s6821_s14, %s8974_s14   ;;  %s6777_s13 = sphi %s6819_s13, %s8973_s13   ;;  %s6773_s12 = sphi %s6817_s12, %s8972_s12  }
   0x7   : > { %p40_p0 = scmp.ne.s32.totalorder %s6777_s13, %s6773_s12  ;;  %p8870_p1 = scmp.eq.s32.totalorder %s6838_s16, 0 }
   0x8   : > { %p112_p3 = scmp.eq.s32.totalorder %s5114_s17, 1  ;;  %p5115_p5 = scmp.ge.s32.totalorder %s6785_s15, 1 }
   0x9   : > { %p6847_p4 = por %p8870_p1, %p40_p0  ;;  %p119_p7 = scmp.lt.s32.totalorder %s6785_s15, 3 }
   0xa   : > { %p6852_p6 = por %p112_p3, %p40_p0  ;;  %s6787_s21 = smov [#allocation5]  }
   0xb   : > { %s8892_s18 = scalar_select %p6847_p4, 1, 0 }
   0xc   : > { %s8893_s19 = scalar_select %p6852_p6, 1, 0 }
   0xd   : > { %p6857_p8 = pnand %p5115_p5, %p119_p7  ;;  %s131_s22 = sshll.u32 %s6787_s21, 4  ;;  %s6861_s22 = int_to_ptr.vmem [resolvable:$true] %s131_s22 }
   0xe   : > { %s6788_s24 = smov [#allocation7]   ;;  %s6629_s28 = scalar_lea.hbm %s8867_s1, 288 }
   0xf   : > { %p6465_p9 = pneg %p6857_p8  ;;  %s145_s25 = sshll.u32 %s6788_s24, 4  ;;  %s6872_s25 = int_to_ptr.vmem [resolvable:$true] %s145_s25 }
  0x10   : > { %p6630_p12 = scmp.ne.s32.totalorder %s8867_s1, %s6629_s28  ;;  %p6636_p5 = scmp.lt.u32.totalorder %s6629_s28, %s8867_s1 }
  0x11   : > { %p6868_p11 = pnand %p6465_p9, %p8870_p1 }
  0x13   : > { %p6631_p13 = pneg %p6868_p11 }
  0x15   : > { %p6632_p0 = pnand %p6631_p13, %p6630_p12 }
  0x17   : > { %p6633_p3 = pneg %p6632_p0 }
  0x19   : > { %p6638_p7 = pnand %p6636_p5, %p6633_p3 }
  0x1b   : > { %6641 = shalt.err (!%p6638_p7)
}
  0x1c   : > { %s6642_s6 = scalar_lea.vmem %s6861_s22, 288  ;;  %p6650_p2 = scmp.lt.s32.totalorder %s6861_s22, %s6861_s22 }
  0x1d   : > { %p6643_p9 = scmp.ne.s32.totalorder %s6861_s22, %s6642_s6  ;;  %p6651_p12 = scmp.lt.s32.totalorder %s6642_s6, %s6642_s6 }
  0x1f   : > { %p6645_p10 = pnand %p6643_p9, %p6631_p13  ;;  %p6652_p0 = por %p6651_p12, %p6650_p2 }
  0x21   : > { %p6646_p1 = pneg %p6645_p10 }
  0x23   : > { %p6653_p6 = pnand %p6652_p0, %p6646_p1 }
  0x25   : > { %6656 = shalt.err (!%p6653_p6)
}
  0x26   : > { %s6789_s7 = smov 32   ;;  %s6790_s8 = smov 2  }
  0x27   : > { %6468 = dma.hbm_to_vmem [thread:$0]  (!%p6868_p11), %s8867_s1, 288, %s6861_s22, [#allocation6], %s6789_s7, %s6789_s7, %s6790_s8  }
  0x28   : > { %s6657_s21 = scalar_lea.hbm %s8868_s2, 16 }
  0x29   : > { %p6658_p2 = scmp.ne.s32.totalorder %s8868_s2, %s6657_s21  ;;  %p6664_p10 = scmp.lt.u32.totalorder %s6657_s21, %s8868_s2 }
  0x2b   : > { %p6660_p1 = pnand %p6658_p2, %p6631_p13 }
  0x2d   : > { %p6661_p6 = pneg %p6660_p1 }
  0x2f   : > { %p6666_p3 = pnand %p6664_p10, %p6661_p6 }
  0x31   : > { %6669 = shalt.err (!%p6666_p3)
}
  0x32   : > { %s6670_s22 = scalar_lea.vmem %s6872_s25, 16  ;;  %s6677_s29 = scalar_lea.vmem %s6872_s25, 32 }
  0x33   : > { %p6671_p5 = scmp.ne.s32.totalorder %s6872_s25, %s6670_s22  ;;  %p6678_p12 = scmp.lt.s32.totalorder %s6872_s25, %s6872_s25 }
  0x34   : > { %p6679_p0 = scmp.lt.s32.totalorder %s6677_s29, %s6670_s22 }
  0x35   : > { %p6673_p7 = pnand %p6671_p5, %p6631_p13 }
  0x36   : > { %p6680_p2 = por %p6679_p0, %p6678_p12 }
  0x37   : > { %p6674_p9 = pneg %p6673_p7 }
  0x39   : > { %p6681_p1 = pnand %p6680_p2, %p6674_p9 }
  0x3b   : > { %6684 = shalt.err (!%p6681_p1)
}
  0x3c   : > { %6471 = dma.hbm_to_vmem [thread:$0]  (!%p6868_p11), %s8868_s2, 16, %s6872_s25, [#allocation6]  }
  0x3d   : > { %s6928_s5 = sadd.s32 1, %s6785_s15   ;;  %s27_s23 = sadd.s32 1, %s6781_s14 }
  0x3e   : > { %s24_s6 = ssub.s32 %s6785_s15, %s6928_s5  ;;  %p34_p13 = scmp.ne.s32.totalorder %s6781_s14, %s6777_s13 }
  0x3f   : > { %p25_p6 = scmp.eq.s32.totalorder %s24_s6, 0  ;;  %p35_p10 = scmp.eq.s32.totalorder %s6785_s15, 0 }
  0x40   : > { %p8896_p3 = scmp.eq.s32.totalorder %s6838_s16, 1  ;;  %p6482_p7 = scmp.lt.s32.totalorder %s6785_s15, 2 }
  0x41   : > { %s6944_s8 = scalar_select %p25_p6, %s6781_s14, %s27_s23  }
  0x42   : > { %p6938_p5 = por %p8896_p3, %p34_p13  ;;  %p36_p9 = por %p35_p10, %p34_p13 }
  0x43   : > { %s156_s9 = sand.u32 1, %s6781_s14   ;;  %s6451_s25 = smul.u32 3456, %s6785_s15 }
  0x44   : > { %s8897_s7 = scalar_select %p6938_p5, 1, 0 }
  0x45   : > { %s6450_s10 = smul.u32 216, %s156_s9  ;;  %p6948_p11 = pnand %p6482_p7, %p36_p9 }
  0x46   : > { %s6955_s24 = scalar_lea.hbm %s8866_s0, %s6451_s25  ;;  %s6959_s28 = scalar_lea.sflag [#allocation3], %s156_s9 }
  0x47   : > { %s160_s26 = scalar_lea.vmem [#allocation2], %s6450_s10  ;;  %s6685_s22 = scalar_lea.hbm %s6955_s24, 3456 }
  0x48   : > { %s167_s27 = sshll.u32 %s160_s26, 4  ;;  %p6686_p12 = scmp.ne.s32.totalorder %s6955_s24, %s6685_s22  ;;  %s6957_s27 = int_to_ptr.vmem [resolvable:$true] %s167_s27 }
  0x49   : > { %p6687_p0 = pneg %p6948_p11  ;;  %s6690_s4 = scalar_lea.hbm %s8866_s0, 6912 }
  0x4a   : > { %p6691_p13 = scmp.lt.u32.totalorder %s6955_s24, %s8866_s0  ;;  %p6692_p6 = scmp.lt.u32.totalorder %s6690_s4, %s6685_s22 }
  0x4b   : > { %p6688_p2 = pnand %p6687_p0, %p6686_p12  ;;  %p6694_p3 = scmp.lt.u32.totalorder %s6685_s22, %s6955_s24 }
  0x4c   : > { %p6693_p10 = por %p6692_p6, %p6691_p13 }
  0x4d   : > { %p6689_p1 = pneg %p6688_p2 }
  0x4e   : > { %p6695_p7 = por %p6694_p3, %p6693_p10 }
  0x50   : > { %p6696_p9 = pnand %p6695_p7, %p6689_p1 }
  0x52   : > { %6699 = shalt.err (!%p6696_p9)
}
  0x53   : > { %s6700_s9 = scalar_lea.vmem %s6957_s27, 3456  ;;  %s6791_s10 = smov [#allocation2]  }
  0x54   : > { %p6701_p12 = scmp.ne.s32.totalorder %s6957_s27, %s6700_s9  ;;  %s6705_s25 = sshll.u32 %s6791_s10, 4  ;;  %s6706_s25 = int_to_ptr.vmem [resolvable:$false] %s6705_s25 }
  0x55   : > { %s6707_s17 = scalar_lea.vmem %s6706_s25, 6912  ;;  %p6708_p4 = scmp.lt.s32.totalorder %s6957_s27, %s6706_s25 }
  0x56   : > { %p6703_p2 = pnand %p6701_p12, %p6687_p0  ;;  %p6709_p13 = scmp.lt.s32.totalorder %s6707_s17, %s6700_s9 }
  0x58   : > { %p6704_p5 = pneg %p6703_p2  ;;  %p6710_p6 = por %p6709_p13, %p6708_p4 }
  0x5a   : > { %p6711_p10 = pnand %p6710_p6, %p6704_p5 }
  0x5c   : > { %6714 = shalt.err (!%p6711_p10)
}
  0x5d   : > { %s6792_s21 = smov 64   ;;  %s6793_s26 = smov 4  }
  0x5e   : > { %6475 = dma.hbm_to_vmem [thread:$0]  (!%p6948_p11), %s6955_s24, 3456, %s6957_s27, %s6959_s28, %s6792_s21, %s6792_s21, %s6793_s26  }
  0x5f   : > { %179 = sbr.rel (%p6857_p8) target bundleno = 697 (0x2b9), region = 32 }
  0x66   : > { %s6990_s22 = sand.u32 1, %s6777_s13   ;;  %p8899_p4 = scmp.ne.s32.totalorder %s8892_s18, 0 }
  0x67   : > { %s6452_s29 = smul.u32 216, %s6990_s22  ;;  %s182_s30 = scalar_lea.sflag [#allocation3], %s6990_s22 }
  0x69   : > { %s6994_s4 = scalar_lea.vmem [#allocation2], %s6452_s29 }
  0x6a   : > { %6760 = dma.done.wait (%p8899_p4), %s182_s30, 3456  }
  0x6b   : > { %6762 = vsyncadd (%p8899_p4), %s182_s30, 4294963840  ;;  %p8900_p5 = scmp.eq.s32.totalorder %s6838_s16, 0 }
  0x6d   : > { %6764 = dma.done.wait (%p8900_p5), [#allocation6], 304   ;;  %p8901_p8 = pmov %p8900_p5 }
  0x6e   : > { %vm753_vm0 = vcmask 1041408   ;;  %vm267_vm1 = vsmask.f32 3328  ;;  %vm268_vm2 = vsmask.f32 7440  ;;  %vm704_vm4 = vcmask 31744  }
  0x6f   : > { %6766 = vsyncadd (%p8901_p8), [#allocation6], 4294966992  ;;  %v655_v0 = vld [vmem:[#allocation5 + $0x2] sm:$0x3]  ;;  %v2459_v1 = vld [vmem:[#allocation5 + $0x8] sm:$0x3] }
  0x70   : > { %v218_v2 = vld [vmem:[%s6994_s4] sm:$0xf]  ;;  %6440 = vmatprep.subr.msk.bf16.mxu1 %vm753_vm0, %v655_v0  ;;  %6444 = vmatprep.subr.msk.bf16.mxu0 %vm753_vm0, %v2459_v1  ;;  %v755_v3 = vsel %vm753_vm0, %v655_v0, 0  ;;  %v7009_v4 = vsel %vm753_vm0, %v2459_v1, 0  ;;  %v219_v5 = vld [vmem:[%s6994_s4 + $0x4] sm:$0xf]  ;;  %vm7032_vm3 = vmor %vm267_vm1, %vm268_vm2 }
  0x71   : > { %8902 = vst [vmem:[#allocation12_spill] sm:$0xff] %v7009_v4  ;;  %v251_v6 = vld [vmem:[%s6994_s4 + $0x8] sm:$0x1]  ;;  %5877 = vmatpush3.bf16.msra.mxu1 %v755_v3  ;;  %6013 = vmatpush3.bf16.msra.mxu0 %v7009_v4  ;;  %v271_v7 = vshrl.u32 %v218_v2, 16  ;;  %v274_v8 = vshll.u32 %v218_v2, 16  ;;  %v280_v9 = vshll.u32 %v219_v5, 16 }
  0x72   : > { %v284_v10 = vshrl.u32 %v219_v5, 16  ;;  %v250_v11 = vld [vmem:[#allocation5] sm:$0x3]  ;;  %v290_v12 = vshll.u32 %v251_v6, 16  ;;  %v5300_v13 = vld [vmem:[%s6994_s4 + $0xc] sm:$0xf] }
  0x73   : > { %6441 = vmatprep.subr.msk.bf16.mxu1 %vm753_vm0, %v250_v11  ;;  %v7017_v14 = vld [vmem:[%s6994_s4 + $0x10] sm:$0xf]  ;;  %v273_v15 = vrot.slane %v271_v7, 4  ;;  %v276_v16 = vrot.slane %v274_v8, 5  ;;  %v282_v17 = vrot.slane %v280_v9, 5  ;;  %v2075_v21 = vshrl.u32 %v5300_v13, 16 }
  0x74   : > { %v286_v18 = vrot.slane %v284_v10, 4  ;;  %v7020_v19 = vld [vmem:[%s6994_s4 + $0x14] sm:$0x1]  ;;  %v292_v20 = vrot.slane %v290_v12, 5  ;;  %v2078_v22 = vshll.u32 %v5300_v13, 16  ;;  %v2084_v23 = vshll.u32 %v7017_v14, 16 }
  0x75   : > { %v7023_v24 = vld [vmem:[#allocation5 + $0xa] sm:$0x3]  ;;  %v277_v25 = vor.u32 %v276_v16, %v273_v15  ;;  %v2088_v27 = vshrl.u32 %v7017_v14, 16  ;;  %v2094_v28 = vshll.u32 %v7020_v19, 16  ;;  %v220_v29 = vld [vmem:[%s6994_s4 + $0xc] sm:$0xf] }
  0x76   : > { %v287_v26 = vor.u32 %v286_v18, %v282_v17  ;;  %6446 = vmatprep.subr.msk.bf16.mxu0 %vm753_vm0, %v7023_v24  ;;  %v2077_v31 = vrot.slane %v2075_v21, 4  ;;  %v2080_v32 = vrot.slane %v2078_v22, 5  ;;  %v2086_v33 = vrot.slane %v2084_v23, 5  ;;  %v221_v34 = vld [vmem:[%s6994_s4 + $0x10] sm:$0xf]  ;;  %s5123_s18 = sshll.u32 %s6990_s22, 7 }
  0x77   : > { %v278_v35 = vrot.slane %v277_v25, 4  ;;  %v2090_v37 = vrot.slane %v2088_v27, 4  ;;  %v2096_v39 = vrot.slane %v2094_v28, 5  ;;  %v252_v40 = vld [vmem:[%s6994_s4 + $0x14] sm:$0x1]  ;;  %v295_v41 = vshrl.u32 %v220_v29, 16 }
  0x78   : > { %v288_v36 = vrot.slane %v287_v26, 4  ;;  %v2081_v38 = vor.u32 %v2080_v32, %v2077_v31  ;;  %v298_v42 = vshll.u32 %v220_v29, 16  ;;  %v304_v46 = vshll.u32 %v221_v34, 16  ;;  %v5303_v55 = vld [vmem:[%s6994_s4 + $0x18] sm:$0xf]  ;;  %s8715_s20 = scalar_lea.vmem [#allocation8], %s5123_s18 }
  0x79   : > { %v283_v43 = vsel %vm7032_vm3, %v278_v35, %v282_v17  ;;  %v2091_v45 = vor.u32 %v2090_v37, %v2086_v33  ;;  %v297_v49 = vrot.slane %v295_v41, 4  ;;  %v308_v53 = vshrl.u32 %v221_v34, 16  ;;  %v7049_v60 = vld [vmem:[%s6994_s4 + $0x1c] sm:$0xf]  ;;  %v7052_v61 = vld [vmem:[%s6994_s4 + $0x20] sm:$0x1] }
  0x7a   : > { %v293_v44 = vsel %vm7032_vm3, %v288_v36, %v292_v20  ;;  %v2082_v48 = vrot.slane %v2081_v38, 4  ;;  %v300_v50 = vrot.slane %v298_v42, 5  ;;  %v306_v52 = vrot.slane %v304_v46, 5  ;;  %v222_v16 = vld [vmem:[%s6994_s4 + $0x18] sm:$0xf]  ;;  %s5722_s11 = sshll.u32 %s6838_s16, 11 }
  0x7b   : > { %v5124_v47 = vcombine.low %v283_v43, %v293_v44  ;;  %v2092_v51 = vrot.slane %v2091_v45, 4  ;;  %v314_v54 = vshll.u32 %v252_v40, 16  ;;  %v2818_v57 = vrot.slane %v7017_v14, 5  ;;  %v223_v22 = vld [vmem:[%s6994_s4 + $0x1c] sm:$0xf]  ;;  %s5022_s24 = sshll.u32 %s8715_s20, 4  ;;  %s8814_s23 = scalar_lea.hbm %s8869_s3, %s5722_s11  ;;  %s8816_s24 = int_to_ptr.vmem [resolvable:$true] %s5022_s24 }
  0x7c   : > { %v2087_v56 = vsel %vm7032_vm3, %v2082_v48, %v2086_v33  ;;  %v2821_v58 = vrot.slane %v7020_v19, 5  ;;  %v301_v59 = vor.u32 %v300_v50, %v297_v49  ;;  %v310_v63 = vrot.slane %v308_v53, 4  ;;  %v253_v28 = vld [vmem:[%s6994_s4 + $0x20] sm:$0x1]  ;;  %v5306_v34 = vld [vmem:[%s6994_s4 + $0x24] sm:$0xf] }
  0x7d   : > { %5878 = vmatprep.mubr.msk.bf16.mxu1 %vm704_vm4, %v5124_v47  ;;  %v2097_v62 = vsel %vm7032_vm3, %v2092_v51, %v2096_v39  ;;  %v316_v0 = vrot.slane %v314_v54, 5  ;;  %v1047_v1 = vsel %vm753_vm0, %v250_v11, 0  ;;  %v2099_v5 = vshrl.u32 %v5303_v55, 16  ;;  %v7078_v43 = vld [vmem:[%s6994_s4 + $0x28] sm:$0xf]  ;;  %s5009_s16 = scalar_lea.sflag [#allocation4], %s6990_s22 }
  0x7e   : > { %v5348_v2 = vcombine.low %v2087_v56, %v2097_v62  ;;  %v302_v3 = vrot.slane %v301_v59, 4  ;;  %v2102_v6 = vshll.u32 %v5303_v55, 16  ;;  %v311_v7 = vor.u32 %v310_v63, %v306_v52  ;;  %v7084_v46 = vld [vmem:[%s6994_s4 + $0x2c] sm:$0x1]  ;;  %s6715_s6 = scalar_lea.vmem %s8816_s24, 2048  ;;  %p8969_p0 = scmp.ne.s32.totalorder %s8897_s7, 0 }
  0x7f   : > { %v2108_v8 = vshll.u32 %v7049_v60, 16  ;;  %v2112_v9 = vshrl.u32 %v7049_v60, 16  ;;  %v2118_v10 = vshll.u32 %v7052_v61, 16  ;;  %v2101_v13 = vrot.slane %v2099_v5, 4  ;;  %p6716_p11 = scmp.ne.s32.totalorder %s8816_s24, %s6715_s6  ;;  %s6794_s9 = smov [#allocation8]  }
  0x80   : > { %6014 = vmatprep.mubr.msk.bf16.mxu0 %vm704_vm4, %v5348_v2  ;;  %v307_v12 = vsel %vm7032_vm3, %v302_v3, %v306_v52  ;;  %v2104_v11 = vrot.slane %v2102_v6, 5  ;;  %v2825_v15 = vrot.slane %v7049_v60, 5  ;;  %v312_v17 = vrot.slane %v311_v7, 4  ;;  %v224_v52 = vld [vmem:[%s6994_s4 + $0x24] sm:$0xf]  ;;  %s6719_s10 = sshll.u32 %s6794_s9, 4  ;;  %s6720_s10 = int_to_ptr.vmem [resolvable:$false] %s6719_s10 }
  0x81   : > { %v2110_v18 = vrot.slane %v2108_v8, 5  ;;  %v2114_v20 = vrot.slane %v2112_v9, 4  ;;  %v2120_v21 = vrot.slane %v2118_v10, 5  ;;  %v2828_v26 = vrot.slane %v7052_v61, 5  ;;  %p6717_p1 = pnand %p6716_p11, %p8969_p0  ;;  %s6721_s25 = scalar_lea.vmem %s6720_s10, 4096 }
  0x82   : > { %v2105_v23 = vor.u32 %v2104_v11, %v2101_v13  ;;  %v7068_v25 = vrot.slane %v2825_v15, 4  ;;  %v3027_v27 = vsel %vm753_vm0, %v7023_v24, 0  ;;  %v317_v29 = vsel %vm7032_vm3, %v312_v17, %v316_v0  ;;  %v5309_v13 = vld [vmem:[%s6994_s4 + $0x30] sm:$0xf]  ;;  %p6722_p7 = scmp.lt.s32.totalorder %s8816_s24, %s6720_s10  ;;  %p6723_p9 = scmp.lt.s32.totalorder %s6721_s25, %s6715_s6 }
  0x83   : > { %v2115_v31 = vor.u32 %v2114_v20, %v2110_v18  ;;  %v319_v32 = vshrl.u32 %v222_v16, 16  ;;  %v322_v33 = vshll.u32 %v222_v16, 16  ;;  %v5125_v35 = vcombine.low %v307_v12, %v317_v29  ;;  %v254_v12 = vld [vmem:[%s6994_s4 + $0x2c] sm:$0x1]  ;;  %p6718_p3 = pneg %p6717_p1 }
  0x84   : > { %v2106_v36 = vrot.slane %v2105_v23, 4  ;;  %v328_v37 = vshll.u32 %v223_v22, 16  ;;  %v332_v38 = vshrl.u32 %v223_v22, 16  ;;  %v338_v42 = vshll.u32 %v253_v28, 16  ;;  %p6724_p12 = por %p6723_p9, %p6722_p7 }
  0x85   : > { %v2116_v39 = vrot.slane %v2115_v31, 4  ;;  %v321_v40 = vrot.slane %v319_v32, 4  ;;  %v324_v41 = vrot.slane %v322_v33, 5  ;;  %5879 = vmatmul.mubr.msk.bf16.vlgmr.msra.gmra.mrb[0].mxu1 %vm704_vm4, %v5125_v35  ;;  %v2123_v47 = vshrl.u32 %v5306_v34, 16 }
  0x86   : > { %v2111_v24 = vsel %vm7032_vm3, %v2106_v36, %v2110_v18  ;;  %v330_v44 = vrot.slane %v328_v37, 5  ;;  %v334_v45 = vrot.slane %v332_v38, 4  ;;  %5911 = vmatpush3.bf16.msra.mxu1 %v1047_v1  ;;  %v340_v50 = vrot.slane %v338_v42, 5  ;;  %v225_v1 = vld [vmem:[%s6994_s4 + $0x28] sm:$0xf]  ;;  %p6725_p2 = pnand %p6724_p12, %p6718_p3 }
  0x87   : > { %v2121_v48 = vsel %vm7032_vm3, %v2116_v39, %v2120_v21  ;;  %v325_v49 = vor.u32 %v324_v41, %v321_v40  ;;  %v2126_v51 = vshll.u32 %v5306_v34, 16  ;;  %v2125_v55 = vrot.slane %v2123_v47, 4  ;;  %v7107_v36 = vld [vmem:[%s6994_s4 + $0x38] sm:$0x1]  ;;  %v226_v42 = vld [vmem:[%s6994_s4 + $0x30] sm:$0xf] }
  0x88   : > { %v5349_v53 = vcombine.low %v2111_v24, %v2121_v48  ;;  %v335_v54 = vor.u32 %v334_v45, %v330_v44  ;;  %v2132_v56 = vshll.u32 %v7078_v43, 16  ;;  %v2136_v63 = vshrl.u32 %v7078_v43, 16  ;;  %v227_v48 = vld [vmem:[%s6994_s4 + $0x34] sm:$0xf] }
  0x89   : > { %v326_v59 = vrot.slane %v325_v49, 4  ;;  %v2128_v62 = vrot.slane %v2126_v51, 5  ;;  %v2142_v0 = vshll.u32 %v7084_v46, 16  ;;  %v343_v5 = vshrl.u32 %v224_v52, 16 }
  0x8a   : > { %6015 = vmatmul.mubr.msk.bf16.vlgmr.msra.gmra.mrb[0].mxu0 %vm704_vm4, %v5349_v53  ;;  %v336_v2 = vrot.slane %v335_v54, 4  ;;  %v2134_v3 = vrot.slane %v2132_v56, 5  ;;  %v346_v6 = vshll.u32 %v224_v52, 16  ;;  %v2138_v9 = vrot.slane %v2136_v63, 4  ;;  %v255_v56 = vld [vmem:[%s6994_s4 + $0x38] sm:$0x1] }
  0x8b   : > { %6047 = vmatpush3.bf16.msra.mxu0 %v3027_v27  ;;  %v331_v7 = vsel %vm7032_vm3, %v326_v59, %v330_v44  ;;  %v2129_v8 = vor.u32 %v2128_v62, %v2125_v55  ;;  %v2144_v10 = vrot.slane %v2142_v0, 5  ;;  %v345_v16 = vrot.slane %v343_v5, 4  ;;  %v7101_v27 = vld [vmem:[%s6994_s4 + $0x34] sm:$0xf] }
  0x8c   : > { %v341_v11 = vsel %vm7032_vm3, %v336_v2, %v340_v50  ;;  %v348_v17 = vrot.slane %v346_v6, 5  ;;  %v352_v18 = vshll.u32 %v225_v1, 16  ;;  %v2139_v22 = vor.u32 %v2138_v9, %v2134_v3  ;;  %v5312_v2 = vld [vmem:[%s6994_s4 + $0x3c] sm:$0xf] }
  0x8d   : > { %v5126_v20 = vcombine.low %v331_v7, %v341_v11  ;;  %v2130_v21 = vrot.slane %v2129_v8, 4  ;;  %v356_v23 = vshrl.u32 %v225_v1, 16  ;;  %v362_v31 = vshll.u32 %v254_v12, 16  ;;  %v7124_v8 = vld [vmem:[%s6994_s4 + $0x40] sm:$0xf] }
  0x8e   : > { %v349_v28 = vor.u32 %v348_v17, %v345_v16  ;;  %v354_v29 = vrot.slane %v352_v18, 5  ;;  %v2147_v32 = vshrl.u32 %v5309_v13, 16  ;;  %v2140_v34 = vrot.slane %v2139_v22, 4  ;;  %v7129_v18 = vld [vmem:[%s6994_s4 + $0x44] sm:$0x1] }
  0x8f   : > { %5882 = vmatprep.mubr.msk.bf16.mxu1 %vm704_vm4, %v5126_v20  ;;  %v2135_v33 = vsel %vm7032_vm3, %v2130_v21, %v2134_v3  ;;  %v358_v35 = vrot.slane %v356_v23, 4  ;;  %v2150_v37 = vshll.u32 %v5309_v13, 16  ;;  %v364_v39 = vrot.slane %v362_v31, 5  ;;  %v7134_v31 = vld [vmem:[#allocation5 + $0xc] sm:$0x3] }
  0x90   : > { %v350_v38 = vrot.slane %v349_v28, 4  ;;  %v2149_v40 = vrot.slane %v2147_v32, 4  ;;  %v2156_v41 = vshll.u32 %v7101_v27, 16  ;;  %v2145_v24 = vsel %vm7032_vm3, %v2140_v34, %v2144_v10  ;;  %6447 = vmatprep.subr.msk.bf16.mxu0 %vm753_vm0, %v7134_v31 }
  0x91   : > { %v359_v44 = vor.u32 %v358_v35, %v354_v29  ;;  %v2152_v45 = vrot.slane %v2150_v37, 5  ;;  %v2160_v47 = vshrl.u32 %v7101_v27, 16  ;;  %v5350_v49 = vcombine.low %v2135_v33, %v2145_v24 }
  0x92   : > { %v355_v50 = vsel %vm7032_vm3, %v350_v38, %v354_v29  ;;  %v2158_v51 = vrot.slane %v2156_v41, 5  ;;  %v2166_v52 = vshll.u32 %v7107_v36, 16  ;;  %v367_v59 = vshrl.u32 %v226_v42, 16  ;;  %v228_v29 = vld [vmem:[%s6994_s4 + $0x3c] sm:$0xf] }
  0x93   : > { %v360_v53 = vrot.slane %v359_v44, 4  ;;  %v2153_v54 = vor.u32 %v2152_v45, %v2149_v40  ;;  %v2162_v55 = vrot.slane %v2160_v47, 4  ;;  %6018 = vmatprep.mubr.msk.bf16.mxu0 %vm704_vm4, %v5350_v49  ;;  %v370_v63 = vshll.u32 %v226_v42, 16  ;;  %v229_v44 = vld [vmem:[%s6994_s4 + $0x40] sm:$0xf] }
  0x94   : > { %v2168_v62 = vrot.slane %v2166_v52, 5  ;;  %v376_v0 = vshll.u32 %v227_v48, 16  ;;  %v380_v1 = vshrl.u32 %v227_v48, 16  ;;  %v369_v7 = vrot.slane %v367_v59, 4  ;;  %v5315_v52 = vld [vmem:[%s6994_s4 + $0x48] sm:$0xf] }
  0x95   : > { %v365_v3 = vsel %vm7032_vm3, %v360_v53, %v364_v39  ;;  %v2154_v5 = vrot.slane %v2153_v54, 4  ;;  %v2163_v6 = vor.u32 %v2162_v55, %v2158_v51  ;;  %v372_v10 = vrot.slane %v370_v63, 5 }
  0x96   : > { %v5127_v9 = vcombine.low %v355_v50, %v365_v3  ;;  %v378_v12 = vrot.slane %v376_v0, 5  ;;  %v382_v13 = vrot.slane %v380_v1, 4  ;;  %v386_v17 = vshll.u32 %v255_v56, 16  ;;  %v256_v50 = vld [vmem:[%s6994_s4 + $0x44] sm:$0x1] }
  0x97   : > { %v2159_v11 = vsel %vm7032_vm3, %v2154_v5, %v2158_v51  ;;  %v2164_v16 = vrot.slane %v2163_v6, 4  ;;  %v2171_v20 = vshrl.u32 %v5312_v2, 16  ;;  %v373_v21 = vor.u32 %v372_v10, %v369_v7  ;;  %v7152_v3 = vld [vmem:[%s6994_s4 + $0x4c] sm:$0xf] }
  0x98   : > { %5883 = vmatmul.mubr.msk.bf16.gmra.mrb[4].mxu1 %vm704_vm4, %v5127_v9  ;;  %v383_v22 = vor.u32 %v382_v13, %v378_v12  ;;  %v2174_v23 = vshll.u32 %v5312_v2, 16  ;;  %v2180_v28 = vshll.u32 %v7124_v8, 16  ;;  %v388_v33 = vrot.slane %v386_v17, 5  ;;  %v7157_v13 = vld [vmem:[%s6994_s4 + $0x50] sm:$0x1] }
  0x99   : > { %v2169_v32 = vsel %vm7032_vm3, %v2164_v16, %v2168_v62  ;;  %v2173_v34 = vrot.slane %v2171_v20, 4  ;;  %v2184_v35 = vshrl.u32 %v7124_v8, 16  ;;  %v374_v38 = vrot.slane %v373_v21, 4 }
  0x9a   : > { %v5351_v37 = vcombine.low %v2159_v11, %v2169_v32  ;;  %v384_v39 = vrot.slane %v383_v22, 4  ;;  %v2176_v40 = vrot.slane %v2174_v23, 5  ;;  %v2182_v41 = vrot.slane %v2180_v28, 5  ;;  %v7160_v11 = vld [vmem:[%s6994_s4 + $0x48] sm:$0xf] }
  0x9b   : > { %v2186_v42 = vrot.slane %v2184_v35, 4  ;;  %v2190_v24 = vshll.u32 %v7129_v18, 16  ;;  %v391_v45 = vshrl.u32 %v228_v29, 16  ;;  %v379_v47 = vsel %vm7032_vm3, %v374_v38, %v378_v12  ;;  %v7168_v35 = vld [vmem:[%s6994_s4 + $0x4c] sm:$0xf] }
  0x9c   : > { %6019 = vmatmul.mubr.msk.bf16.gmra.mrb[4].mxu0 %vm704_vm4, %v5351_v37  ;;  %v389_v48 = vsel %vm7032_vm3, %v384_v39, %v388_v33  ;;  %v2177_v49 = vor.u32 %v2176_v40, %v2173_v34  ;;  %v394_v51 = vshll.u32 %v228_v29, 16  ;;  %v400_v63 = vshll.u32 %v229_v44, 16 }
  0x9d   : > { %v5128_v53 = vcombine.low %v379_v47, %v389_v48  ;;  %v2187_v54 = vor.u32 %v2186_v42, %v2182_v41  ;;  %v2192_v55 = vrot.slane %v2190_v24, 5  ;;  %v393_v56 = vrot.slane %v391_v45, 4  ;;  %v5318_v48 = vld [vmem:[%s6994_s4 + $0x54] sm:$0xf] }
  0x9e   : > { %v2178_v59 = vrot.slane %v2177_v49, 4  ;;  %v396_v62 = vrot.slane %v394_v51, 5  ;;  %v404_v0 = vshrl.u32 %v229_v44, 16  ;;  %v410_v2 = vshll.u32 %v256_v50, 16 }
  0x9f   : > { %5886 = vmatprep.mubr.msk.bf16.mxu1 %vm704_vm4, %v5128_v53  ;;  %v2188_v1 = vrot.slane %v2187_v54, 4  ;;  %v2195_v5 = vshrl.u32 %v5315_v52, 16  ;;  %v2198_v6 = vshll.u32 %v5315_v52, 16  ;;  %v402_v10 = vrot.slane %v400_v63, 5  ;;  %v7182_v53 = vld [vmem:[%s6994_s4 + $0x58] sm:$0xf] }
  0xa0   : > { %v2183_v7 = vsel %vm7032_vm3, %v2178_v59, %v2182_v41  ;;  %v397_v9 = vor.u32 %v396_v62, %v393_v56  ;;  %v406_v12 = vrot.slane %v404_v0, 4  ;;  %v412_v17 = vrot.slane %v410_v2, 5  ;;  %v257_v41 = vld [vmem:[%s6994_s4 + $0x50] sm:$0x1] }
  0xa1   : > { %v2193_v16 = vsel %vm7032_vm3, %v2188_v1, %v2192_v55  ;;  %v2197_v20 = vrot.slane %v2195_v5, 4  ;;  %v2200_v21 = vrot.slane %v2198_v6, 5  ;;  %v2204_v29 = vshll.u32 %v7152_v3, 16  ;;  %v7187_v1 = vld [vmem:[%s6994_s4 + $0x5c] sm:$0x1] }
  0xa2   : > { %v5352_v22 = vcombine.low %v2183_v7, %v2193_v16  ;;  %v398_v23 = vrot.slane %v397_v9, 4  ;;  %v407_v28 = vor.u32 %v406_v12, %v402_v10  ;;  %v2208_v33 = vshrl.u32 %v7152_v3, 16 }
  0xa3   : > { %v2201_v32 = vor.u32 %v2200_v21, %v2197_v20  ;;  %v2214_v34 = vshll.u32 %v7157_v13, 16  ;;  %v415_v37 = vshrl.u32 %v7160_v11, 16  ;;  %v2206_v40 = vrot.slane %v2204_v29, 5  ;;  %v7193_v20 = vld [vmem:[%s6994_s4 + $0x54] sm:$0xf] }
  0xa4   : > { %6022 = vmatprep.mubr.msk.bf16.mxu0 %vm704_vm4, %v5352_v22  ;;  %v403_v38 = vsel %vm7032_vm3, %v398_v23, %v402_v10  ;;  %v408_v39 = vrot.slane %v407_v28, 4  ;;  %v418_v42 = vshll.u32 %v7160_v11, 16  ;;  %v2210_v44 = vrot.slane %v2208_v33, 4  ;;  %v7199_v29 = vld [vmem:[%s6994_s4 + $0x58] sm:$0xf] }
  0xa5   : > { %v2202_v24 = vrot.slane %v2201_v32, 4  ;;  %v2216_v45 = vrot.slane %v2214_v34, 5  ;;  %v417_v47 = vrot.slane %v415_v37, 4  ;;  %v424_v51 = vshll.u32 %v7168_v35, 16 }
  0xa6   : > { %v413_v49 = vsel %vm7032_vm3, %v408_v39, %v412_v17  ;;  %v420_v50 = vrot.slane %v418_v42, 5  ;;  %v428_v52 = vshrl.u32 %v7168_v35, 16  ;;  %v2211_v56 = vor.u32 %v2210_v44, %v2206_v40 }
  0xa7   : > { %v5129_v54 = vcombine.low %v403_v38, %v413_v49  ;;  %v2207_v55 = vsel %vm7032_vm3, %v2202_v24, %v2206_v40  ;;  %v434_v59 = vshll.u32 %v257_v41, 16  ;;  %v426_v63 = vrot.slane %v424_v51, 5  ;;  %v258_v40 = vld [vmem:[%s6994_s4 + $0x5c] sm:$0x1] }
  0xa8   : > { %v421_v62 = vor.u32 %v420_v50, %v417_v47  ;;  %v430_v0 = vrot.slane %v428_v52, 4  ;;  %v2219_v2 = vshrl.u32 %v5318_v48, 16  ;;  %v2212_v5 = vrot.slane %v2211_v56, 4  ;;  %v7212_v49 = vld [vmem:[#allocation5 + $0x4] sm:$0x3] }
  0xa9   : > { %5887 = vmatmul.mubr.msk.bf16.gmra.mrb[8].mxu1 %vm704_vm4, %v5129_v54  ;;  %v436_v6 = vrot.slane %v434_v59, 5  ;;  %v2222_v7 = vshll.u32 %v5318_v48, 16  ;;  %v2228_v9 = vshll.u32 %v7182_v53, 16  ;;  %v2232_v17 = vshrl.u32 %v7182_v53, 16  ;;  %v5321_v48 = vld [vmem:[%s6994_s4 + $0x60] sm:$0xf]  ;;  %6442 = vmatprep.subr.msk.bf16.mxu1 %vm753_vm0, %v7212_v49 }
  0xaa   : > { %v422_v10 = vrot.slane %v421_v62, 4  ;;  %v431_v12 = vor.u32 %v430_v0, %v426_v63  ;;  %v2221_v16 = vrot.slane %v2219_v2, 4  ;;  %v2217_v21 = vsel %vm7032_vm3, %v2212_v5, %v2216_v45  ;;  %v7223_v5 = vld [vmem:[%s6994_s4 + $0x68] sm:$0x1] }
  0xab   : > { %v2224_v22 = vrot.slane %v2222_v7, 5  ;;  %v2230_v23 = vrot.slane %v2228_v9, 5  ;;  %v2238_v28 = vshll.u32 %v7187_v1, 16  ;;  %v5353_v32 = vcombine.low %v2207_v55, %v2217_v21  ;;  %v7215_v55 = vld [vmem:[%s6994_s4 + $0x64] sm:$0xf] }
  0xac   : > { %v427_v33 = vsel %vm7032_vm3, %v422_v10, %v426_v63  ;;  %v432_v34 = vrot.slane %v431_v12, 4  ;;  %v2234_v37 = vrot.slane %v2232_v17, 4  ;;  %v439_v41 = vshrl.u32 %v7193_v20, 16  ;;  %v7229_v17 = vld [vmem:[%s6994_s4 + $0x60] sm:$0xf] }
  0xad   : > { %v2225_v38 = vor.u32 %v2224_v22, %v2221_v16  ;;  %v2240_v39 = vrot.slane %v2238_v28, 5  ;;  %v442_v42 = vshll.u32 %v7193_v20, 16  ;;  %vm1258_vm5 = vcmask 1042432   ;;  %6023 = vmatmul.mubr.msk.bf16.gmra.mrb[8].mxu0 %vm704_vm4, %v5353_v32 }
  0xae   : > { %vm1259_vm6 = vcmask 1046532   ;;  %v437_v24 = vsel %vm7032_vm3, %v432_v34, %v436_v6  ;;  %v2235_v44 = vor.u32 %v2234_v37, %v2230_v23  ;;  %v448_v45 = vshll.u32 %v7199_v29, 16 }
  0xaf   : > { %v452_v47 = vshrl.u32 %v7199_v29, 16  ;;  %v5130_v50 = vcombine.low %v427_v33, %v437_v24  ;;  %v2226_v51 = vrot.slane %v2225_v38, 4  ;;  %v441_v52 = vrot.slane %v439_v41, 4  ;;  %v259_v41 = vld [vmem:[%s6994_s4 + $0x68] sm:$0x1]  ;;  %vm7252_vm7 = vmor %vm1258_vm5, %vm1259_vm6 }
  0xb0   : > { %v444_v54 = vrot.slane %v442_v42, 5  ;;  %v2236_v56 = vrot.slane %v2235_v44, 4  ;;  %v450_v59 = vrot.slane %v448_v45, 5  ;;  %v458_v63 = vshll.u32 %v258_v40, 16 }
  0xb1   : > { %v454_v62 = vrot.slane %v452_v47, 4  ;;  %5890 = vmatprep.mubr.msk.bf16.mxu1 %vm704_vm4, %v5130_v50  ;;  %v2231_v0 = vsel %vm7032_vm3, %v2226_v51, %v2230_v23  ;;  %v2243_v6 = vshrl.u32 %v5321_v48, 16  ;;  %v2246_v7 = vshll.u32 %v5321_v48, 16  ;;  %v7232_v23 = vld [vmem:[%s6994_s4 + $0x64] sm:$0xf] }
  0xb2   : > { %v445_v2 = vor.u32 %v444_v54, %v441_v52  ;;  %v2241_v9 = vsel %vm7032_vm3, %v2236_v56, %v2240_v39  ;;  %v460_v12 = vrot.slane %v458_v63, 5  ;;  %v2252_v16 = vshll.u32 %v7215_v55, 16  ;;  %v5380_v50 = vld [vmem:[%s6994_s4 + $0xc] sm:$0xe] }
  0xb3   : > { %v455_v10 = vor.u32 %v454_v62, %v450_v59  ;;  %v5354_v21 = vcombine.low %v2231_v0, %v2241_v9  ;;  %v2245_v28 = vrot.slane %v2243_v6, 4  ;;  %v2248_v32 = vrot.slane %v2246_v7, 5 }
  0xb4   : > { %v446_v22 = vrot.slane %v445_v2, 4  ;;  %v2254_v34 = vrot.slane %v2252_v16, 5  ;;  %v2256_v37 = vshrl.u32 %v7215_v55, 16  ;;  %v2262_v38 = vshll.u32 %v7223_v5, 16 }
  0xb5   : > { %v456_v33 = vrot.slane %v455_v10, 4  ;;  %6026 = vmatprep.mubr.msk.bf16.mxu0 %vm704_vm4, %v5354_v21  ;;  %v2249_v40 = vor.u32 %v2248_v32, %v2245_v28  ;;  %v463_v42 = vshrl.u32 %v7229_v17, 16  ;;  %v466_v24 = vshll.u32 %v7229_v17, 16  ;;  %v7262_v28 = vld [vmem:[%s6994_s4 + $0x70] sm:$0xf] }
  0xb6   : > { %v451_v39 = vsel %vm7032_vm3, %v446_v22, %v450_v59  ;;  %v2258_v45 = vrot.slane %v2256_v37, 4  ;;  %v2264_v47 = vrot.slane %v2262_v38, 5  ;;  %v472_v48 = vshll.u32 %v7232_v23, 16  ;;  %v7247_v59 = vld [vmem:[%s6994_s4 + $0x6c] sm:$0xf] }
  0xb7   : > { %v461_v44 = vsel %vm7032_vm3, %v456_v33, %v460_v12  ;;  %v2250_v52 = vrot.slane %v2249_v40, 4  ;;  %v465_v54 = vrot.slane %v463_v42, 4  ;;  %v468_v56 = vrot.slane %v466_v24, 5  ;;  %v260_v38 = vld [vmem:[%s6994_s4 + $0x74] sm:$0x1] }
  0xb8   : > { %v5131_v51 = vcombine.low %v451_v39, %v461_v44  ;;  %v2259_v62 = vor.u32 %v2258_v45, %v2254_v34  ;;  %v474_v63 = vrot.slane %v472_v48, 5  ;;  %v476_v0 = vshrl.u32 %v7232_v23, 16  ;;  %v5381_v40 = vld [vmem:[%s6994_s4 + $0x18] sm:$0xe]  ;;  %v7285_v48 = vld [vmem:[%s6994_s4 + $0x7c] sm:$0xf] }
  0xb9   : > { %v482_v2 = vshll.u32 %v259_v41, 16  ;;  %v2255_v7 = vsel %vm7032_vm3, %v2250_v52, %v2254_v34  ;;  %v469_v9 = vor.u32 %v468_v56, %v465_v54  ;;  %v5396_v10 = vrot.slane %v5380_v50, 9  ;;  %v261_v54 = vld [vmem:[%s6994_s4 + $0x80] sm:$0x1]  ;;  %v5382_v56 = vld [vmem:[%s6994_s4 + $0x24] sm:$0xe] }
  0xba   : > { %5891 = vmatmul.mubr.msk.bf16.gmra.mrb[12].mxu1 %vm704_vm4, %v5131_v51  ;;  %v2820_v12 = vrot.slane %v2818_v57, 4  ;;  %v2260_v16 = vrot.slane %v2259_v62, 4  ;;  %v478_v21 = vrot.slane %v476_v0, 4  ;;  %v487_v32 = vshrl.u32 %v7247_v59, 16 }
  0xbb   : > { %v484_v22 = vrot.slane %v482_v2, 5  ;;  %v470_v33 = vrot.slane %v469_v9, 4  ;;  %v2819_v34 = vsel %vm7252_vm7, %v5396_v10, %v2818_v57  ;;  %v490_v39 = vshll.u32 %v7247_v59, 16 }
  0xbc   : > { %v2822_v37 = vsel %vm7252_vm7, %v2820_v12, %v2821_v58  ;;  %v2265_v41 = vsel %vm7032_vm3, %v2260_v16, %v2264_v47  ;;  %v479_v42 = vor.u32 %v478_v21, %v474_v63  ;;  %v489_v14 = vrot.slane %v487_v32, 4  ;;  %v7282_v58 = vld [vmem:[%s6994_s4 + $0x78] sm:$0xf]  ;;  %v7306_v12 = vld [vmem:[%s6994_s4 + $0x84] sm:$0xf] }
  0xbd   : > { %v5412_v24 = vcombine.low %v2819_v34, %v2822_v37  ;;  %v5355_v44 = vcombine.low %v2255_v7, %v2265_v41  ;;  %v475_v57 = vsel %vm7032_vm3, %v470_v33, %v474_v63  ;;  %v492_v19 = vrot.slane %v490_v39, 5 }
  0xbe   : > { %v496_v45 = vshll.u32 %v7262_v28, 16  ;;  %v480_v50 = vrot.slane %v479_v42, 4  ;;  %v500_v51 = vshrl.u32 %v7262_v28, 16  ;;  %v506_v52 = vshll.u32 %v260_v38, 16  ;;  %v7316_v38 = vld [vmem:[%s6994_s4 + $0x88] sm:$0xf] }
  0xbf   : > { %v5397_v47 = vrot.slane %v5381_v40, 9  ;;  %6027 = vmatmul.mubr.msk.bf16.gmra.mrb[12].mxu0 %vm704_vm4, %v5355_v44  ;;  %v493_v62 = vor.u32 %v492_v19, %v489_v14  ;;  %v2829_v63 = vsel %vm7252_vm7, %v7068_v25, %v2828_v26  ;;  %v3386_v2 = vsel %vm753_vm0, %v7134_v31, 0  ;;  %v5383_v14 = vld [vmem:[%s6994_s4 + $0x30] sm:$0xe]  ;;  %v7320_v44 = vld [vmem:[#allocation5 + $0xe] sm:$0x3] }
  0xc0   : > { %v498_v0 = vrot.slane %v496_v45, 5  ;;  %v485_v7 = vsel %vm7032_vm3, %v480_v50, %v484_v22  ;;  %6048 = vmatprep.mubr.msk.bf16.mxu0 %vm704_vm4, %v5412_v24  ;;  %v502_v9 = vrot.slane %v500_v51, 4  ;;  %v508_v10 = vrot.slane %v506_v52, 5  ;;  %v262_v24 = vld [vmem:[%s6994_s4 + $0x8c] sm:$0x1] }
  0xc1   : > { %v2826_v61 = vsel %vm7252_vm7, %v5397_v47, %v2825_v15  ;;  %v5132_v16 = vcombine.low %v475_v57, %v485_v7  ;;  %v494_v25 = vrot.slane %v493_v62, 4  ;;  %v511_v31 = vshrl.u32 %v7282_v58, 16 }
  0xc2   : > { %v5413_v26 = vcombine.low %v2826_v61, %v2829_v63  ;;  %v503_v21 = vor.u32 %v502_v9, %v498_v0  ;;  %v514_v22 = vshll.u32 %v7282_v58, 16  ;;  %v520_v32 = vshll.u32 %v7285_v48, 16 }
  0xc3   : > { %v524_v60 = vshrl.u32 %v7285_v48, 16  ;;  %5894 = vmatprep.mubr.msk.bf16.mxu1 %vm704_vm4, %v5132_v16  ;;  %v499_v15 = vsel %vm7032_vm3, %v494_v25, %v498_v0  ;;  %v513_v33 = vrot.slane %v511_v31, 4  ;;  %v530_v34 = vshll.u32 %v261_v54, 16 }
  0xc4   : > { %v5398_v37 = vrot.slane %v5382_v56, 9  ;;  %v504_v39 = vrot.slane %v503_v21, 4  ;;  %v516_v40 = vrot.slane %v514_v22, 5  ;;  %v522_v41 = vrot.slane %v520_v32, 5  ;;  %v7346_v32 = vld [vmem:[%s6994_s4 + $0x94] sm:$0xf] }
  0xc5   : > { %v526_v42 = vrot.slane %v524_v60, 4  ;;  %v532_v57 = vrot.slane %v530_v34, 5  ;;  %v2832_v19 = vrot.slane %v7078_v43, 5  ;;  %v2835_v45 = vrot.slane %v7084_v46, 5  ;;  %v7332_v43 = vld [vmem:[%s6994_s4 + $0x90] sm:$0xf] }
  0xc6   : > { %v535_v50 = vshrl.u32 %v7306_v12, 16  ;;  %v509_v51 = vsel %vm7032_vm3, %v504_v39, %v508_v10  ;;  %v517_v52 = vor.u32 %v516_v40, %v513_v33  ;;  %v538_v54 = vshll.u32 %v7306_v12, 16 }
  0xc7   : > { %v527_v47 = vor.u32 %v526_v42, %v522_v41  ;;  %v5133_v56 = vcombine.low %v499_v15, %v509_v51  ;;  %6049 = vmatmul.mubr.msk.bf16.vlgmr.msra.gmra.mrb[0].mxu0 %vm704_vm4, %v5413_v26  ;;  %v2833_v62 = vsel %vm7252_vm7, %v5398_v37, %v2832_v19  ;;  %v2834_v0 = vrot.slane %v2832_v19, 4  ;;  %v263_v37 = vld [vmem:[%s6994_s4 + $0x98] sm:$0x1] }
  0xc8   : > { %v537_v63 = vrot.slane %v535_v50, 4  ;;  %6081 = vmatpush3.bf16.msra.mxu0 %v3386_v2  ;;  %v518_v46 = vrot.slane %v517_v52, 4  ;;  %v540_v9 = vrot.slane %v538_v54, 5  ;;  %v544_v10 = vshll.u32 %v7316_v38, 16  ;;  %v7363_v52 = vld [vmem:[%s6994_s4 + $0x9c] sm:$0xf] }
  0xc9   : > { %v528_v7 = vrot.slane %v527_v47, 4  ;;  %5895 = vmatmul.mubr.msk.bf16.gmra.mrb[16].mxu1 %vm704_vm4, %v5133_v56  ;;  %v2836_v61 = vsel %vm7252_vm7, %v2834_v0, %v2835_v45  ;;  %v548_v16 = vshrl.u32 %v7316_v38, 16  ;;  %v554_v25 = vshll.u32 %v262_v24, 16  ;;  %6448 = vmatprep.subr.msk.bf16.mxu0 %vm753_vm0, %v7320_v44  ;;  %v5384_v45 = vld [vmem:[%s6994_s4 + $0x3c] sm:$0xe] }
  0xca   : > { %v5399_v26 = vrot.slane %v5383_v14, 9  ;;  %v523_v2 = vsel %vm7032_vm3, %v518_v46, %v522_v41  ;;  %v5414_v21 = vcombine.low %v2833_v62, %v2836_v61  ;;  %v541_v22 = vor.u32 %v540_v9, %v537_v63  ;;  %v7366_v0 = vld [vmem:[%s6994_s4 + $0xa0] sm:$0xf] }
  0xcb   : > { %v533_v31 = vsel %vm7032_vm3, %v528_v7, %v532_v57  ;;  %v546_v15 = vrot.slane %v544_v10, 5  ;;  %v550_v33 = vrot.slane %v548_v16, 4  ;;  %v556_v34 = vrot.slane %v554_v25, 5 }
  0xcc   : > { %v5134_v60 = vcombine.low %v523_v2, %v533_v31  ;;  %6052 = vmatprep.mubr.msk.bf16.mxu0 %vm704_vm4, %v5414_v21  ;;  %v542_v39 = vrot.slane %v541_v22, 4  ;;  %v2839_v40 = vrot.slane %v7101_v27, 5  ;;  %v2842_v41 = vrot.slane %v7107_v36, 5 }
  0xcd   : > { %v559_v42 = vshrl.u32 %v7332_v43, 16  ;;  %v551_v24 = vor.u32 %v550_v33, %v546_v15  ;;  %v562_v14 = vshll.u32 %v7332_v43, 16  ;;  %v568_v57 = vshll.u32 %v7346_v32, 16 }
  0xce   : > { %5898 = vmatprep.mubr.msk.bf16.mxu1 %vm704_vm4, %v5134_v60  ;;  %v572_v19 = vshrl.u32 %v7346_v32, 16  ;;  %v547_v50 = vsel %vm7032_vm3, %v542_v39, %v546_v15  ;;  %v2840_v27 = vsel %vm7252_vm7, %v5399_v26, %v2839_v40  ;;  %v2841_v36 = vrot.slane %v2839_v40, 4  ;;  %v264_v26 = vld [vmem:[%s6994_s4 + $0xa4] sm:$0x1]  ;;  %v5385_v60 = vld [vmem:[%s6994_s4 + $0x48] sm:$0xe] }
  0xcf   : > { %v561_v51 = vrot.slane %v559_v42, 4  ;;  %v552_v47 = vrot.slane %v551_v24, 4  ;;  %v564_v54 = vrot.slane %v562_v14, 5  ;;  %v570_v56 = vrot.slane %v568_v57, 5 }
  0xd0   : > { %v574_v62 = vrot.slane %v572_v19, 4  ;;  %v2843_v63 = vsel %vm7252_vm7, %v2841_v36, %v2842_v41  ;;  %v578_v46 = vshll.u32 %v263_v37, 16  ;;  %v5400_v7 = vrot.slane %v5384_v45, 9  ;;  %v7381_v37 = vld [vmem:[%s6994_s4 + $0xa8] sm:$0xf] }
  0xd1   : > { %v2846_v9 = vrot.slane %v7124_v8, 5  ;;  %v557_v10 = vsel %vm7032_vm3, %v552_v47, %v556_v34  ;;  %v5415_v61 = vcombine.low %v2840_v27, %v2843_v63  ;;  %v565_v16 = vor.u32 %v564_v54, %v561_v51  ;;  %v7394_v19 = vld [vmem:[%s6994_s4 + $0xac] sm:$0xf]  ;;  %v265_v51 = vld [vmem:[%s6994_s4 + $0xb0] sm:$0x1] }
  0xd2   : > { %v575_v25 = vor.u32 %v574_v62, %v570_v56  ;;  %v5135_v2 = vcombine.low %v547_v50, %v557_v10  ;;  %v580_v31 = vrot.slane %v578_v46, 5  ;;  %v2849_v33 = vrot.slane %v7129_v18, 5 }
  0xd3   : > { %v2847_v21 = vsel %vm7252_vm7, %v5400_v7, %v2846_v9  ;;  %v2848_v22 = vrot.slane %v2846_v9, 4  ;;  %6053 = vmatmul.mubr.msk.bf16.gmra.mrb[4].mxu0 %vm704_vm4, %v5415_v61  ;;  %v566_v15 = vrot.slane %v565_v16, 4  ;;  %v583_v34 = vshrl.u32 %v7363_v52, 16 }
  0xd4   : > { %v576_v8 = vrot.slane %v575_v25, 4  ;;  %5899 = vmatmul.mubr.msk.bf16.gmra.mrb[20].mxu1 %vm704_vm4, %v5135_v2  ;;  %v586_v39 = vshll.u32 %v7363_v52, 16  ;;  %v592_v40 = vshll.u32 %v7366_v0, 16  ;;  %v596_v41 = vshrl.u32 %v7366_v0, 16 }
  0xd5   : > { %v602_v42 = vshll.u32 %v264_v26, 16  ;;  %v571_v24 = vsel %vm7032_vm3, %v566_v15, %v570_v56  ;;  %v2850_v14 = vsel %vm7252_vm7, %v2848_v22, %v2849_v33  ;;  %v585_v57 = vrot.slane %v583_v34, 4 }
  0xd6   : > { %v581_v18 = vsel %vm7032_vm3, %v576_v8, %v580_v31  ;;  %v5416_v50 = vcombine.low %v2847_v21, %v2850_v14  ;;  %v588_v27 = vrot.slane %v586_v39, 5  ;;  %v594_v36 = vrot.slane %v592_v40, 5  ;;  %v7413_v40 = vld [vmem:[%s6994_s4 + $0xb4] sm:$0xf]  ;;  %v7419_v14 = vld [vmem:[%s6994_s4 + $0xb8] sm:$0xf] }
  0xd7   : > { %v5136_v45 = vcombine.low %v571_v24, %v581_v18  ;;  %v598_v47 = vrot.slane %v596_v41, 4  ;;  %v604_v54 = vrot.slane %v602_v42, 5  ;;  %v5401_v62 = vrot.slane %v5385_v60, 9 }
  0xd8   : > { %v2853_v56 = vrot.slane %v7152_v3, 5  ;;  %6056 = vmatprep.mubr.msk.bf16.mxu0 %vm704_vm4, %v5416_v50  ;;  %v589_v63 = vor.u32 %v588_v27, %v585_v57  ;;  %v2856_v46 = vrot.slane %v7157_v13, 5  ;;  %v607_v7 = vshrl.u32 %v7381_v37, 16  ;;  %v5386_v3 = vld [vmem:[%s6994_s4 + $0x54] sm:$0xe] }
  0xd9   : > { %5902 = vmatprep.mubr.msk.bf16.mxu1 %vm704_vm4, %v5136_v45  ;;  %v610_v9 = vshll.u32 %v7381_v37, 16  ;;  %v599_v10 = vor.u32 %v598_v47, %v594_v36  ;;  %v616_v25 = vshll.u32 %v7394_v19, 16  ;;  %v620_v21 = vshrl.u32 %v7394_v19, 16 }
  0xda   : > { %v2854_v61 = vsel %vm7252_vm7, %v5401_v62, %v2853_v56  ;;  %v2855_v16 = vrot.slane %v2853_v56, 4  ;;  %v590_v26 = vrot.slane %v589_v63, 4  ;;  %v609_v2 = vrot.slane %v607_v7, 4 }
  0xdb   : > { %v612_v31 = vrot.slane %v610_v9, 5  ;;  %v600_v13 = vrot.slane %v599_v10, 4  ;;  %v618_v60 = vrot.slane %v616_v25, 5  ;;  %v626_v15 = vshll.u32 %v265_v51, 16 }
  0xdc   : > { %v2857_v22 = vsel %vm7252_vm7, %v2855_v16, %v2856_v46  ;;  %v595_v8 = vsel %vm7032_vm3, %v590_v26, %v594_v36  ;;  %v622_v39 = vrot.slane %v620_v21, 4  ;;  %v5402_v24 = vrot.slane %v5386_v3, 9  ;;  %v7424_v36 = vld [vmem:[%s6994_s4 + $0xbc] sm:$0x1]  ;;  %v5387_v46 = vld [vmem:[%s6994_s4 + $0x60] sm:$0xe] }
  0xdd   : > { %v5417_v33 = vcombine.low %v2854_v61, %v2857_v22  ;;  %v613_v34 = vor.u32 %v612_v31, %v609_v2  ;;  %v605_v41 = vsel %vm7032_vm3, %v600_v13, %v604_v54  ;;  %v628_v42 = vrot.slane %v626_v15, 5  ;;  %v5388_v16 = vld [vmem:[%s6994_s4 + $0x6c] sm:$0xe]  ;;  %v5325_v31 = vld [vmem:[%s6994_s4 + $0x70] sm:$0xf] }
  0xde   : > { %v2860_v18 = vrot.slane %v7182_v53, 5  ;;  %v5137_v57 = vcombine.low %v595_v8, %v605_v41  ;;  %v623_v50 = vor.u32 %v622_v39, %v618_v60  ;;  %v2863_v27 = vrot.slane %v7187_v1, 5  ;;  %v5326_v21 = vld [vmem:[%s6994_s4 + $0x74] sm:$0x1] }
  0xdf   : > { %6057 = vmatmul.mubr.msk.bf16.gmra.mrb[8].mxu0 %vm704_vm4, %v5417_v33  ;;  %v614_v45 = vrot.slane %v613_v34, 4  ;;  %v631_v54 = vshrl.u32 %v7413_v40, 16  ;;  %v634_v53 = vshll.u32 %v7413_v40, 16  ;;  %v640_v1 = vshll.u32 %v7419_v14, 16 }
  0xe0   : > { %v2861_v51 = vsel %vm7252_vm7, %v5402_v24, %v2860_v18  ;;  %v2862_v47 = vrot.slane %v2860_v18, 4  ;;  %5903 = vmatmul.mubr.msk.bf16.gmra.mrb[24].mxu1 %vm704_vm4, %v5137_v57  ;;  %v624_v56 = vrot.slane %v623_v50, 4  ;;  %v644_v63 = vshrl.u32 %v7419_v14, 16 }
  0xe1   : > { %v619_v62 = vsel %vm7032_vm3, %v614_v45, %v618_v60  ;;  %v633_v9 = vrot.slane %v631_v54, 4  ;;  %v636_v10 = vrot.slane %v634_v53, 5  ;;  %v650_v61 = vshll.u32 %v7424_v36, 16  ;;  %v6574_v54 = vld [vmem:[%s6994_s4] sm:$0xf] }
  0xe2   : > { %v2864_v7 = vsel %vm7252_vm7, %v2862_v47, %v2863_v27  ;;  %v629_v25 = vsel %vm7032_vm3, %v624_v56, %v628_v42  ;;  %v642_v26 = vrot.slane %v640_v1, 5  ;;  %v646_v2 = vrot.slane %v644_v63, 4  ;;  %v5389_v27 = vld [vmem:[%s6994_s4 + $0x78] sm:$0xe]  ;;  %v7461_v53 = vld [vmem:[%s6994_s4 + $0x4] sm:$0xf] }
  0xe3   : > { %v5418_v3 = vcombine.low %v2861_v51, %v2864_v7  ;;  %v5138_v13 = vcombine.low %v619_v62, %v629_v25  ;;  %v637_v22 = vor.u32 %v636_v10, %v633_v9  ;;  %v652_v60 = vrot.slane %v650_v61, 5  ;;  %v7465_v56 = vld [vmem:[%s6994_s4 + $0x7c] sm:$0xf]  ;;  %v7468_v1 = vld [vmem:[%s6994_s4 + $0x80] sm:$0x1] }
  0xe4   : > { %v5403_v15 = vrot.slane %v5387_v46, 9  ;;  %v647_v8 = vor.u32 %v646_v2, %v642_v26  ;;  %v2867_v33 = vrot.slane %v7215_v55, 5  ;;  %v2870_v34 = vrot.slane %v7223_v5, 5  ;;  %v5390_v63 = vld [vmem:[%s6994_s4 + $0x84] sm:$0xe] }
  0xe5   : > { %6060 = vmatprep.mubr.msk.bf16.mxu0 %vm704_vm4, %v5418_v3  ;;  %v5404_v39 = vrot.slane %v5388_v16, 9  ;;  %5906 = vmatprep.mubr.msk.bf16.mxu1 %vm704_vm4, %v5138_v13  ;;  %v638_v41 = vrot.slane %v637_v22, 4  ;;  %v2874_v42 = vrot.slane %v5325_v31, 5  ;;  %v2877_v24 = vrot.slane %v5326_v21, 5  ;;  %v5331_v10 = vld [vmem:[%s6994_s4 + $0x88] sm:$0xf] }
  0xe6   : > { %v648_v18 = vrot.slane %v647_v8, 4  ;;  %v2868_v57 = vsel %vm7252_vm7, %v5403_v15, %v2867_v33  ;;  %v2869_v45 = vrot.slane %v2867_v33, 4  ;;  %v5156_v62 = vcombine.low %v6574_v54, %v7461_v53  ;;  %v5332_v61 = vld [vmem:[%s6994_s4 + $0x8c] sm:$0x1]  ;;  %v5334_v3 = vld [vmem:[%s6994_s4 + $0x94] sm:$0xf] }
  0xe7   : > { %v643_v55 = vsel %vm7032_vm3, %v638_v41, %v642_v26  ;;  %v2875_v5 = vsel %vm7252_vm7, %v5404_v39, %v2874_v42  ;;  %v2876_v50 = vrot.slane %v2874_v42, 4  ;;  %v5405_v25 = vrot.slane %v5389_v27, 9  ;;  %v5335_v22 = vld [vmem:[%s6994_s4 + $0x98] sm:$0x1]  ;;  %v6576_v39 = vld [vmem:[%s6994_s4 + $0xc] sm:$0xf] }
  0xe8   : > { %v653_v51 = vsel %vm7032_vm3, %v648_v18, %v652_v60  ;;  %v2871_v47 = vsel %vm7252_vm7, %v2869_v45, %v2870_v34  ;;  %v2881_v26 = vrot.slane %v7465_v56, 5  ;;  %v2884_v2 = vrot.slane %v7468_v1, 5  ;;  %v5391_v60 = vld [vmem:[%s6994_s4 + $0x90] sm:$0xe]  ;;  %v5337_v34 = vld [vmem:[%s6994_s4 + $0xa0] sm:$0xf] }
  0xe9   : > { %v5139_v46 = vcombine.low %v643_v55, %v653_v51  ;;  %v5419_v7 = vcombine.low %v2868_v57, %v2871_v47  ;;  %v2878_v9 = vsel %vm7252_vm7, %v2876_v50, %v2877_v24  ;;  %v5406_v31 = vrot.slane %v5390_v63, 9  ;;  %v7489_v41 = vld [vmem:[%s6994_s4 + $0x10] sm:$0xf]  ;;  %v5338_v57 = vld [vmem:[%s6994_s4 + $0xa4] sm:$0x1] }
  0xea   : > { %v5420_v16 = vcombine.low %v2875_v5, %v2878_v9  ;;  %v2888_v21 = vrot.slane %v5331_v10, 5  ;;  %v2891_v13 = vrot.slane %v5332_v61, 5  ;;  %v2882_v15 = vsel %vm7252_vm7, %v5405_v25, %v2881_v26  ;;  %v5392_v45 = vld [vmem:[%s6994_s4 + $0x9c] sm:$0xe]  ;;  %v6578_v5 = vld [vmem:[%s6994_s4 + $0x18] sm:$0xf] }
  0xeb   : > { %5907 = vmatmul.mubr.msk.bf16.gmra.mrb[28].mxu1 %vm704_vm4, %v5139_v46  ;;  %6061 = vmatmul.mubr.msk.bf16.gmra.mrb[12].mxu0 %vm704_vm4, %v5419_v7  ;;  %v2883_v8 = vrot.slane %v2881_v26, 4  ;;  %v2895_v33 = vrot.slane %v5334_v3, 5  ;;  %v5157_v42 = vcombine.low %v6576_v39, %v7489_v41  ;;  %v7500_v50 = vld [vmem:[%s6994_s4 + $0x1c] sm:$0xf]  ;;  %v5407_v51 = vrot.slane %v5391_v60, 9 }
  0xec   : > { %5912 = vmatprep.mubr.msk.bf16.mxu1 %vm704_vm4, %v5156_v62  ;;  %6064 = vmatprep.mubr.msk.bf16.mxu0 %vm704_vm4, %v5420_v16  ;;  %v2889_v24 = vsel %vm7252_vm7, %v5406_v31, %v2888_v21  ;;  %v2890_v18 = vrot.slane %v2888_v21, 4  ;;  %v5158_v27 = vcombine.low %v6578_v5, %v7500_v50  ;;  %v2898_v47 = vrot.slane %v5335_v22, 5  ;;  %v5340_v7 = vld [vmem:[%s6994_s4 + $0xac] sm:$0xf]  ;;  %v5343_v9 = vld [vmem:[%s6994_s4 + $0xb8] sm:$0xf] }
  0xed   : > { %v2885_v55 = vsel %vm7252_vm7, %v2883_v8, %v2884_v2  ;;  %v2897_v63 = vrot.slane %v2895_v33, 4  ;;  %v2902_v46 = vrot.slane %v5337_v34, 5  ;;  %v1472_v10 = vsel %vm753_vm0, %v7212_v49, 0  ;;  %v7509_v26 = vld [vmem:[#allocation5 + $0x6] sm:$0x3] }
  0xee   : > { %v5421_v54 = vcombine.low %v2882_v15, %v2885_v55  ;;  %v2892_v62 = vsel %vm7252_vm7, %v2890_v18, %v2891_v13  ;;  %v5408_v16 = vrot.slane %v5392_v45, 9  ;;  %v2905_v25 = vrot.slane %v5338_v57, 5  ;;  %v5341_v31 = vld [vmem:[%s6994_s4 + $0xb0] sm:$0x1]  ;;  %v5393_v60 = vld [vmem:[%s6994_s4 + $0xa8] sm:$0xe] }
  0xef   : > { %v5422_v61 = vcombine.low %v2889_v24, %v2892_v62  ;;  %v2904_v3 = vrot.slane %v2902_v46, 4  ;;  %v2896_v49 = vsel %vm7252_vm7, %v5407_v51, %v2895_v33  ;;  %v2899_v2 = vsel %vm7252_vm7, %v2897_v63, %v2898_v47  ;;  %v5344_v8 = vld [vmem:[%s6994_s4 + $0xbc] sm:$0x1]  ;;  %v5394_v33 = vld [vmem:[%s6994_s4 + $0xb4] sm:$0xe] }
  0xf0   : > { %v2909_v21 = vrot.slane %v5340_v7, 5  ;;  %v2903_v13 = vsel %vm7252_vm7, %v5408_v16, %v2902_v46  ;;  %v2916_v15 = vrot.slane %v5343_v9, 5  ;;  %v6580_v34 = vld [vmem:[%s6994_s4 + $0x24] sm:$0xf]  ;;  %v7531_v39 = vld [vmem:[%s6994_s4 + $0x28] sm:$0xf]  ;;  %v5423_v24 = vcombine.low %v2896_v49, %v2899_v2 }
  0xf1   : > { %v2906_v22 = vsel %vm7252_vm7, %v2904_v3, %v2905_v25  ;;  %v6582_v18 = vld [vmem:[%s6994_s4 + $0x30] sm:$0xf]  ;;  %v7536_v57 = vld [vmem:[%s6994_s4 + $0x34] sm:$0xf]  ;;  %v5346_v55 = vld [vmem:[%s6994_s4 + $0xc4] sm:$0xf] }
  0xf2   : > { %v5160_v45 = vcombine.low %v6582_v18, %v7536_v57  ;;  %v5424_v5 = vcombine.low %v2903_v13, %v2906_v22  ;;  %v2911_v51 = vrot.slane %v2909_v21, 4  ;;  %v2912_v47 = vrot.slane %v5341_v31, 5  ;;  %v5347_v16 = vld [vmem:[%s6994_s4 + $0xc8] sm:$0x1]  ;;  %v5395_v25 = vld [vmem:[%s6994_s4 + $0xc0] sm:$0xe] }
  0xf3   : > { %5913 = vmatmul.mubr.msk.bf16.vlgmr.msra.gmra.mrb[0].mxu1 %vm704_vm4, %v5157_v42  ;;  %6065 = vmatmul.mubr.msk.bf16.gmra.mrb[16].mxu0 %vm704_vm4, %v5421_v54  ;;  %v5159_v42 = vcombine.low %v6580_v34, %v7531_v39  ;;  %v5410_v54 = vrot.slane %v5394_v33, 9  ;;  %v2918_v62 = vrot.slane %v2916_v15, 4  ;;  %v2919_v63 = vrot.slane %v5344_v8, 5  ;;  %v6584_v3 = vld [vmem:[%s6994_s4 + $0x3c] sm:$0xf] }
  0xf4   : > { %5945 = vmatpush3.bf16.msra.mxu1 %v1472_v10  ;;  %5916 = vmatprep.mubr.msk.bf16.mxu1 %vm704_vm4, %v5158_v27  ;;  %v5409_v27 = vrot.slane %v5393_v60, 9  ;;  %v2913_v7 = vsel %vm7252_vm7, %v2911_v51, %v2912_v47  ;;  %v2923_v9 = vrot.slane %v5346_v55, 5  ;;  %v7556_v49 = vld [vmem:[%s6994_s4 + $0x40] sm:$0xf]  ;;  %v5411_v22 = vrot.slane %v5395_v25, 9  ;;  %v6537_v25 = vld [vmem:[%s6994_s4 + $0x24] sm:$0xff]  }
  0xf5   : > { %6068 = vmatprep.mubr.msk.bf16.mxu0 %vm704_vm4, %v5422_v61  ;;  %6443 = vmatprep.subr.msk.bf16.mxu1 %vm753_vm0, %v7509_v26  ;;  %v2917_v10 = vsel %vm7252_vm7, %v5410_v54, %v2916_v15  ;;  %v2920_v61 = vsel %vm7252_vm7, %v2918_v62, %v2919_v63  ;;  %v5161_v2 = vcombine.low %v6584_v3, %v7556_v49  ;;  %v2926_v8 = vrot.slane %v5347_v16, 5  ;;  %v1211_v51 = vld [vmem:[%s6994_s4 + $0xc] sm:$0xe]  ;;  %v7585_v47 = vld [vmem:[%s6994_s4 + $0x8] sm:$0x1] }
  0xf6   : > { %v2910_v46 = vsel %vm7252_vm7, %v5409_v27, %v2909_v21  ;;  %v5162_v21 = vcombine.low %v7160_v11, %v7168_v35  ;;  %v5426_v13 = vcombine.low %v2917_v10, %v2920_v61  ;;  %v2925_v60 = vrot.slane %v2923_v9, 4  ;;  %v1212_v63 = vld [vmem:[%s6994_s4 + $0x18] sm:$0xe]  ;;  %v1213_v61 = vld [vmem:[%s6994_s4 + $0x24] sm:$0xe] }
  0xf7   : > { %v5425_v31 = vcombine.low %v2910_v46, %v2913_v7  ;;  %v2300_v15 = vshll.u32 %v7465_v56, 16  ;;  %v2304_v33 = vshrl.u32 %v7465_v56, 16  ;;  %v2924_v11 = vsel %vm7252_vm7, %v5411_v22, %v2923_v9  ;;  %v1214_v16 = vld [vmem:[%s6994_s4 + $0x30] sm:$0xe] }
  0xf8   : > { %v2927_v35 = vsel %vm7252_vm7, %v2925_v60, %v2926_v8  ;;  %v5164_v18 = vcombine.low %v7229_v17, %v7232_v23  ;;  %v1270_v27 = vrot.slane %v7489_v41, 5  ;;  %v1210_v23 = vld [vmem:[%s6994_s4] sm:$0xe]  ;;  %v5165_v54 = vcombine.low %v7247_v59, %v7262_v28 }
  0xf9   : > { %v7571_v34 = vrot.slane %v2300_v15, 5  ;;  %v2306_v56 = vrot.slane %v2304_v33, 4  ;;  %v1263_v62 = vrot.slane %v7461_v53, 5  ;;  %v4112_v46 = vsel %vm753_vm0, %v7320_v44, 0  ;;  %v1215_v44 = vld [vmem:[%s6994_s4 + $0x3c] sm:$0xe] }
  0xfa   : > { %v5189_v7 = vrot.slane %v1211_v51, 9  ;;  %v1272_v9 = vrot.slane %v1270_v27, 4  ;;  %v1277_v10 = vrot.slane %v7500_v50, 5  ;;  %v5166_v3 = vcombine.low %v7282_v58, %v7285_v48  ;;  %v6539_v53 = vld [vmem:[%s6994_s4 + $0x30] sm:$0xff]   ;;  %v7618_v58 = vld [vmem:[#allocation5 + $0x10] sm:$0x3] }
  0xfb   : > { %5917 = vmatmul.mubr.msk.bf16.gmra.mrb[4].mxu1 %vm704_vm4, %v5159_v42  ;;  %6069 = vmatmul.mubr.msk.bf16.gmra.mrb[20].mxu0 %vm704_vm4, %v5423_v24  ;;  %8907 = vst [vmem:[#allocation13_spill] sm:$0xff] %v7571_v34  ;;  %v5163_v42 = vcombine.low %v7193_v20, %v7199_v29  ;;  %v5427_v24 = vcombine.low %v2924_v11, %v2927_v35  ;;  %v1266_v20 = vrot.slane %v7585_v47, 5  ;;  %v6587_v29 = vld [vmem:[%s6994_s4 + $0x14] sm:$0x1]  ;;  %v1284_v28 = vrot.slane %v7531_v39, 5 }
  0xfc   : > { %5920 = vmatprep.mubr.msk.bf16.mxu1 %vm704_vm4, %v5160_v45  ;;  %6072 = vmatprep.mubr.msk.bf16.mxu0 %vm704_vm4, %v5424_v5  ;;  %v6535_v45 = vld [vmem:[%s6994_s4 + $0x18] sm:$0xff]   ;;  %v2307_v55 = vor.u32 %v2306_v56, %v7571_v34  ;;  %v2310_v5 = vshll.u32 %v7468_v1, 16  ;;  %v1273_v17 = vrot.slane %v6587_v29, 5  ;;  %v5168_v59 = vcombine.low %v7332_v43, %v7346_v32  ;;  %v6588_v33 = vld [vmem:[%s6994_s4 + $0x20] sm:$0x1] }
  0xfd   : > { %v1265_v60 = vrot.slane %v1263_v62, 4  ;;  %v1298_v39 = vrot.slane %v7556_v49, 5  ;;  %v7627_v8 = vsel %vm7252_vm7, %v5189_v7, %v1270_v27  ;;  %v1280_v11 = vrot.slane %v6588_v33, 5  ;;  %v6589_v56 = vld [vmem:[%s6994_s4 + $0x2c] sm:$0x1] }
  0xfe   : > { %v7592_v1 = vrot.slane %v2307_v55, 4  ;;  %v7594_v41 = vrot.slane %v2310_v5, 5  ;;  %v7631_v15 = vsel %vm7252_vm7, %v1272_v9, %v1273_v17  ;;  %v5191_v49 = vrot.slane %v1213_v61, 9  ;;  %v1216_v27 = vld [vmem:[%s6994_s4 + $0x48] sm:$0xe]  ;;  %v6541_v17 = vld [vmem:[%s6994_s4 + $0x3c] sm:$0xff]  }
  0xff   : > { %v1286_v35 = vrot.slane %v1284_v28, 4  ;;  %v5193_v5 = vrot.slane %v1215_v44, 9  ;;  %v6591_v51 = vld [vmem:[%s6994_s4 + $0x4c] sm:$0xf]  ;;  %v7658_v9 = vsel %vm7252_vm7, %v1265_v60, %v1266_v20  ;;  %v5194_v44 = vrot.slane %v1216_v27, 9 }
 0x100   : > { %8908 = vst [vmem:[#allocation14_spill] sm:$0xff] %v7592_v1  ;;  %8909 = vst [vmem:[#allocation15_spill] sm:$0xff] %v7594_v41  ;;  %v1305_v29 = vrot.slane %v6591_v51, 5  ;;  %v7675_v47 = vsel %vm7252_vm7, %v5191_v49, %v1284_v28  ;;  %v6593_v60 = vld [vmem:[%s6994_s4 + $0x50] sm:$0x1]  ;;  %vm4975_vm8 = vcmask 27648  }
 0x101   : > { %v6595_v51 = vld [vmem:[%s6994_s4 + $0x5c] sm:$0x1]  ;;  %v5510_v43 = vld [vmem:[%s6994_s4 + $0x20] sm:$0x1]  ;;  %v5512_v32 = vld [vmem:[%s6994_s4 + $0x28] sm:$0xf] }
 0x102   : > { %v1307_v28 = vrot.slane %v1305_v29, 4  ;;  %v7935_v34 = vld [vmem:[%s6994_s4 + $0x64] sm:$0xf] }
 0x103   : > { %5921 = vmatmul.mubr.msk.bf16.gmra.mrb[8].mxu1 %vm704_vm4, %v5161_v2  ;;  %6073 = vmatmul.mubr.msk.bf16.gmra.mrb[24].mxu0 %vm704_vm4, %v5425_v31  ;;  %v5167_v2 = vcombine.low %v7306_v12, %v7316_v38  ;;  %v5188_v31 = vrot.slane %v1210_v23, 9  ;;  %v5511_v12 = vld [vmem:[%s6994_s4 + $0x24] sm:$0xf]  ;;  %8922 = vst [vmem:[#allocation22_spill] sm:$0xff] %v7935_v34 }
 0x104   : > { %5924 = vmatprep.mubr.msk.bf16.mxu1 %vm704_vm4, %v5162_v21  ;;  %6076 = vmatprep.mubr.msk.bf16.mxu0 %vm704_vm4, %v5426_v13  ;;  %v5190_v21 = vrot.slane %v1212_v63, 9  ;;  %v1291_v13 = vrot.slane %v7536_v57, 5  ;;  %v1279_v57 = vrot.slane %v1277_v10, 4  ;;  %v1300_v63 = vrot.slane %v1298_v39, 4 }
 0x105   : > { %v7645_v23 = vsel %vm7252_vm7, %v5188_v31, %v1263_v62 }
 0x106   : > { %v7668_v61 = vsel %vm7252_vm7, %v1279_v57, %v1280_v11  ;;  %v1308_v57 = vrot.slane %v6593_v60, 5  ;;  %v3657_v60 = vshll.u32 %v5511_v12, 16 }
 0x108   : > { %v3659_v50 = vrot.slane %v3657_v60, 5  ;;  %v7792_v60 = vld [vmem:[%s6994_s4 + $0x38] sm:$0x1] }
 0x109   : > { %8913 = vst [vmem:[#allocation17_spill] sm:$0xff] %v7792_v60 }
 0x10b   : > { %5925 = vmatmul.mubr.msk.bf16.gmra.mrb[12].mxu1 %vm704_vm4, %v5163_v42  ;;  %6077 = vmatmul.mubr.msk.bf16.gmra.mrb[28].mxu0 %vm704_vm4, %v5427_v24  ;;  %v1287_v42 = vrot.slane %v6589_v56, 5  ;;  %v5192_v24 = vrot.slane %v1214_v16, 9  ;;  %v1217_v16 = vld [vmem:[%s6994_s4 + $0x54] sm:$0xe] }
 0x10c   : > { %5928 = vmatprep.mubr.msk.bf16.mxu1 %vm704_vm4, %v5164_v18  ;;  %6082 = vmatprep.mubr.msk.bf16.mxu0 %vm704_vm4, %v6535_v45  ;;  %v1293_v18 = vrot.slane %v1291_v13, 4  ;;  %v6590_v45 = vld [vmem:[%s6994_s4 + $0x38] sm:$0x1] }
 0x10d   : > { %v1294_v55 = vrot.slane %v6590_v45, 5  ;;  %v7679_v20 = vsel %vm7252_vm7, %v1286_v35, %v1287_v42  ;;  %v3663_v45 = vshll.u32 %v5512_v32, 16 }
 0x10f   : > { %v7688_v31 = vsel %vm7252_vm7, %v1293_v18, %v1294_v55  ;;  %v7717_v55 = vsel %vm7252_vm7, %v5194_v44, %v1305_v29  ;;  %v1315_v29 = vrot.slane %v6595_v51, 5  ;;  %v1219_v51 = vld [vmem:[%s6994_s4 + $0x6c] sm:$0xe]  ;;  %v6547_v18 = vld [vmem:[%s6994_s4 + $0x60] sm:$0xff]  }
 0x113   : > { %5929 = vmatmul.mubr.msk.bf16.gmra.mrb[16].mxu1 %vm704_vm4, %v5165_v54  ;;  %6083 = vmatmul.mubr.msk.bf16.vlgmr.msra.gmra.mrb[0].mxu0 %vm704_vm4, %v6537_v25  ;;  %v7649_v54 = vsel %vm753_vm0, %v7509_v26, 0  ;;  %v7664_v26 = vsel %vm7252_vm7, %v5190_v21, %v1277_v10  ;;  %v5508_v25 = vld [vmem:[%s6994_s4 + $0x18] sm:$0xf]  ;;  %v7683_v10 = vsel %vm7252_vm7, %v5192_v24, %v1291_v13  ;;  %v7692_v21 = vsel %vm7252_vm7, %v5193_v5, %v1298_v39  ;;  %v7704_v39 = vld [vmem:[%s6994_s4 + $0x60] sm:$0xe] }
 0x114   : > { %6115 = vmatpush3.bf16.msra.mxu0 %v4112_v46  ;;  %5932 = vmatprep.mubr.msk.bf16.mxu1 %vm704_vm4, %v5166_v3  ;;  %v6592_v46 = vld [vmem:[%s6994_s4 + $0x44] sm:$0x1]  ;;  %v6543_v3 = vld [vmem:[%s6994_s4 + $0x48] sm:$0xff]   ;;  %v5195_v13 = vrot.slane %v1217_v16, 9  ;;  %v3630_v11 = vshrl.u32 %v5508_v25, 16  ;;  %v3633_v49 = vshll.u32 %v5508_v25, 16  ;;  %v8925_v4 = vcombine.low %v7683_v10, %v7688_v31 }
 0x115   : > { %6086 = vmatprep.mubr.msk.bf16.mxu0 %vm704_vm4, %v6539_v53  ;;  %v1301_v7 = vrot.slane %v6592_v46, 5  ;;  %6449 = vmatprep.subr.msk.bf16.mxu0 %vm753_vm0, %v7618_v58  ;;  %v5509_v53 = vld [vmem:[%s6994_s4 + $0x1c] sm:$0xf]  ;;  %v6594_v5 = vld [vmem:[%s6994_s4 + $0x58] sm:$0xf] }
 0x116   : > { %v3639_v42 = vshll.u32 %v5509_v53, 16  ;;  %v3643_v24 = vshrl.u32 %v5509_v53, 16  ;;  %v1312_v27 = vrot.slane %v6594_v5, 5  ;;  %v6545_v46 = vld [vmem:[%s6994_s4 + $0x54] sm:$0xff]   ;;  %v3632_v16 = vrot.slane %v3630_v11, 4 }
 0x117   : > { %v7697_v33 = vsel %vm7252_vm7, %v1300_v63, %v1301_v7  ;;  %v5196_v7 = vrot.slane %v7704_v39, 9  ;;  %v3635_v25 = vrot.slane %v3633_v49, 5  ;;  %v6598_v39 = vld [vmem:[%s6994_s4 + $0x68] sm:$0x1] }
 0x118   : > { %v7743_v44 = vrot.slane %v3639_v42, 5  ;;  %v3645_v53 = vrot.slane %v3643_v24, 4  ;;  %v1314_v5 = vrot.slane %v1312_v27, 4  ;;  %v1322_v11 = vrot.slane %v6598_v39, 5  ;;  %v6599_v39 = vld [vmem:[%s6994_s4 + $0x74] sm:$0x1] }
 0x119   : > { %v3636_v35 = vor.u32 %v3635_v25, %v3632_v16  ;;  %v3649_v42 = vshll.u32 %v5510_v43, 16  ;;  %v7757_v16 = vrot.slane %v3663_v45, 5  ;;  %v8911_v25 = vcombine.low %v7381_v37, %v7394_v19  ;;  %v7773_v45 = vld [vmem:[%s6994_s4 + $0x2c] sm:$0x1] }
 0x11a   : > { %8912 = vst [vmem:[#allocation16_spill] sm:$0xff] %v7773_v45 }
 0x11b   : > { %5933 = vmatmul.mubr.msk.bf16.gmra.mrb[20].mxu1 %vm704_vm4, %v5167_v2  ;;  %6087 = vmatmul.mubr.msk.bf16.gmra.mrb[4].mxu0 %vm704_vm4, %v6541_v17  ;;  %v7730_v2 = vsel %vm7252_vm7, %v1307_v28, %v1308_v57  ;;  %v6596_v17 = vld [vmem:[%s6994_s4 + $0x64] sm:$0xf]  ;;  %v3654_v28 = vshrl.u32 %v5511_v12, 16  ;;  %v5515_v57 = vld [vmem:[%s6994_s4 + $0x34] sm:$0xf]  ;;  %v3646_v12 = vor.u32 %v3645_v53, %v7743_v44 }
 0x11c   : > { %5936 = vmatprep.mubr.msk.bf16.mxu1 %vm704_vm4, %v5168_v59  ;;  %6090 = vmatprep.mubr.msk.bf16.mxu0 %vm704_vm4, %v6543_v3  ;;  %v1319_v63 = vrot.slane %v6596_v17, 5  ;;  %v7739_v59 = vsel %vm7252_vm7, %v5195_v13, %v1312_v27  ;;  %v5514_v3 = vld [vmem:[%s6994_s4 + $0x30] sm:$0xf]  ;;  %v3667_v13 = vshrl.u32 %v5512_v32, 16  ;;  %v3687_v22 = vshll.u32 %v5515_v57, 16 }
 0x11d   : > { %v6597_v17 = vld [vmem:[%s6994_s4 + $0x70] sm:$0xf]  ;;  %v3678_v62 = vshrl.u32 %v5514_v3, 16  ;;  %v3681_v49 = vshll.u32 %v5514_v3, 16  ;;  %v3691_v24 = vshrl.u32 %v5515_v57, 16  ;;  %v5197_v27 = vrot.slane %v1219_v51, 9 }
 0x11e   : > { %v1326_v38 = vrot.slane %v6597_v17, 5  ;;  %v1321_v56 = vrot.slane %v1319_v63, 4  ;;  %v3656_v48 = vrot.slane %v3654_v28, 4  ;;  %v8910_v32 = vcombine.low %v7363_v52, %v7366_v0  ;;  %v6600_v51 = vld [vmem:[%s6994_s4 + $0x7c] sm:$0xf] }
 0x11f   : > { %v1329_v3 = vrot.slane %v6599_v39, 5  ;;  %v3669_v43 = vrot.slane %v3667_v13, 4  ;;  %v7766_v52 = vsel %vm7252_vm7, %v1314_v5, %v1315_v29  ;;  %v7770_v0 = vsel %vm7252_vm7, %v5196_v7, %v1319_v63  ;;  %v1220_v5 = vld [vmem:[%s6994_s4 + $0x78] sm:$0xe]  ;;  %v5517_v39 = vld [vmem:[%s6994_s4 + $0x3c] sm:$0xf] }
 0x120   : > { %v1328_v17 = vrot.slane %v1326_v38, 4  ;;  %v3683_v37 = vrot.slane %v3681_v49, 5  ;;  %v7777_v19 = vsel %vm7252_vm7, %v1321_v56, %v1322_v11  ;;  %v7781_v53 = vrot.slane %v3687_v22, 5  ;;  %v6549_v56 = vld [vmem:[%s6994_s4 + $0x6c] sm:$0xff]  }
 0x121   : > { %v3693_v29 = vrot.slane %v3691_v24, 4  ;;  %v7783_v28 = vrot.slane %v3646_v12, 4  ;;  %v7785_v63 = vrot.slane %v3649_v42, 5  ;;  %v7789_v7 = vsel %vm7252_vm7, %v5197_v27, %v1326_v38  ;;  %v6550_v38 = vld [vmem:[%s6994_s4 + $0x78] sm:$0xff]   ;;  %v1221_v27 = vld [vmem:[%s6994_s4 + $0x84] sm:$0xe] }
 0x122   : > { %v3670_v22 = vor.u32 %v3669_v43, %v7757_v16  ;;  %v3673_v57 = vshll.u32 %v7773_v45, 16  ;;  %v1333_v13 = vrot.slane %v6600_v51, 5  ;;  %v3697_v12 = vshll.u32 %v7792_v60, 16  ;;  %v6602_v51 = vld [vmem:[%s6994_s4 + $0x80] sm:$0x1] }
 0x123   : > { %5937 = vmatmul.mubr.msk.bf16.gmra.mrb[24].mxu1 %vm704_vm4, %v8910_v32  ;;  %6091 = vmatmul.mubr.msk.bf16.gmra.mrb[8].mxu0 %vm704_vm4, %v6545_v46  ;;  %v3680_v46 = vrot.slane %v3678_v62, 4  ;;  %v3660_v62 = vor.u32 %v3659_v50, %v3656_v48  ;;  %v3694_v24 = vor.u32 %v3693_v29, %v7781_v53  ;;  %v6601_v32 = vld [vmem:[%s6994_s4 + $0x88] sm:$0xf]  ;;  %v6603_v43 = vld [vmem:[%s6994_s4 + $0x8c] sm:$0x1] }
 0x124   : > { %5940 = vmatprep.mubr.msk.bf16.mxu1 %vm704_vm4, %v8911_v25  ;;  %6094 = vmatprep.mubr.msk.bf16.mxu0 %vm704_vm4, %v6547_v18  ;;  %v7779_v18 = vrot.slane %v3636_v35, 4  ;;  %v7797_v35 = vsel %vm7252_vm7, %v1328_v17, %v1329_v3  ;;  %v1340_v17 = vrot.slane %v6601_v32, 5  ;;  %v3652_v3 = vsel %vm7032_vm3, %v7783_v28, %v7785_v63  ;;  %v7832_v28 = vld [vmem:[%s6994_s4 + $0x40] sm:$0xf] }
 0x125   : > { %v3684_v49 = vor.u32 %v3683_v37, %v3680_v46  ;;  %v3661_v25 = vrot.slane %v3660_v62, 4  ;;  %v8914_v46 = vcombine.low %v7413_v40, %v7419_v14  ;;  %v3671_v37 = vrot.slane %v3670_v22, 4  ;;  %8915 = vst [vmem:[#allocation18_spill] sm:$0xff] %v7832_v28 }
 0x126   : > { %v3642_v42 = vsel %vm7032_vm3, %v7779_v18, %v7743_v44  ;;  %v5198_v44 = vrot.slane %v1220_v5, 9  ;;  %v3675_v18 = vrot.slane %v3673_v57, 5  ;;  %v1335_v29 = vrot.slane %v1333_v13, 4  ;;  %v5520_v5 = vld [vmem:[%s6994_s4 + $0x48] sm:$0xf] }
 0x127   : > { %v1336_v32 = vrot.slane %v6602_v51, 5  ;;  %v8916_v63 = vcombine.low %v7645_v23, %v7658_v9  ;;  %v3685_v40 = vrot.slane %v3684_v49, 4  ;;  %v5199_v62 = vrot.slane %v1221_v27, 9  ;;  %v7851_v27 = vld [vmem:[%s6994_s4 + $0x4c] sm:$0xf] }
 0x128   : > { %v3705_v22 = vshll.u32 %v5517_v39, 16  ;;  %v3695_v57 = vrot.slane %v3694_v24, 4  ;;  %v1342_v51 = vrot.slane %v1340_v17, 4  ;;  %v1343_v11 = vrot.slane %v6603_v43, 5  ;;  %v6551_v24 = vld [vmem:[%s6994_s4 + $0x84] sm:$0xff]  }
 0x129   : > { %v3666_v23 = vsel %vm7032_vm3, %v3661_v25, %v7757_v16  ;;  %v7846_v9 = vsel %vm7252_vm7, %v5198_v44, %v1333_v13  ;;  %v3715_v49 = vshrl.u32 %v7832_v28, 16  ;;  %v3726_v43 = vshrl.u32 %v5520_v5, 16  ;;  %v7868_v44 = vld [vmem:[%s6994_s4 + $0x44] sm:$0x1] }
 0x12a   : > { %v3729_v16 = vshll.u32 %v5520_v5, 16  ;;  %v3690_v13 = vsel %vm7032_vm3, %v3685_v40, %v7781_v53  ;;  %v7865_v25 = vsel %vm7252_vm7, %v5199_v62, %v1340_v17  ;;  %8917 = vst [vmem:[#allocation19_spill] sm:$0xff] %v7868_v44  ;;  %v3707_v48 = vrot.slane %v3705_v22, 5  ;;  %v5523_v22 = vld [vmem:[%s6994_s4 + $0x54] sm:$0xf] }
 0x12b   : > { %5941 = vmatmul.mubr.msk.bf16.gmra.mrb[28].mxu1 %vm704_vm4, %v8914_v46  ;;  %6095 = vmatmul.mubr.msk.bf16.gmra.mrb[12].mxu0 %vm704_vm4, %v6549_v56  ;;  %v3702_v56 = vshrl.u32 %v5517_v39, 16  ;;  %v3699_v46 = vrot.slane %v3697_v12, 5  ;;  %v3676_v12 = vsel %vm7032_vm3, %v3671_v37, %v3675_v18  ;;  %v7858_v39 = vsel %vm7252_vm7, %v1335_v29, %v1336_v32  ;;  %v6552_v37 = vld [vmem:[%s6994_s4 + $0x90] sm:$0xff]  }
 0x12c   : > { %5946 = vmatprep.mubr.msk.bf16.mxu1 %vm704_vm4, %v8916_v63  ;;  %6098 = vmatprep.mubr.msk.bf16.mxu0 %vm704_vm4, %v6550_v38  ;;  %v3711_v38 = vshll.u32 %v7832_v28, 16  ;;  %v7875_v29 = vsel %vm7252_vm7, %v1342_v51, %v1343_v11  ;;  %v3735_v32 = vshll.u32 %v7851_v27, 16  ;;  %v3739_v53 = vshrl.u32 %v7851_v27, 16  ;;  %v1223_v11 = vld [vmem:[%s6994_s4 + $0x9c] sm:$0xe] }
 0x12d   : > { %v3704_v63 = vrot.slane %v3702_v56, 4  ;;  %v3700_v18 = vsel %vm7032_vm3, %v3695_v57, %v3699_v46  ;;  %v7879_v40 = vcombine.low %v3642_v42, %v3652_v3  ;;  %v7881_v17 = vcombine.low %v3666_v23, %v3676_v12  ;;  %v7895_v46 = vld [vmem:[%s6994_s4 + $0x58] sm:$0xf] }
 0x12e   : > { %v7883_v62 = vrot.slane %v3711_v38, 5  ;;  %v3717_v56 = vrot.slane %v3715_v49, 4  ;;  %v8918_v5 = vcombine.low %v7627_v8, %v7631_v15  ;;  %v3721_v42 = vshll.u32 %v7868_v44, 16  ;;  %8919 = vst [vmem:[#allocation20_spill] sm:$0xff] %v7895_v46  ;;  %v1222_v49 = vld [vmem:[%s6994_s4 + $0x90] sm:$0xe] }
 0x12f   : > { %v3728_v3 = vrot.slane %v3726_v43, 4  ;;  %v3731_v57 = vrot.slane %v3729_v16, 5  ;;  %v8920_v51 = vcombine.low %v7664_v26, %v7668_v61  ;;  %v7904_v8 = vsel %vm753_vm0, %v7618_v58, 0  ;;  %v5526_v58 = vld [vmem:[%s6994_s4 + $0x60] sm:$0xf] }
 0x130   : > { %v7906_v15 = vcombine.low %v3690_v13, %v3700_v18  ;;  %v3708_v38 = vor.u32 %v3707_v48, %v3704_v63  ;;  %v3741_v26 = vrot.slane %v3739_v53, 4  ;;  %v3750_v61 = vshrl.u32 %v5523_v22, 16  ;;  %v6604_v12 = vld [vmem:[#allocation5 + $0x8] sm:$0x3]  ;;  %v6605_v48 = vld [vmem:[%s6994_s4 + $0x94] sm:$0xf] }
 0x131   : > { %v3718_v43 = vor.u32 %v3717_v56, %v7883_v62  ;;  %v1347_v16 = vrot.slane %v6605_v48, 5  ;;  %v7919_v13 = vld [vmem:[%s6994_s4 + $0x50] sm:$0x1]  ;;  %v3759_v63 = vshll.u32 %v7895_v46, 16  ;;  %v6553_v18 = vld [vmem:[%s6994_s4 + $0x9c] sm:$0xff]   ;;  %v7925_v53 = vrot.slane %v3721_v42, 5 }
 0x132   : > { %8921 = vst [vmem:[#allocation21_spill] sm:$0xff] %v7919_v13  ;;  %v7928_v56 = vrot.slane %v3708_v38, 4  ;;  %v6607_v23 = vld [vmem:[%s6994_s4 + $0x98] sm:$0x1]  ;;  %v3774_v50 = vshrl.u32 %v5526_v58, 16  ;;  %v3777_v44 = vshll.u32 %v5526_v58, 16 }
 0x133   : > { %5947 = vmatmul.mubr.msk.bf16.vlgmr.msra.gmra.mrb[0].mxu1 %vm704_vm4, %v8918_v5  ;;  %6099 = vmatmul.mubr.msk.bf16.gmra.mrb[16].mxu0 %vm704_vm4, %v6551_v24  ;;  %v3753_v24 = vshll.u32 %v5523_v22, 16  ;;  %v5200_v22 = vrot.slane %v1222_v49, 9  ;;  %v3732_v5 = vor.u32 %v3731_v57, %v3728_v3  ;;  %v1350_v48 = vrot.slane %v6607_v23, 5  ;;  %v7938_v49 = vld [vmem:[%s6994_s4 + $0x5c] sm:$0x1] }
 0x134   : > { %5979 = vmatpush3.bf16.msra.mxu1 %v7649_v54  ;;  %5950 = vmatprep.mubr.msk.bf16.mxu1 %vm704_vm4, %v8920_v51  ;;  %v7912_v54 = vrot.slane %v3735_v32, 5  ;;  %v6554_v32 = vld [vmem:[%s6994_s4 + $0xa8] sm:$0xff]   ;;  %v6606_v51 = vld [vmem:[%s6994_s4 + $0xa0] sm:$0xf]  ;;  %v3745_v60 = vshll.u32 %v7919_v13, 16  ;;  %v3752_v45 = vrot.slane %v3750_v61, 4  ;;  %v8924_v23 = vcombine.low %v7675_v47, %v7679_v20 }
 0x135   : > { %6102 = vmatprep.mubr.msk.bf16.mxu0 %vm704_vm4, %v6552_v37  ;;  %6445 = vmatprep.subr.msk.bf16.mxu1 %vm753_vm0, %v6604_v12  ;;  %v3763_v37 = vshrl.u32 %v7895_v46, 16  ;;  %v1354_v12 = vrot.slane %v6606_v51, 5  ;;  %v3755_v42 = vrot.slane %v3753_v24, 5  ;;  %v3719_v3 = vrot.slane %v3718_v43, 4  ;;  %8923 = vst [vmem:[#allocation23_spill] sm:$0xff] %v7938_v49 }
 0x136   : > { %v3742_v28 = vor.u32 %v3741_v26, %v7912_v54  ;;  %v1349_v57 = vrot.slane %v1347_v16, 4  ;;  %v7940_v38 = vrot.slane %v3759_v63, 5  ;;  %v3733_v26 = vrot.slane %v3732_v5, 4  ;;  %v6608_v24 = vld [vmem:[%s6994_s4 + $0xa4] sm:$0x1] }
 0x137   : > { %v3765_v51 = vrot.slane %v3763_v37, 4  ;;  %v5201_v58 = vrot.slane %v1223_v11, 9  ;;  %v1356_v61 = vrot.slane %v1354_v12, 4  ;;  %v1357_v43 = vrot.slane %v6608_v24, 5 }
 0x138   : > { %v3776_v47 = vrot.slane %v3774_v50, 4  ;;  %v3779_v20 = vrot.slane %v3777_v44, 5  ;;  %v3783_v63 = vshll.u32 %v7935_v34, 16  ;;  %v3787_v37 = vshrl.u32 %v7935_v34, 16  ;;  %v1224_v50 = vld [vmem:[%s6994_s4 + $0xa8] sm:$0xe] }
 0x139   : > { %v3743_v11 = vrot.slane %v3742_v28, 4  ;;  %v3756_v5 = vor.u32 %v3755_v42, %v3752_v45  ;;  %v7962_v10 = vsel %vm7252_vm7, %v5200_v22, %v1347_v16  ;;  %v3766_v31 = vor.u32 %v3765_v51, %v7940_v38  ;;  %v6609_v44 = vld [vmem:[%s6994_s4 + $0xac] sm:$0xf]  ;;  %v7983_v22 = vld [vmem:[%s6994_s4 + $0x68] sm:$0x1] }
 0x13a   : > { %v1361_v28 = vrot.slane %v6609_v44, 5  ;;  %v3724_v45 = vsel %vm7032_vm3, %v3719_v3, %v7925_v53  ;;  %v7980_v16 = vsel %vm7252_vm7, %v5201_v58, %v1354_v12  ;;  %8927 = vst [vmem:[#allocation25_spill] sm:$0xff] %v7983_v22  ;;  %v7988_v42 = vsel %vm7252_vm7, %v1356_v61, %v1357_v43  ;;  %v1225_v58 = vld [vmem:[%s6994_s4 + $0xb4] sm:$0xe]  ;;  %v6610_v61 = vld [vmem:[%s6994_s4 + $0xb0] sm:$0x1] }
 0x13b   : > { %5951 = vmatmul.mubr.msk.bf16.gmra.mrb[4].mxu1 %vm704_vm4, %v8924_v23  ;;  %6103 = vmatmul.mubr.msk.bf16.gmra.mrb[20].mxu0 %vm704_vm4, %v6553_v18  ;;  %v3747_v18 = vrot.slane %v3745_v60, 5  ;;  %v3769_v23 = vshll.u32 %v7938_v49, 16  ;;  %v7973_v60 = vsel %vm7252_vm7, %v1349_v57, %v1350_v48  ;;  %8926 = vst [vmem:[#allocation24_spill] sm:$0xff] %v7980_v16  ;;  %8928 = vst [vmem:[#allocation26_spill] sm:$0xff] %v7988_v42  ;;  %v7990_v3 = vrot.slane %v3783_v63, 5 }
 0x13c   : > { %5954 = vmatprep.mubr.msk.bf16.mxu1 %vm704_vm4, %v8925_v4  ;;  %6106 = vmatprep.mubr.msk.bf16.mxu0 %vm704_vm4, %v6554_v32  ;;  %v3714_v4 = vsel %vm7032_vm3, %v7928_v56, %v7883_v62  ;;  %v6555_v32 = vld [vmem:[%s6994_s4 + $0xb4] sm:$0xff]   ;;  %v3738_v62 = vsel %vm7032_vm3, %v3733_v26, %v7912_v54  ;;  %v6556_v56 = vld [vmem:[%s6994_s4 + $0xc0] sm:$0xff]   ;;  %v3780_v53 = vor.u32 %v3779_v20, %v3776_v47  ;;  %v3789_v48 = vrot.slane %v3787_v37, 4  ;;  %v5529_v57 = vld [vmem:[%s6994_s4 + $0x6c] sm:$0xf] }
 0x13d   : > { %v3748_v54 = vsel %vm7032_vm3, %v3743_v11, %v3747_v18  ;;  %v7995_v51 = vrot.slane %v3756_v5, 4  ;;  %v7997_v26 = vrot.slane %v3769_v23, 5  ;;  %v5202_v12 = vrot.slane %v1224_v50, 9  ;;  %v6557_v50 = vld [vmem:[%s6994_s4 + $0xcc] sm:$0xff]   ;;  %v8117_v34 = vld [vmem:[%s6994_s4 + $0x98] sm:$0x1] }
 0x13e   : > { %v8000_v24 = vrot.slane %v3766_v31, 4  ;;  %v1363_v44 = vrot.slane %v1361_v28, 4  ;;  %v1364_v43 = vrot.slane %v6610_v61, 5  ;;  %v3793_v47 = vshll.u32 %v7983_v22, 16  ;;  %v8023_v31 = vld [vmem:[%s6994_s4 + $0x70] sm:$0xf] }
 0x13f   : > { %v8929_v20 = vcombine.low %v7692_v21, %v7697_v33  ;;  %v8009_v63 = vcombine.low %v3714_v4, %v3724_v45  ;;  %v3798_v11 = vshrl.u32 %v5529_v57, 16  ;;  %v3801_v18 = vshll.u32 %v5529_v57, 16  ;;  %8931 = vst [vmem:[#allocation27_spill] sm:$0xff] %v8023_v31  ;;  %v8051_v57 = vld [vmem:[%s6994_s4 + $0x7c] sm:$0xf] }
 0x140   : > { %v8930_v5 = vcombine.low %v7717_v55, %v7730_v2  ;;  %v8018_v21 = vrot.slane %v3780_v53, 4  ;;  %v3790_v33 = vor.u32 %v3789_v48, %v7990_v3  ;;  %v5203_v23 = vrot.slane %v1225_v58, 9  ;;  %8932 = vst [vmem:[#allocation28_spill] sm:$0xff] %v8051_v57  ;;  %v8080_v48 = vld [vmem:[%s6994_s4 + $0x94] sm:$0xf] }
 0x141   : > { %v1368_v4 = vrot.slane %v7419_v14, 5  ;;  %v8036_v45 = vsel %vm7252_vm7, %v5202_v12, %v1361_v28  ;;  %v8047_v53 = vrot.slane %v3793_v47, 5  ;;  %v5535_v28 = vld [vmem:[%s6994_s4 + $0x84] sm:$0xf]  ;;  %v8056_v12 = vrot.slane %v3801_v18, 5  ;;  %8935 = vst [vmem:[#allocation31_spill] sm:$0xff] %v8080_v48 }
 0x142   : > { %v3807_v58 = vshll.u32 %v8023_v31, 16  ;;  %v3811_v61 = vshrl.u32 %v8023_v31, 16  ;;  %v8074_v18 = vld [vmem:[%s6994_s4 + $0x74] sm:$0x1]  ;;  %v3831_v14 = vshll.u32 %v8051_v57, 16  ;;  %v3835_v37 = vshrl.u32 %v8051_v57, 16 }
 0x143   : > { %5955 = vmatmul.mubr.msk.bf16.gmra.mrb[8].mxu1 %vm704_vm4, %v8929_v20  ;;  %6107 = vmatmul.mubr.msk.bf16.gmra.mrb[24].mxu0 %vm704_vm4, %v6555_v32  ;;  %v8026_v32 = vcombine.low %v3738_v62, %v3748_v54  ;;  %v8045_v62 = vsel %vm7252_vm7, %v1363_v44, %v1364_v43  ;;  %v8054_v54 = vrot.slane %v3798_v11, 4  ;;  %v8061_v20 = vld [vmem:[%s6994_s4 + $0x88] sm:$0xf]  ;;  %v8067_v43 = vrot.slane %v3790_v33, 4  ;;  %8934 = vst [vmem:[#allocation30_spill] sm:$0xff] %v8074_v18 }
 0x144   : > { %5958 = vmatprep.mubr.msk.bf16.mxu1 %vm704_vm4, %v8930_v5  ;;  %6110 = vmatprep.mubr.msk.bf16.mxu0 %vm704_vm4, %v6556_v56  ;;  %v5532_v56 = vld [vmem:[%s6994_s4 + $0x78] sm:$0xf]  ;;  %8933 = vst [vmem:[#allocation29_spill] sm:$0xff] %v8061_v20  ;;  %v8071_v47 = vsel %vm7252_vm7, %v5203_v23, %v1368_v4  ;;  %v1370_v11 = vrot.slane %v1368_v4, 4  ;;  %v5538_v5 = vld [vmem:[%s6994_s4 + $0x90] sm:$0xf]  ;;  %v8936_v4 = vcombine.low %v7739_v59, %v7766_v52 }
 0x145   : > { %v3822_v55 = vshrl.u32 %v5532_v56, 16  ;;  %v3825_v2 = vshll.u32 %v5532_v56, 16  ;;  %v3846_v44 = vshrl.u32 %v5535_v28, 16  ;;  %v3849_v33 = vshll.u32 %v5535_v28, 16  ;;  %v5541_v31 = vld [vmem:[%s6994_s4 + $0x9c] sm:$0xf] }
 0x146   : > { %v3855_v1 = vshll.u32 %v8061_v20, 16  ;;  %v3859_v23 = vshrl.u32 %v8061_v20, 16  ;;  %v3804_v56 = vor.u32 %v8056_v12, %v8054_v54  ;;  %v8091_v41 = vrot.slane %v3807_v58, 5  ;;  %v8104_v12 = vld [vmem:[%s6994_s4 + $0xa0] sm:$0xf] }
 0x147   : > { %v3813_v28 = vrot.slane %v3811_v61, 4  ;;  %v3817_v57 = vshll.u32 %v8074_v18, 16  ;;  %v8937_v20 = vcombine.low %v7770_v0, %v7777_v19  ;;  %v3870_v59 = vshrl.u32 %v5538_v5, 16  ;;  %8938 = vst [vmem:[#allocation32_spill] sm:$0xff] %v8104_v12  ;;  %v8107_v58 = vld [vmem:[%s6994_s4 + $0x80] sm:$0x1] }
 0x148   : > { %v3873_v52 = vshll.u32 %v5538_v5, 16  ;;  %v3883_v54 = vshrl.u32 %v8080_v48, 16  ;;  %v3824_v61 = vrot.slane %v3822_v55, 4  ;;  %v8109_v18 = vrot.slane %v3831_v14, 5  ;;  %v8112_v19 = vld [vmem:[%s6994_s4 + $0x8c] sm:$0x1] }
 0x149   : > { %v3837_v0 = vrot.slane %v3835_v37, 4  ;;  %v8114_v22 = vrot.slane %v3855_v1, 5  ;;  %v3861_v5 = vrot.slane %v3859_v23, 4  ;;  %v3894_v49 = vshrl.u32 %v5541_v31, 16 }
 0x14a   : > { %v3903_v42 = vshll.u32 %v8104_v12, 16  ;;  %v3907_v16 = vshrl.u32 %v8104_v12, 16  ;;  %v3872_v55 = vrot.slane %v3870_v59, 4  ;;  %v3885_v37 = vrot.slane %v3883_v54, 4 }
 0x14b   : > { %5959 = vmatmul.mubr.msk.bf16.gmra.mrb[12].mxu1 %vm704_vm4, %v8936_v4  ;;  %6111 = vmatmul.mubr.msk.bf16.gmra.mrb[28].mxu0 %vm704_vm4, %v6557_v50  ;;  %v3879_v50 = vshll.u32 %v8080_v48, 16  ;;  %v3827_v4 = vrot.slane %v3825_v2, 5  ;;  %v3897_v48 = vshll.u32 %v5541_v31, 16  ;;  %v3875_v2 = vrot.slane %v3873_v52, 5 }
 0x14c   : > { %5962 = vmatprep.mubr.msk.bf16.mxu1 %vm704_vm4, %v8937_v20  ;;  %6116 = vmatprep.mubr.msk.bf16.mxu0 %vm704_vm4, %v7879_v40  ;;  %v3848_v20 = vrot.slane %v3846_v44, 4  ;;  %v3851_v40 = vrot.slane %v3849_v33, 5  ;;  %v3814_v46 = vor.u32 %v3813_v28, %v8091_v41  ;;  %v3838_v1 = vor.u32 %v3837_v0, %v8109_v18 }
 0x14d   : > { %v8121_v14 = vrot.slane %v3879_v50, 5  ;;  %v3828_v44 = vor.u32 %v3827_v4, %v3824_v61  ;;  %v3841_v33 = vshll.u32 %v8107_v58, 16  ;;  %v3862_v31 = vor.u32 %v3861_v5, %v8114_v22  ;;  %v5544_v4 = vld [vmem:[%s6994_s4 + $0xa8] sm:$0xf] }
 0x14e   : > { %v3852_v23 = vor.u32 %v3851_v40, %v3848_v20  ;;  %v3865_v13 = vshll.u32 %v8112_v19, 16  ;;  %v3889_v12 = vshll.u32 %v8117_v34, 16  ;;  %v8939_v59 = vcombine.low %v7789_v7, %v7797_v35 }
 0x14f   : > { %v3896_v28 = vrot.slane %v3894_v49, 4  ;;  %v3899_v52 = vrot.slane %v3897_v48, 5  ;;  %v8135_v50 = vrot.slane %v3903_v42, 5  ;;  %v3909_v54 = vrot.slane %v3907_v16, 4  ;;  %v8150_v42 = vld [vmem:[%s6994_s4 + $0xa4] sm:$0x1] }
 0x150   : > { %v8940_v61 = vcombine.low %v7846_v9, %v7858_v39  ;;  %v8941_v7 = vrot.slane %v7424_v36, 5  ;;  %v3876_v49 = vor.u32 %v3875_v2, %v3872_v55  ;;  %v3886_v48 = vor.u32 %v3885_v37, %v8121_v14  ;;  %v8158_v2 = vld [vmem:[%s6994_s4 + $0xac] sm:$0xf] }
 0x151   : > { %v3815_v9 = vrot.slane %v3814_v46, 4  ;;  %v3829_v39 = vrot.slane %v3828_v44, 4  ;;  %v3843_v16 = vrot.slane %v3841_v33, 5  ;;  %v3839_v36 = vrot.slane %v3838_v1, 4 }
 0x152   : > { %v8146_v35 = vsel %vm7252_vm7, %v1370_v11, %v8941_v7  ;;  %v3853_v0 = vrot.slane %v3852_v23, 4  ;;  %v3863_v20 = vrot.slane %v3862_v31, 4  ;;  %v3867_v11 = vrot.slane %v3865_v13, 5 }
 0x153   : > { %5963 = vmatmul.mubr.msk.bf16.gmra.mrb[16].mxu1 %vm704_vm4, %v8939_v59  ;;  %6117 = vmatmul.mubr.msk.bf16.vlgmr.msra.gmra.mrb[0].mxu0 %vm704_vm4, %v7881_v17  ;;  %v3819_v17 = vrot.slane %v3817_v57, 5  ;;  %v3891_v40 = vrot.slane %v3889_v12, 5  ;;  %v3900_v57 = vor.u32 %v3899_v52, %v3896_v28  ;;  %v3910_v5 = vor.u32 %v3909_v54, %v8135_v50 }
 0x154   : > { %6149 = vmatpush3.bf16.msra.mxu0 %v7904_v8  ;;  %5966 = vmatprep.mubr.msk.bf16.mxu1 %vm704_vm4, %v8940_v61  ;;  %v3805_v8 = vrot.slane %v3804_v56, 4  ;;  %v3913_v55 = vshll.u32 %v8150_v42, 16  ;;  %v3877_v37 = vrot.slane %v3876_v49, 4  ;;  %v3887_v59 = vrot.slane %v3886_v48, 4 }
 0x155   : > { %6120 = vmatprep.mubr.msk.bf16.mxu0 %vm704_vm4, %v7906_v15  ;;  %v3918_v15 = vshrl.u32 %v5544_v4, 16  ;;  %v3921_v56 = vshll.u32 %v5544_v4, 16  ;;  %v3796_v46 = vsel %vm7032_vm3, %v8067_v43, %v8047_v53  ;;  %v3820_v12 = vsel %vm7032_vm3, %v3815_v9, %v3819_v17  ;;  %v5593_v9 = vld [vmem:[%s6994_s4 + $0x54] sm:$0xe] }
 0x156   : > { %v3810_v13 = vsel %vm7032_vm3, %v3805_v8, %v8091_v41  ;;  %v3834_v44 = vsel %vm7032_vm3, %v3829_v39, %v8109_v18  ;;  %v3844_v1 = vsel %vm7032_vm3, %v3839_v36, %v3843_v16  ;;  %v3858_v33 = vsel %vm7032_vm3, %v3853_v0, %v8114_v22 }
 0x157   : > { %v3927_v53 = vshll.u32 %v8158_v2, 16  ;;  %v3931_v43 = vshrl.u32 %v8158_v2, 16  ;;  %v8942_v41 = vcombine.low %v7865_v25, %v7875_v29  ;;  %v3868_v18 = vsel %vm7032_vm3, %v3863_v20, %v3867_v11 }
 0x158   : > { %v3901_v23 = vrot.slane %v3900_v57, 4  ;;  %v3911_v31 = vrot.slane %v3910_v5, 4  ;;  %v3915_v22 = vrot.slane %v3913_v55, 5  ;;  %v8943_v28 = vcombine.low %v7962_v10, %v7973_v60 }
 0x159   : > { %v3882_v25 = vsel %vm7032_vm3, %v3877_v37, %v8121_v14  ;;  %v3892_v29 = vsel %vm7032_vm3, %v3887_v59, %v3891_v40  ;;  %v8200_v52 = vrot.slane %v3921_v56, 5  ;;  %v8944_v10 = vsel %vm7032_vm3, %v8000_v24, %v7997_v26  ;;  %v8222_v26 = vld [vmem:[%s6994_s4 + $0xb0] sm:$0x1]  ;;  %v5547_v24 = vld [vmem:[%s6994_s4 + $0xb4] sm:$0xf] }
 0x15a   : > { %v8945_v60 = vsel %vm7032_vm3, %v7995_v51, %v7940_v38  ;;  %v5218_v14 = vcombine.low %v8036_v45, %v8045_v62  ;;  %v8946_v54 = vsel %vm7032_vm3, %v8018_v21, %v7990_v3  ;;  %v5219_v7 = vcombine.low %v8071_v47, %v8146_v35  ;;  %v8232_v45 = vld [vmem:[%s6994_s4 + $0xb8] sm:$0xf]  ;;  %v5592_v62 = vld [vmem:[%s6994_s4 + $0x48] sm:$0xe]  ;;  %v5595_v56 = vld [vmem:[%s6994_s4 + $0x6c] sm:$0xe] }
 0x15b   : > { %5967 = vmatmul.mubr.msk.bf16.gmra.mrb[20].mxu1 %vm704_vm4, %v8942_v41  ;;  %6121 = vmatmul.mubr.msk.bf16.gmra.mrb[4].mxu0 %vm704_vm4, %v8009_v63  ;;  %v8198_v63 = vrot.slane %v3918_v15, 4  ;;  %v5562_v61 = vcombine.low %v8946_v54, %v3796_v46  ;;  %v8225_v17 = vcombine.low %v3810_v13, %v3820_v12  ;;  %v8227_v38 = vcombine.low %v3834_v44, %v3844_v1  ;;  %v8947_v40 = vld [vmem:[#allocation21_spill] sm:$0xff]  ;;  %v8948_v59 = vld [vmem:[#allocation20_spill] sm:$0xff]  ;;  %v8950_v13 = vld [vmem:[#allocation26_spill] sm:$0xff] }
 0x15c   : > { %5970 = vmatprep.mubr.msk.bf16.mxu1 %vm704_vm4, %v8943_v28  ;;  %6124 = vmatprep.mubr.msk.bf16.mxu0 %vm704_vm4, %v8026_v32  ;;  %v5561_v32 = vcombine.low %v8945_v60, %v8944_v10  ;;  %v8229_v51 = vrot.slane %v3927_v53, 5  ;;  %v3933_v49 = vrot.slane %v3931_v43, 4  ;;  %v8235_v48 = vcombine.low %v3858_v33, %v3868_v18  ;;  %v8949_v46 = vld [vmem:[#allocation24_spill] sm:$0xff]  ;;  %v8952_v33 = vld [vmem:[#allocation23_spill] sm:$0xff] }
 0x15d   : > { %v8237_v3 = vcombine.low %v3882_v25, %v3892_v29  ;;  %v3906_v21 = vsel %vm7032_vm3, %v3901_v23, %v8135_v50  ;;  %v3916_v8 = vsel %vm7032_vm3, %v3911_v31, %v3915_v22  ;;  %v3924_v39 = vor.u32 %v8200_v52, %v8198_v63  ;;  %v5594_v50 = vld [vmem:[%s6994_s4 + $0x60] sm:$0xe]  ;;  %v8954_v25 = vld [vmem:[#allocation25_spill] sm:$0xff]  ;;  %v8344_v47 = vld [vmem:[%s6994_s4 + $0xbc] sm:$0x1] }
 0x15e   : > { %v3937_v16 = vshll.u32 %v8222_v26, 16  ;;  %v3942_v4 = vshrl.u32 %v5547_v24, 16  ;;  %v3945_v36 = vshll.u32 %v5547_v24, 16  ;;  %v3951_v0 = vshll.u32 %v8232_v45, 16  ;;  %v8953_v23 = vld [vmem:[#allocation22_spill] sm:$0xff]  ;;  %v8955_v52 = vld [vmem:[#allocation27_spill] sm:$0xff] }
 0x15f   : > { %v5608_v20 = vrot.slane %v5592_v62, 9  ;;  %v4401_v11 = vrot.slane %v7851_v27, 5  ;;  %v4404_v57 = vrot.slane %v8947_v40, 5  ;;  %v8252_v5 = vcombine.low %v3906_v21, %v3916_v8  ;;  %v5550_v22 = vld [vmem:[%s6994_s4 + $0xc0] sm:$0xf] }
 0x160   : > { %v3934_v55 = vor.u32 %v3933_v49, %v8229_v51  ;;  %v5609_v37 = vrot.slane %v5593_v9, 9  ;;  %v4408_v15 = vrot.slane %v8948_v59, 5  ;;  %v8951_v12 = vcombine.low %v8949_v46, %v8950_v13  ;;  %v8956_v21 = vld [vmem:[#allocation30_spill] sm:$0xff]  ;;  %v6558_v9 = vld [vmem:[%s6994_s4 + $0xc] sm:$0xff]  }
 0x161   : > { %v3955_v27 = vshrl.u32 %v8232_v45, 16  ;;  %v8265_v44 = vsel %vm7252_vm7, %v5608_v20, %v4401_v11  ;;  %v4403_v1 = vrot.slane %v4401_v11, 4  ;;  %v4411_v53 = vrot.slane %v8952_v33, 5  ;;  %v5597_v33 = vld [vmem:[%s6994_s4 + $0x84] sm:$0xe] }
 0x162   : > { %v8272_v43 = vsel %vm7252_vm7, %v5609_v37, %v4408_v15  ;;  %v4410_v41 = vrot.slane %v4408_v15, 4  ;;  %v5610_v18 = vrot.slane %v5594_v50, 9  ;;  %v4415_v31 = vrot.slane %v8953_v23, 5  ;;  %v5596_v50 = vld [vmem:[%s6994_s4 + $0x78] sm:$0xe]  ;;  %v8958_v23 = vld [vmem:[#allocation15_spill] sm:$0xff] }
 0x163   : > { %5971 = vmatmul.mubr.msk.bf16.gmra.mrb[24].mxu1 %vm704_vm4, %v8951_v12  ;;  %6125 = vmatmul.mubr.msk.bf16.gmra.mrb[8].mxu0 %vm704_vm4, %v5561_v32  ;;  %v8278_v28 = vsel %vm7252_vm7, %v4403_v1, %v4404_v57  ;;  %v4418_v29 = vrot.slane %v8954_v25, 5  ;;  %v5611_v63 = vrot.slane %v5595_v56, 9  ;;  %v4422_v10 = vrot.slane %v8955_v52, 5  ;;  %v8957_v1 = vld [vmem:[#allocation28_spill] sm:$0xff] }
 0x164   : > { %5974 = vmatprep.mubr.msk.bf16.mxu1 %vm704_vm4, %v5218_v14  ;;  %6128 = vmatprep.mubr.msk.bf16.mxu0 %vm704_vm4, %v5562_v61  ;;  %v5624_v60 = vcombine.low %v8265_v44, %v8278_v28  ;;  %v8286_v32 = vsel %vm7252_vm7, %v4410_v41, %v4411_v53  ;;  %v8290_v14 = vsel %vm7252_vm7, %v5610_v18, %v4415_v31  ;;  %v4417_v54 = vrot.slane %v4415_v31, 4  ;;  %v8293_v61 = vld [vmem:[%s6994_s4 + $0xc4] sm:$0xf]  ;;  %v8959_v31 = vld [vmem:[#allocation14_spill] sm:$0xff] }
 0x165   : > { %v5625_v24 = vcombine.low %v8272_v43, %v8286_v32  ;;  %v8299_v49 = vsel %vm7252_vm7, %v5611_v63, %v4422_v10  ;;  %v4424_v62 = vrot.slane %v4422_v10, 4  ;;  %v4425_v8 = vrot.slane %v8956_v21, 5  ;;  %v6559_v63 = vld [vmem:[%s6994_s4 + $0x18] sm:$0xff]  }
 0x166   : > { %v8303_v20 = vrot.slane %v3937_v16, 5  ;;  %v8305_v11 = vrot.slane %v3942_v4, 4  ;;  %v3966_v40 = vshrl.u32 %v5550_v22, 16  ;;  %v8309_v57 = vsel %vm7252_vm7, %v4417_v54, %v4418_v29  ;;  %v5327_v4 = vld [vmem:[%s6994_s4 + $0x78] sm:$0xf] }
 0x167   : > { %v8312_v37 = vrot.slane %v3924_v39, 4  ;;  %v8314_v59 = vrot.slane %v3945_v36, 5  ;;  %v5626_v15 = vcombine.low %v8290_v14, %v8309_v57  ;;  %v8320_v16 = vsel %vm7252_vm7, %v4424_v62, %v4425_v8  ;;  %v8960_v54 = vld [vmem:[#allocation29_spill] sm:$0xff]  ;;  %v6560_v8 = vld [vmem:[%s6994_s4 + $0x24] sm:$0xff]  }
 0x168   : > { %v8323_v56 = vrot.slane %v3934_v55, 4  ;;  %v8325_v46 = vrot.slane %v3951_v0, 5  ;;  %v3969_v13 = vshll.u32 %v5550_v22, 16  ;;  %v5627_v39 = vcombine.low %v8299_v49, %v8320_v16  ;;  %v5339_v57 = vld [vmem:[%s6994_s4 + $0xa8] sm:$0xf] }
 0x169   : > { %v8335_v36 = vrot.slane %v3955_v27, 4  ;;  %v3975_v12 = vshll.u32 %v8293_v61, 16  ;;  %v5612_v55 = vrot.slane %v5596_v50, 9  ;;  %v4429_v0 = vrot.slane %v8957_v1, 5  ;;  %v5553_v50 = vld [vmem:[%s6994_s4 + $0xcc] sm:$0xf] }
 0x16a   : > { %v3968_v35 = vrot.slane %v3966_v40, 4  ;;  %v2294_v27 = vshll.u32 %v5327_v4, 16  ;;  %v3979_v53 = vshrl.u32 %v8293_v61, 16  ;;  %v3971_v22 = vrot.slane %v3969_v13, 5 }
 0x16b   : > { %5975 = vmatmul.mubr.msk.bf16.gmra.mrb[28].mxu1 %vm704_vm4, %v5219_v7  ;;  %6129 = vmatmul.mubr.msk.bf16.gmra.mrb[12].mxu0 %vm704_vm4, %v8225_v17  ;;  %v4432_v7 = vrot.slane %v8107_v58, 5  ;;  %v2291_v17 = vshrl.u32 %v5327_v4, 16  ;;  %v8350_v41 = vsel %vm7252_vm7, %v5612_v55, %v4429_v0  ;;  %v4431_v18 = vrot.slane %v4429_v0, 4  ;;  %v8373_v4 = vld [vmem:[%s6994_s4 + $0xd0] sm:$0xf] }
 0x16c   : > { %5980 = vmatprep.mubr.msk.bf16.mxu1 %vm704_vm4, %v6558_v9  ;;  %6132 = vmatprep.mubr.msk.bf16.mxu0 %vm704_vm4, %v8227_v38  ;;  %v2313_v38 = vsel %vm7032_vm3, %v8959_v31, %v8958_v23  ;;  %v2296_v58 = vrot.slane %v2294_v27, 5  ;;  %v5613_v29 = vrot.slane %v5597_v33, 9  ;;  %v3961_v52 = vshll.u32 %v8344_v47, 16 }
 0x16d   : > { %v2293_v25 = vrot.slane %v2291_v17, 4  ;;  %v8360_v10 = vsel %vm7252_vm7, %v4431_v18, %v4432_v7  ;;  %v4436_v62 = vrot.slane %v8960_v54, 5  ;;  %v4439_v21 = vrot.slane %v8112_v19, 5  ;;  %v5598_v7 = vld [vmem:[%s6994_s4 + $0x90] sm:$0xe] }
 0x16e   : > { %v3930_v9 = vsel %vm7032_vm3, %v8312_v37, %v8229_v51  ;;  %v3948_v40 = vor.u32 %v8314_v59, %v8305_v11  ;;  %v5628_v13 = vcombine.low %v8350_v41, %v8360_v10  ;;  %v8377_v1 = vrot.slane %v3975_v12, 5  ;;  %v8391_v37 = vld [vmem:[%s6994_s4 + $0xc8] sm:$0x1] }
 0x16f   : > { %v2297_v55 = vor.u32 %v2296_v58, %v2293_v25  ;;  %v3981_v0 = vrot.slane %v3979_v53, 4  ;;  %v8381_v19 = vsel %vm7252_vm7, %v5613_v29, %v4436_v62  ;;  %v4438_v33 = vrot.slane %v4436_v62, 4  ;;  %v6561_v29 = vld [vmem:[%s6994_s4 + $0x30] sm:$0xff]   ;;  %v8963_v62 = vld [vmem:[#allocation31_spill] sm:$0xff] }
 0x170   : > { %v3940_v51 = vsel %vm7032_vm3, %v8323_v56, %v8303_v20  ;;  %v3958_v11 = vor.u32 %v8335_v36, %v8325_v46  ;;  %v3972_v59 = vor.u32 %v3971_v22, %v3968_v35  ;;  %v3990_v17 = vshrl.u32 %v5553_v50, 16  ;;  %v8961_v56 = vld [vmem:[#allocation12_spill] sm:$0xff]  ;;  %v8962_v35 = vld [vmem:[#allocation13_spill] sm:$0xff] }
 0x171   : > { %v2298_v12 = vrot.slane %v2297_v55, 4  ;;  %v3993_v27 = vshll.u32 %v5553_v50, 16  ;;  %v3999_v53 = vshll.u32 %v8373_v4, 16  ;;  %v8399_v20 = vsel %vm7252_vm7, %v4438_v33, %v4439_v21 }
 0x172   : > { %v4003_v36 = vshrl.u32 %v8373_v4, 16  ;;  %v5614_v23 = vrot.slane %v5598_v7, 9  ;;  %v3963_v31 = vrot.slane %v3961_v52, 5  ;;  %v3982_v22 = vor.u32 %v3981_v0, %v8377_v1  ;;  %v8421_v52 = vld [vmem:[%s6994_s4 + $0xd4] sm:$0x1] }
 0x173   : > { %5981 = vmatmul.mubr.msk.bf16.vlgmr.msra.gmra.mrb[0].mxu1 %vm704_vm4, %v6559_v63  ;;  %6133 = vmatmul.mubr.msk.bf16.gmra.mrb[16].mxu0 %vm704_vm4, %v8235_v48  ;;  %v2303_v18 = vsel %vm7032_vm3, %v2298_v12, %v8962_v35  ;;  %v5629_v48 = vcombine.low %v8381_v19, %v8399_v20  ;;  %v3985_v25 = vshll.u32 %v8391_v37, 16  ;;  %v5568_v63 = vcombine.low %v3930_v9, %v3940_v51  ;;  %v6562_v12 = vld [vmem:[%s6994_s4 + $0x3c] sm:$0xff]   ;;  %v6626_v19 = vld [vmem:[%s6994_s4 + $0xc4] sm:$0xf] }
 0x174   : > { %6183 = vmatpush3.bf16.msra.mxu1 %v8961_v56  ;;  %5984 = vmatprep.mubr.msk.bf16.mxu1 %vm704_vm4, %v6560_v8  ;;  %v8413_v58 = vcombine.low %v2303_v18, %v2313_v38  ;;  %v3949_v54 = vrot.slane %v3948_v40, 4  ;;  %v4443_v21 = vrot.slane %v8963_v62, 5  ;;  %v4446_v8 = vrot.slane %v8117_v34, 5  ;;  %v5600_v62 = vld [vmem:[%s6994_s4 + $0xa8] sm:$0xe] }
 0x175   : > { %6136 = vmatprep.mubr.msk.bf16.mxu0 %vm704_vm4, %v8237_v3  ;;  %v3959_v50 = vrot.slane %v3958_v11, 4  ;;  %v3973_v55 = vrot.slane %v3972_v59, 4  ;;  %v3992_v33 = vrot.slane %v3990_v17, 4  ;;  %v3995_v7 = vrot.slane %v3993_v27, 5  ;;  %v5599_v3 = vld [vmem:[%s6994_s4 + $0x9c] sm:$0xe] }
 0x176   : > { %v8423_v0 = vrot.slane %v3999_v53, 5  ;;  %v4005_v56 = vrot.slane %v4003_v36, 4  ;;  %v8427_v38 = vsel %vm7252_vm7, %v5614_v23, %v4443_v21  ;;  %v4445_v9 = vrot.slane %v4443_v21, 4  ;;  %v8964_v53 = vld [vmem:[#allocation32_spill] sm:$0xff]  ;;  %v5588_v23 = vld [vmem:[%s6994_s4 + $0x18] sm:$0xe] }
 0x177   : > { %v3983_v40 = vrot.slane %v3982_v22, 4  ;;  %v3987_v51 = vrot.slane %v3985_v25, 5  ;;  %v3954_v34 = vsel %vm7032_vm3, %v3949_v54, %v8325_v46  ;;  %v5615_v59 = vrot.slane %v5599_v3, 9  ;;  %v6611_v25 = vld [vmem:[%s6994_s4 + $0x1c] sm:$0xf] }
 0x178   : > { %v8434_v11 = vsel %vm7252_vm7, %v4445_v9, %v4446_v8  ;;  %v3964_v17 = vsel %vm7032_vm3, %v3959_v50, %v3963_v31  ;;  %v4009_v27 = vshll.u32 %v8421_v52, 16  ;;  %v4450_v36 = vrot.slane %v8964_v53, 5  ;;  %v6612_v9 = vld [vmem:[%s6994_s4 + $0x20] sm:$0x1] }
 0x179   : > { %v5630_v46 = vcombine.low %v8427_v38, %v8434_v11  ;;  %v3996_v35 = vor.u32 %v3995_v7, %v3992_v33  ;;  %v4006_v18 = vor.u32 %v4005_v56, %v8423_v0  ;;  %v4453_v31 = vrot.slane %v8150_v42, 5 }
 0x17a   : > { %v3988_v22 = vsel %vm7032_vm3, %v3983_v40, %v3987_v51  ;;  %v4452_v54 = vrot.slane %v4450_v36, 4  ;;  %v5569_v21 = vcombine.low %v3954_v34, %v3964_v17  ;;  %v4011_v8 = vrot.slane %v4009_v27, 5  ;;  %v5589_v17 = vld [vmem:[%s6994_s4 + $0x24] sm:$0xe] }
 0x17b   : > { %5985 = vmatmul.mubr.msk.bf16.gmra.mrb[4].mxu1 %vm704_vm4, %v6561_v29  ;;  %6137 = vmatmul.mubr.msk.bf16.gmra.mrb[20].mxu0 %vm704_vm4, %v8252_v5  ;;  %v3978_v5 = vsel %vm7032_vm3, %v3973_v55, %v8377_v1  ;;  %v4373_v29 = vrot.slane %v6611_v25, 5  ;;  %v6563_v1 = vld [vmem:[%s6994_s4 + $0x48] sm:$0xff]   ;;  %v5604_v50 = vrot.slane %v5588_v23, 9  ;;  %v6564_v55 = vld [vmem:[%s6994_s4 + $0x54] sm:$0xff]   ;;  %v3997_v7 = vrot.slane %v3996_v35, 4 }
 0x17c   : > { %5988 = vmatprep.mubr.msk.bf16.mxu1 %vm704_vm4, %v6562_v12  ;;  %6140 = vmatprep.mubr.msk.bf16.mxu0 %vm704_vm4, %v5568_v63  ;;  %v8458_v63 = vsel %vm7252_vm7, %v5615_v59, %v4450_v36  ;;  %v8464_v42 = vsel %vm7252_vm7, %v4452_v54, %v4453_v31  ;;  %v5570_v33 = vcombine.low %v3978_v5, %v3988_v22  ;;  %v4007_v3 = vrot.slane %v4006_v18, 4  ;;  %v6613_v36 = vld [vmem:[%s6994_s4 + $0x28] sm:$0xf]  ;;  %v5601_v35 = vld [vmem:[%s6994_s4 + $0xb4] sm:$0xe] }
 0x17d   : > { %v5631_v12 = vcombine.low %v8458_v63, %v8464_v42  ;;  %v4375_v56 = vrot.slane %v4373_v29, 4  ;;  %v4376_v40 = vrot.slane %v6612_v9, 5  ;;  %v5616_v51 = vrot.slane %v5600_v62, 9  ;;  %v5590_v31 = vld [vmem:[%s6994_s4 + $0x30] sm:$0xe] }
 0x17e   : > { %v4457_v34 = vrot.slane %v8158_v2, 5  ;;  %v4460_v59 = vrot.slane %v8222_v26, 5  ;;  %v4002_v2 = vsel %vm7032_vm3, %v3997_v7, %v8423_v0  ;;  %v4012_v26 = vsel %vm7032_vm3, %v4007_v3, %v4011_v8  ;;  %v6614_v22 = vld [vmem:[%s6994_s4 + $0x34] sm:$0xf]  ;;  %v8965_v8 = vld [vmem:[#allocation16_spill] sm:$0xff] }
 0x17f   : > { %v4380_v5 = vrot.slane %v6613_v36, 5  ;;  %v4374_v18 = vsel %vm7252_vm7, %v5604_v50, %v4373_v29  ;;  %v4377_v23 = vsel %vm7252_vm7, %v4375_v56, %v4376_v40  ;;  %v4387_v25 = vrot.slane %v6614_v22, 5 }
 0x180   : > { %v8477_v27 = vsel %vm7252_vm7, %v5616_v51, %v4457_v34  ;;  %v4459_v53 = vrot.slane %v4457_v34, 4  ;;  %v5605_v0 = vrot.slane %v5589_v17, 9  ;;  %v5617_v29 = vrot.slane %v5601_v35, 9  ;;  %v8966_v51 = vld [vmem:[#allocation17_spill] sm:$0xff]  ;;  %v5591_v35 = vld [vmem:[%s6994_s4 + $0x3c] sm:$0xe] }
 0x181   : > { %v4464_v50 = vrot.slane %v8232_v45, 5  ;;  %v5620_v7 = vcombine.low %v4374_v18, %v4377_v23  ;;  %v4382_v3 = vrot.slane %v4380_v5, 4  ;;  %v5606_v56 = vrot.slane %v5590_v31, 9  ;;  %v8967_v45 = vld [vmem:[#allocation18_spill] sm:$0xff] }
 0x182   : > { %v8496_v54 = vsel %vm7252_vm7, %v4459_v53, %v4460_v59  ;;  %v4467_v9 = vrot.slane %v8344_v47, 5  ;;  %v4389_v40 = vrot.slane %v4387_v25, 4  ;;  %v4390_v34 = vrot.slane %v8966_v51, 5  ;;  %v5602_v53 = vld [vmem:[%s6994_s4 + $0xc0] sm:$0xe] }
 0x183   : > { %5989 = vmatmul.mubr.msk.bf16.gmra.mrb[8].mxu1 %vm704_vm4, %v6563_v1  ;;  %6141 = vmatmul.mubr.msk.bf16.gmra.mrb[24].mxu0 %vm704_vm4, %v5569_v21  ;;  %v5632_v62 = vcombine.low %v8477_v27, %v8496_v54  ;;  %v6565_v1 = vld [vmem:[%s6994_s4 + $0x60] sm:$0xff]   ;;  %v5571_v21 = vcombine.low %v4002_v2, %v4012_v26  ;;  %v8508_v59 = vsel %vm7252_vm7, %v5617_v29, %v4464_v50  ;;  %v4466_v17 = vrot.slane %v4464_v50, 4  ;;  %v5603_v50 = vld [vmem:[%s6994_s4 + $0xcc] sm:$0xe] }
 0x184   : > { %5992 = vmatprep.mubr.msk.bf16.mxu1 %vm704_vm4, %v6564_v55  ;;  %6144 = vmatprep.mubr.msk.bf16.mxu0 %vm704_vm4, %v5570_v33  ;;  %v4383_v55 = vrot.slane %v8965_v8, 5  ;;  %v6566_v33 = vld [vmem:[%s6994_s4 + $0x6c] sm:$0xff]   ;;  %v4394_v2 = vrot.slane %v8967_v45, 5  ;;  %v4381_v26 = vsel %vm7252_vm7, %v5605_v0, %v4380_v5  ;;  %v4388_v23 = vsel %vm7252_vm7, %v5606_v56, %v4387_v25  ;;  %v6567_v5 = vld [vmem:[%s6994_s4 + $0x78] sm:$0xff]  }
 0x185   : > { %v8516_v47 = vsel %vm7252_vm7, %v4466_v17, %v4467_v9  ;;  %v4391_v31 = vsel %vm7252_vm7, %v4389_v40, %v4390_v34  ;;  %v5618_v22 = vrot.slane %v5602_v53, 9  ;;  %v4474_v8 = vrot.slane %v8391_v37, 5  ;;  %v6615_v34 = vld [vmem:[%s6994_s4 + $0x70] sm:$0xf] }
 0x186   : > { %v4384_v36 = vsel %vm7252_vm7, %v4382_v3, %v4383_v55  ;;  %v5633_v18 = vcombine.low %v8508_v59, %v8516_v47  ;;  %v5607_v55 = vrot.slane %v5591_v35, 9  ;;  %v4396_v29 = vrot.slane %v4394_v2, 4  ;;  %v8968_v3 = vld [vmem:[#allocation19_spill] sm:$0xff] }
 0x187   : > { %v5621_v0 = vcombine.low %v4381_v26, %v4384_v36  ;;  %v4397_v9 = vrot.slane %v8968_v3, 5  ;;  %v5619_v37 = vrot.slane %v5603_v50, 9  ;;  %v2276_v17 = vshll.u32 %v6615_v34, 16 }
 0x188   : > { %v2280_v53 = vshrl.u32 %v6615_v34, 16  ;;  %v4478_v26 = vrot.slane %v8373_v4, 5  ;;  %v4395_v36 = vsel %vm7252_vm7, %v5607_v55, %v4394_v2  ;;  %v6570_v55 = vld [vmem:[%s6994_s4 + $0x9c] sm:$0xff]   ;;  %v5333_v34 = vld [vmem:[%s6994_s4 + $0x90] sm:$0xf]  ;;  %v2444_v20 = vshll.u32 %v6626_v19, 16 }
 0x189   : > { %v4398_v35 = vsel %vm7252_vm7, %v4396_v29, %v4397_v9  ;;  %v5330_v29 = vld [vmem:[%s6994_s4 + $0x84] sm:$0xf]  ;;  %v2339_v28 = vshrl.u32 %v5333_v34, 16 }
 0x18a   : > { %v4480_v4 = vrot.slane %v4478_v26, 4  ;;  %v2315_v6 = vshrl.u32 %v5330_v29, 16  ;;  %v2318_v9 = vshll.u32 %v5330_v29, 16  ;;  %v2446_v38 = vrot.slane %v2444_v20, 5 }
 0x18b   : > { %5993 = vmatmul.mubr.msk.bf16.gmra.mrb[12].mxu1 %vm704_vm4, %v6565_v1  ;;  %6145 = vmatmul.mubr.msk.bf16.gmra.mrb[28].mxu0 %vm704_vm4, %v5571_v21  ;;  %v5324_v1 = vld [vmem:[%s6994_s4 + $0x6c] sm:$0xf]  ;;  %v4471_v21 = vrot.slane %v8293_v61, 5 }
 0x18c   : > { %5996 = vmatprep.mubr.msk.bf16.mxu1 %vm704_vm4, %v6566_v33  ;;  %6150 = vmatprep.mubr.msk.bf16.mxu0 %vm704_vm4, %v5620_v7  ;;  %v6568_v33 = vld [vmem:[%s6994_s4 + $0x84] sm:$0xff]   ;;  %v5622_v7 = vcombine.low %v4388_v23, %v4391_v31  ;;  %v2267_v40 = vshrl.u32 %v5324_v1, 16  ;;  %v2270_v51 = vshll.u32 %v5324_v1, 16  ;;  %v4481_v23 = vrot.slane %v8421_v52, 5 }
 0x18d   : > { %v8540_v25 = vsel %vm7252_vm7, %v5618_v22, %v4471_v21  ;;  %v4473_v56 = vrot.slane %v4471_v21, 4  ;;  %v8561_v1 = vsel %vm7252_vm7, %v5619_v37, %v4478_v26  ;;  %v6569_v21 = vld [vmem:[%s6994_s4 + $0x90] sm:$0xff]  }
 0x18e   : > { %v2269_v31 = vrot.slane %v2267_v40, 4  ;;  %v2272_v22 = vrot.slane %v2270_v51, 5  ;;  %v8566_v2 = vsel %vm7252_vm7, %v4480_v4, %v4481_v23  ;;  %v5336_v23 = vld [vmem:[%s6994_s4 + $0x9c] sm:$0xf] }
 0x18f   : > { %v8544_v61 = vsel %vm7252_vm7, %v4473_v56, %v4474_v8  ;;  %v5623_v8 = vcombine.low %v4395_v36, %v4398_v35  ;;  %v5635_v52 = vcombine.low %v8561_v1, %v8566_v2  ;;  %v6617_v56 = vld [vmem:[%s6994_s4 + $0x88] sm:$0xf]  ;;  %v2317_v36 = vrot.slane %v2315_v6, 4 }
 0x190   : > { %v5634_v45 = vcombine.low %v8540_v25, %v8544_v61  ;;  %v2273_v50 = vor.u32 %v2272_v22, %v2269_v31  ;;  %v2324_v40 = vshll.u32 %v6617_v56, 16  ;;  %v2328_v51 = vshrl.u32 %v6617_v56, 16  ;;  %v6572_v31 = vld [vmem:[%s6994_s4 + $0xb4] sm:$0xff]  }
 0x191   : > { %v2320_v35 = vrot.slane %v2318_v9, 5  ;;  %v2366_v29 = vshll.u32 %v5336_v23, 16 }
 0x192   : > { %v2274_v37 = vrot.slane %v2273_v50, 4  ;;  %v8585_v22 = vrot.slane %v2324_v40, 5  ;;  %v2330_v44 = vrot.slane %v2328_v51, 4 }
 0x193   : > { %5997 = vmatmul.mubr.msk.bf16.gmra.mrb[16].mxu1 %vm704_vm4, %v6567_v5  ;;  %6151 = vmatmul.mubr.msk.bf16.vlgmr.msra.gmra.mrb[0].mxu0 %vm704_vm4, %v5621_v0  ;;  %v2278_v5 = vrot.slane %v2276_v17, 5  ;;  %v2282_v0 = vrot.slane %v2280_v53, 4  ;;  %v6571_v17 = vld [vmem:[%s6994_s4 + $0xa8] sm:$0xff]   ;;  %v2321_v43 = vor.u32 %v2320_v35, %v2317_v36 }
 0x194   : > { %6000 = vmatprep.mubr.msk.bf16.mxu1 %vm704_vm4, %v6568_v33  ;;  %6154 = vmatprep.mubr.msk.bf16.mxu0 %vm704_vm4, %v5622_v7  ;;  %v6616_v7 = vld [vmem:[%s6994_s4 + $0x74] sm:$0x1]  ;;  %v2331_v32 = vor.u32 %v2330_v44, %v8585_v22 }
 0x195   : > { %v2283_v33 = vor.u32 %v2282_v0, %v2278_v5  ;;  %v2286_v3 = vshll.u32 %v6616_v7, 16  ;;  %v2279_v4 = vsel %vm7032_vm3, %v2274_v37, %v2278_v5  ;;  %v2368_v37 = vrot.slane %v2366_v29, 5  ;;  %v6623_v29 = vld [vmem:[%s6994_s4 + $0xac] sm:$0xf] }
 0x196   : > { %v2332_v36 = vrot.slane %v2331_v32, 4 }
 0x197   : > { %v2284_v53 = vrot.slane %v2283_v33, 4  ;;  %v2288_v26 = vrot.slane %v2286_v3, 5  ;;  %v6619_v33 = vld [vmem:[%s6994_s4 + $0x8c] sm:$0x1]  ;;  %v6620_v3 = vld [vmem:[%s6994_s4 + $0xa0] sm:$0xf] }
 0x198   : > { %v2334_v7 = vshll.u32 %v6619_v33, 16  ;;  %v2372_v5 = vshll.u32 %v6620_v3, 16  ;;  %v2376_v6 = vshrl.u32 %v6620_v3, 16  ;;  %v2400_v33 = vshrl.u32 %v6623_v29, 16 }
 0x199   : > { %v2289_v50 = vsel %vm7032_vm3, %v2284_v53, %v2288_v26 }
 0x19a   : > { %v2336_v53 = vrot.slane %v2334_v7, 5  ;;  %v8608_v26 = vrot.slane %v2372_v5, 5  ;;  %v2378_v14 = vrot.slane %v2376_v6, 4  ;;  %v6624_v6 = vld [vmem:[%s6994_s4 + $0xb8] sm:$0xf] }
 0x19b   : > { %6001 = vmatmul.mubr.msk.bf16.gmra.mrb[20].mxu1 %vm704_vm4, %v6569_v21  ;;  %6155 = vmatmul.mubr.msk.bf16.gmra.mrb[4].mxu0 %vm704_vm4, %v5623_v8  ;;  %v6618_v21 = vld [vmem:[%s6994_s4 + $0x94] sm:$0xf]  ;;  %v2424_v32 = vshrl.u32 %v6624_v6, 16 }
 0x19c   : > { %6004 = vmatprep.mubr.msk.bf16.mxu1 %vm704_vm4, %v6570_v55  ;;  %6158 = vmatprep.mubr.msk.bf16.mxu0 %vm704_vm4, %v5624_v60  ;;  %v2342_v60 = vshll.u32 %v5333_v34, 16  ;;  %v2348_v8 = vshll.u32 %v6618_v21, 16  ;;  %v2352_v0 = vshrl.u32 %v6618_v21, 16  ;;  %v2363_v55 = vshrl.u32 %v5336_v23, 16  ;;  %v6573_v34 = vld [vmem:[%s6994_s4 + $0xc0] sm:$0xff]  }
 0x19d   : > { %v6621_v23 = vld [vmem:[%s6994_s4 + $0x98] sm:$0x1]  ;;  %v2337_v49 = vsel %vm7032_vm3, %v2332_v36, %v2336_v53 }
 0x19e   : > { %v2344_v9 = vrot.slane %v2342_v60, 5  ;;  %v8605_v56 = vrot.slane %v2348_v8, 5  ;;  %v2354_v40 = vrot.slane %v2352_v0, 4  ;;  %v2365_v51 = vrot.slane %v2363_v55, 4  ;;  %v6622_v60 = vld [vmem:[%s6994_s4 + $0xa4] sm:$0x1] }
 0x19f   : > { %v2382_v21 = vshll.u32 %v6622_v60, 16  ;;  %v2387_v8 = vshrl.u32 %v5339_v57, 16  ;;  %v5342_v0 = vld [vmem:[%s6994_s4 + $0xb4] sm:$0xf]  ;;  %v2390_v55 = vshll.u32 %v5339_v57, 16  ;;  %v2448_v60 = vshrl.u32 %v6626_v19, 16 }
 0x1a0   : > { %v2355_v44 = vor.u32 %v2354_v40, %v8605_v56  ;;  %v2411_v3 = vshrl.u32 %v5342_v0, 16  ;;  %v2414_v5 = vshll.u32 %v5342_v0, 16  ;;  %v5345_v57 = vld [vmem:[%s6994_s4 + $0xc0] sm:$0xf] }
 0x1a1   : > { %v2384_v41 = vrot.slane %v2382_v21, 5  ;;  %v2389_v10 = vrot.slane %v2387_v8, 4  ;;  %v2392_v40 = vrot.slane %v2390_v55, 5  ;;  %v6627_v8 = vld [vmem:[%s6994_s4 + $0xbc] sm:$0x1]  ;;  %v2450_v11 = vrot.slane %v2448_v60, 4 }
 0x1a2   : > { %v2430_v0 = vshll.u32 %v6627_v8, 16 }
 0x1a3   : > { %6005 = vmatmul.mubr.msk.bf16.gmra.mrb[24].mxu1 %vm704_vm4, %v6571_v17  ;;  %6159 = vmatmul.mubr.msk.bf16.gmra.mrb[8].mxu0 %vm704_vm4, %v5625_v24  ;;  %v2341_v24 = vrot.slane %v2339_v28, 4  ;;  %v5356_v17 = vcombine.low %v2279_v4, %v2289_v50  ;;  %v2369_v28 = vor.u32 %v2368_v37, %v2365_v51  ;;  %v2379_v4 = vor.u32 %v2378_v14, %v8608_v26 }
 0x1a4   : > { %6008 = vmatprep.mubr.msk.bf16.mxu1 %vm704_vm4, %v6572_v31  ;;  %6162 = vmatprep.mubr.msk.bf16.mxu0 %vm704_vm4, %v5626_v15  ;;  %v2322_v15 = vrot.slane %v2321_v43, 4  ;;  %v2358_v31 = vshll.u32 %v6621_v23, 16  ;;  %v2396_v50 = vshll.u32 %v6623_v29, 16  ;;  %v2420_v43 = vshll.u32 %v6624_v6, 16 }
 0x1a5   : > { %v2345_v35 = vor.u32 %v2344_v9, %v2341_v24  ;;  %v2356_v24 = vrot.slane %v2355_v44, 4  ;;  %v2370_v9 = vrot.slane %v2369_v28, 4  ;;  %v2426_v14 = vrot.slane %v2424_v32, 4  ;;  %v6625_v44 = vld [vmem:[%s6994_s4 + $0xb0] sm:$0x1] }
 0x1a6   : > { %v2327_v7 = vsel %vm7032_vm3, %v2322_v15, %v8585_v22  ;;  %v2398_v51 = vrot.slane %v2396_v50, 5  ;;  %v2402_v22 = vrot.slane %v2400_v33, 4  ;;  %v2422_v53 = vrot.slane %v2420_v43, 5  ;;  %v6628_v32 = vld [vmem:[%s6994_s4 + $0xc8] sm:$0x1] }
 0x1a7   : > { %v2346_v16 = vrot.slane %v2345_v35, 4  ;;  %v5358_v37 = vcombine.low %v2327_v7, %v2337_v49  ;;  %v2375_v35 = vsel %vm7032_vm3, %v2370_v9, %v8608_v26  ;;  %v2406_v28 = vshll.u32 %v6625_v44, 16 }
 0x1a8   : > { %v2438_v26 = vshll.u32 %v5345_v57, 16  ;;  %v2427_v21 = vor.u32 %v2426_v14, %v2422_v53  ;;  %v2451_v43 = vor.u32 %v2450_v11, %v2446_v38 }
 0x1a9   : > { %v2351_v15 = vsel %vm7032_vm3, %v2346_v16, %v8605_v56  ;;  %v2393_v56 = vor.u32 %v2392_v40, %v2389_v10  ;;  %v2408_v33 = vrot.slane %v2406_v28, 5 }
 0x1aa   : > { %v2440_v49 = vrot.slane %v2438_v26, 5  ;;  %v2428_v16 = vrot.slane %v2427_v21, 4  ;;  %v2452_v10 = vrot.slane %v2451_v43, 4 }
 0x1ab   : > { %6009 = vmatmul.mubr.msk.bf16.gmra.mrb[28].mxu1 %vm704_vm4, %v6573_v34  ;;  %6163 = vmatmul.mubr.msk.bf16.gmra.mrb[12].mxu0 %vm704_vm4, %v5627_v39  ;;  %v2360_v39 = vrot.slane %v2358_v31, 5  ;;  %v2413_v34 = vrot.slane %v2411_v3, 4  ;;  %v2403_v31 = vor.u32 %v2402_v22, %v2398_v51  ;;  %v2394_v29 = vrot.slane %v2393_v56, 4 }
 0x1ac   : > { %6030 = vmatprep.mubr.msk.bf16.mxu1 %vm704_vm4, %v5356_v17  ;;  %6166 = vmatprep.mubr.msk.bf16.mxu0 %vm704_vm4, %v5628_v13  ;;  %v2380_v13 = vrot.slane %v2379_v4, 4  ;;  %v2416_v17 = vrot.slane %v2414_v5, 5 }
 0x1ad   : > { %v2361_v36 = vsel %vm7032_vm3, %v2356_v24, %v2360_v39  ;;  %v2404_v50 = vrot.slane %v2403_v31, 4  ;;  %v2432_v39 = vrot.slane %v2430_v0, 5  ;;  %v2399_v3 = vsel %vm7032_vm3, %v2394_v29, %v2398_v51 }
 0x1ae   : > { %v2385_v23 = vsel %vm7032_vm3, %v2380_v13, %v2384_v41  ;;  %v5359_v4 = vcombine.low %v2351_v15, %v2361_v36  ;;  %v2454_v24 = vshll.u32 %v6628_v32, 16 }
 0x1af   : > { %v5360_v55 = vcombine.low %v2375_v35, %v2385_v23  ;;  %v2409_v5 = vsel %vm7032_vm3, %v2404_v50, %v2408_v33  ;;  %v2433_v42 = vsel %vm7032_vm3, %v2428_v16, %v2432_v39 }
 0x1b0   : > { %v2456_v27 = vrot.slane %v2454_v24, 5 }
 0x1b3   : > { %6031 = vmatmul.mubr.msk.bf16.vlgmr.msra.gmra.mrb[16].mxu1 %vm704_vm4, %v8413_v58  ;;  %6167 = vmatmul.mubr.msk.bf16.gmra.mrb[16].mxu0 %vm704_vm4, %v5629_v48  ;;  %v2435_v58 = vshrl.u32 %v5345_v57, 16  ;;  %v2417_v48 = vor.u32 %v2416_v17, %v2413_v34 }
 0x1b4   : > { %6034 = vmatprep.mubr.msk.bf16.mxu1 %vm704_vm4, %v5358_v37  ;;  %6170 = vmatprep.mubr.msk.bf16.mxu0 %vm704_vm4, %v5630_v46 }
 0x1b5   : > { %v2437_v7 = vrot.slane %v2435_v58, 4  ;;  %v2418_v46 = vrot.slane %v2417_v48, 4 }
 0x1b7   : > { %v2441_v6 = vor.u32 %v2440_v49, %v2437_v7  ;;  %v2423_v63 = vsel %vm7032_vm3, %v2418_v46, %v2422_v53  ;;  %v8708_v53 = vld [vmem:[#allocation7] ss:$0 sm:$0xff] }
 0x1b8   : > { %v5362_v9 = vcombine.low %v2423_v63, %v2433_v42 }
 0x1b9   : > { %v2442_v41 = vrot.slane %v2441_v6, 4 }
 0x1bb   : > { %6035 = vmatmul.mubr.msk.bf16.gmra.mrb[20].mxu1 %vm704_vm4, %v5359_v4  ;;  %6171 = vmatmul.mubr.msk.bf16.gmra.mrb[20].mxu0 %vm704_vm4, %v5631_v12  ;;  %v5361_v12 = vcombine.low %v2399_v3, %v2409_v5  ;;  %v2447_v54 = vsel %vm7032_vm3, %v2442_v41, %v2446_v38 }
 0x1bc   : > { %6038 = vmatprep.mubr.msk.bf16.mxu1 %vm704_vm4, %v5360_v55  ;;  %6174 = vmatprep.mubr.msk.bf16.mxu0 %vm704_vm4, %v5632_v62  ;;  %v2457_v62 = vsel %vm7032_vm3, %v2452_v10, %v2456_v27 }
 0x1bd   : > { %v5363_v13 = vcombine.low %v2447_v54, %v2457_v62 }
 0x1c3   : > { %6039 = vmatmul.mubr.msk.bf16.gmra.mrb[24].mxu1 %vm704_vm4, %v5361_v12  ;;  %6175 = vmatmul.mubr.msk.bf16.gmra.mrb[24].mxu0 %vm704_vm4, %v5633_v18 }
 0x1c4   : > { %6042 = vmatprep.mubr.msk.bf16.mxu1 %vm704_vm4, %v5362_v9  ;;  %6178 = vmatprep.mubr.msk.bf16.mxu0 %vm704_vm4, %v5634_v45 }
 0x1cb   : > { %6043 = vmatmul.mubr.msk.bf16.gmra.mrb[28].mxu1 %vm704_vm4, %v5363_v13  ;;  %6179 = vmatmul.mubr.msk.bf16.gmra.mrb[28].mxu0 %vm704_vm4, %v5635_v52 }
 0x246   : > { %v5982_v59 = vpop.f32.mrb[0].mxu1 }
 0x247   : > { %v1867_v47 = vpop.f32.mrb[1].mxu1 }
 0x248   : > { %v5983_v18 = vpop.f32.mrb[2].mxu1 }
 0x249   : > { %v1870_v25 = vpop.f32.mrb[3].mxu1 }
 0x24e   : > { %v5986_v61 = vpop.f32.mrb[4].mxu1 }
 0x24f   : > { %v1883_v45 = vpop.f32.mrb[5].mxu1 }
 0x250   : > { %v5987_v40 = vpop.f32.mrb[6].mxu1 }
 0x251   : > { %v1886_v51 = vpop.f32.mrb[7].mxu1 }
 0x256   : > { %v5990_v22 = vpop.f32.mrb[8].mxu1 }
 0x257   : > { %v1899_v30 = vpop.f32.mrb[9].mxu1 }
 0x258   : > { %v8696_v37 = vpop.f32.mrb[10].mxu1 }
 0x259   : > { %v8698_v34 = vpop.f32.mrb[11].mxu1 }
 0x25e   : > { %v8700_v17 = vpop.f32.mrb[12].mxu1 }
 0x25f   : > { %v8702_v1 = vpop.f32.mrb[13].mxu1 }
 0x260   : > { %v8704_v2 = vpop.f32.mrb[14].mxu1 }
 0x261   : > { %v8706_v52 = vpop.f32.mrb[15].mxu1 }
 0x266   : > { %v6152_v14 = vpop.f32.mrb[0].mxu0 }
 0x267   : > { %v6184_v57 = vadd.f32 %v6152_v14, %v5982_v59  ;;  %v4618_v15 = vpop.f32.mrb[1].mxu0 }
 0x268   : > { %v6185_v36 = vadd.f32 %v4618_v15, %v1867_v47  ;;  %v6153_v35 = vpop.f32.mrb[2].mxu0 }
 0x269   : > { %v4785_v23 = vadd.f32 %v6184_v57, %v8708_v53  ;;  %v6186_v56 = vadd.f32 %v6153_v35, %v5983_v18  ;;  %v4621_v31 = vpop.f32.mrb[3].mxu0 }
 0x26a   : > { %v4783_v44 = vadd.f32 %v6185_v36, %v8708_v53  ;;  %v6187_v28 = vadd.f32 %v4621_v31, %v1870_v25 }
 0x26b   : > { %v4817_v58 = vmax.f32 %v4785_v23, 0.0  ;;  %v4786_v26 = vadd.f32 %v6186_v56, %v8708_v53 }
 0x26c   : > { %v4815_v19 = vmax.f32 %v4783_v44, 0.0  ;;  %v4784_v20 = vadd.f32 %v6187_v28, %v8708_v53 }
 0x26d   : > { %v5692_v60 = vpack.c.bf16 %v4817_v58, %v4817_v58  ;;  %v4818_v48 = vmax.f32 %v4786_v26, 0.0 }
 0x26e   : > { %v5690_v21 = vpack.c.bf16 %v4815_v19, %v4815_v19  ;;  %v4816_v8 = vmax.f32 %v4784_v20, 0.0  ;;  %v6156_v0 = vpop.f32.mrb[4].mxu0 }
 0x26f   : > { %4978 = vst.msk [vmem:[%s8715_s20 + $0x8] sm:$0xf] %vm4975_vm8, %v5692_v60  ;;  %v5693_v4 = vpack.c.bf16 %v4818_v48, %v4818_v48  ;;  %v6188_v55 = vadd.f32 %v6156_v0, %v5986_v61  ;;  %v4634_v29 = vpop.f32.mrb[5].mxu0 }
 0x270   : > { %4976 = vst.msk [vmem:[%s8715_s20] sm:$0xf] %vm4975_vm8, %v5690_v21  ;;  %v5691_v50 = vpack.c.bf16 %v4816_v8, %v4816_v8  ;;  %v6189_v33 = vadd.f32 %v4634_v29, %v1883_v45  ;;  %v6157_v7 = vpop.f32.mrb[6].mxu0 }
 0x271   : > { %4979 = vst.msk [vmem:[%s8715_s20 + $0xc] sm:$0xf] %vm4975_vm8, %v5693_v4  ;;  %v4789_v49 = vadd.f32 %v6188_v55, %v8708_v53  ;;  %v6190_v38 = vadd.f32 %v6157_v7, %v5987_v40  ;;  %v4637_v11 = vpop.f32.mrb[7].mxu0 }
 0x272   : > { %4977 = vst.msk [vmem:[%s8715_s20 + $0x4] sm:$0xf] %vm4975_vm8, %v5691_v50  ;;  %v4787_v46 = vadd.f32 %v6189_v33, %v8708_v53  ;;  %v6191_v16 = vadd.f32 %v4637_v11, %v1886_v51 }
 0x273   : > { %v4821_v39 = vmax.f32 %v4789_v49, 0.0  ;;  %v4790_v3 = vadd.f32 %v6190_v38, %v8708_v53 }
 0x274   : > { %v4819_v5 = vmax.f32 %v4787_v46, 0.0  ;;  %v4788_v6 = vadd.f32 %v6191_v16, %v8708_v53 }
 0x275   : > { %v5696_v43 = vpack.c.bf16 %v4821_v39, %v4821_v39  ;;  %v4822_v32 = vmax.f32 %v4790_v3, 0.0 }
 0x276   : > { %v5694_v24 = vpack.c.bf16 %v4819_v5, %v4819_v5  ;;  %v4820_v63 = vmax.f32 %v4788_v6, 0.0  ;;  %v6160_v42 = vpop.f32.mrb[8].mxu0 }
 0x277   : > { %4982 = vst.msk [vmem:[%s8715_s20 + $0x18] sm:$0xf] %vm4975_vm8, %v5696_v43  ;;  %v5697_v12 = vpack.c.bf16 %v4822_v32, %v4822_v32  ;;  %v6192_v9 = vadd.f32 %v6160_v42, %v5990_v22  ;;  %v4650_v41 = vpop.f32.mrb[9].mxu0 }
 0x278   : > { %4980 = vst.msk [vmem:[%s8715_s20 + $0x10] sm:$0xf] %vm4975_vm8, %v5694_v24  ;;  %v5695_v10 = vpack.c.bf16 %v4820_v63, %v4820_v63  ;;  %v6193_v27 = vadd.f32 %v4650_v41, %v1899_v30  ;;  %v6161_v54 = vpop.f32.mrb[10].mxu0 }
 0x279   : > { %4983 = vst.msk [vmem:[%s8715_s20 + $0x1c] sm:$0xf] %vm4975_vm8, %v5697_v12  ;;  %v4793_v62 = vadd.f32 %v6192_v9, %v8708_v53  ;;  %v6194_v13 = vadd.f32 %v6161_v54, %v8696_v37  ;;  %v4653_v59 = vpop.f32.mrb[11].mxu0 }
 0x27a   : > { %4981 = vst.msk [vmem:[%s8715_s20 + $0x14] sm:$0xf] %vm4975_vm8, %v5695_v10  ;;  %v4791_v47 = vadd.f32 %v6193_v27, %v8708_v53  ;;  %v6195_v18 = vadd.f32 %v4653_v59, %v8698_v34 }
 0x27b   : > { %v4825_v25 = vmax.f32 %v4793_v62, 0.0  ;;  %v4794_v61 = vadd.f32 %v6194_v13, %v8708_v53 }
 0x27c   : > { %v4823_v45 = vmax.f32 %v4791_v47, 0.0  ;;  %v4792_v40 = vadd.f32 %v6195_v18, %v8708_v53 }
 0x27d   : > { %v5700_v51 = vpack.c.bf16 %v4825_v25, %v4825_v25  ;;  %v4826_v22 = vmax.f32 %v4794_v61, 0.0 }
 0x27e   : > { %v5698_v30 = vpack.c.bf16 %v4823_v45, %v4823_v45  ;;  %v4824_v37 = vmax.f32 %v4792_v40, 0.0  ;;  %v6164_v14 = vpop.f32.mrb[12].mxu0 }
 0x27f   : > { %4986 = vst.msk [vmem:[%s8715_s20 + $0x28] sm:$0xf] %vm4975_vm8, %v5700_v51  ;;  %v5701_v57 = vpack.c.bf16 %v4826_v22, %v4826_v22  ;;  %v6196_v15 = vadd.f32 %v6164_v14, %v8700_v17  ;;  %v4666_v36 = vpop.f32.mrb[13].mxu0 }
 0x280   : > { %4984 = vst.msk [vmem:[%s8715_s20 + $0x20] sm:$0xf] %vm4975_vm8, %v5698_v30  ;;  %v5699_v34 = vpack.c.bf16 %v4824_v37, %v4824_v37  ;;  %v6197_v35 = vadd.f32 %v4666_v36, %v8702_v1  ;;  %v6165_v23 = vpop.f32.mrb[14].mxu0 }
 0x281   : > { %4987 = vst.msk [vmem:[%s8715_s20 + $0x2c] sm:$0xf] %vm4975_vm8, %v5701_v57  ;;  %v4797_v56 = vadd.f32 %v6196_v15, %v8708_v53  ;;  %v6198_v31 = vadd.f32 %v6165_v23, %v8704_v2  ;;  %v4669_v44 = vpop.f32.mrb[15].mxu0 }
 0x282   : > { %4985 = vst.msk [vmem:[%s8715_s20 + $0x24] sm:$0xf] %vm4975_vm8, %v5699_v34  ;;  %v4795_v28 = vadd.f32 %v6197_v35, %v8708_v53  ;;  %v6199_v17 = vadd.f32 %v4669_v44, %v8706_v52 }
 0x283   : > { %v4829_v58 = vmax.f32 %v4797_v56, 0.0  ;;  %v4798_v26 = vadd.f32 %v6198_v31, %v8708_v53 }
 0x284   : > { %v4827_v1 = vmax.f32 %v4795_v28, 0.0  ;;  %v4796_v19 = vadd.f32 %v6199_v17, %v8708_v53 }
 0x285   : > { %v5704_v20 = vpack.c.bf16 %v4829_v58, %v4829_v58  ;;  %v4830_v60 = vmax.f32 %v4798_v26, 0.0 }
 0x286   : > { %v5702_v48 = vpack.c.bf16 %v4827_v1, %v4827_v1  ;;  %v4828_v21 = vmax.f32 %v4796_v19, 0.0  ;;  %v6032_v2 = vpop.f32.mrb[16].mxu1  ;;  %v6168_v8 = vpop.f32.mrb[16].mxu0 }
 0x287   : > { %4990 = vst.msk [vmem:[%s8715_s20 + $0x38] sm:$0xf] %vm4975_vm8, %v5704_v20  ;;  %v5705_v0 = vpack.c.bf16 %v4830_v60, %v4830_v60  ;;  %v6200_v4 = vadd.f32 %v6168_v8, %v6032_v2  ;;  %v2657_v52 = vpop.f32.mrb[17].mxu1  ;;  %v4682_v55 = vpop.f32.mrb[17].mxu0 }
 0x288   : > { %4988 = vst.msk [vmem:[%s8715_s20 + $0x30] sm:$0xf] %vm4975_vm8, %v5702_v48  ;;  %v5703_v29 = vpack.c.bf16 %v4828_v21, %v4828_v21  ;;  %v6201_v50 = vadd.f32 %v4682_v55, %v2657_v52  ;;  %v6033_v33 = vpop.f32.mrb[18].mxu1  ;;  %v6169_v7 = vpop.f32.mrb[18].mxu0 }
 0x289   : > { %4991 = vst.msk [vmem:[%s8715_s20 + $0x3c] sm:$0xf] %vm4975_vm8, %v5705_v0  ;;  %v4801_v49 = vadd.f32 %v6200_v4, %v8708_v53  ;;  %v6202_v38 = vadd.f32 %v6169_v7, %v6033_v33  ;;  %v2660_v11 = vpop.f32.mrb[19].mxu1  ;;  %v4685_v46 = vpop.f32.mrb[19].mxu0 }
 0x28a   : > { %4989 = vst.msk [vmem:[%s8715_s20 + $0x34] sm:$0xf] %vm4975_vm8, %v5703_v29  ;;  %v4799_v16 = vadd.f32 %v6201_v50, %v8708_v53  ;;  %v6203_v39 = vadd.f32 %v4685_v46, %v2660_v11 }
 0x28b   : > { %v4833_v3 = vmax.f32 %v4801_v49, 0.0  ;;  %v4802_v5 = vadd.f32 %v6202_v38, %v8708_v53 }
 0x28c   : > { %v4831_v6 = vmax.f32 %v4799_v16, 0.0  ;;  %v4800_v43 = vadd.f32 %v6203_v39, %v8708_v53 }
 0x28d   : > { %v5708_v32 = vpack.c.bf16 %v4833_v3, %v4833_v3  ;;  %v4834_v24 = vmax.f32 %v4802_v5, 0.0 }
 0x28e   : > { %v5706_v63 = vpack.c.bf16 %v4831_v6, %v4831_v6  ;;  %v4832_v42 = vmax.f32 %v4800_v43, 0.0  ;;  %v6036_v12 = vpop.f32.mrb[20].mxu1  ;;  %v6172_v9 = vpop.f32.mrb[20].mxu0 }
 0x28f   : > { %4994 = vst.msk [vmem:[%s8715_s20 + $0x48] sm:$0xf] %vm4975_vm8, %v5708_v32  ;;  %v5709_v41 = vpack.c.bf16 %v4834_v24, %v4834_v24  ;;  %v6204_v10 = vadd.f32 %v6172_v9, %v6036_v12  ;;  %v2673_v27 = vpop.f32.mrb[21].mxu1  ;;  %v4698_v54 = vpop.f32.mrb[21].mxu0 }
 0x290   : > { %4992 = vst.msk [vmem:[%s8715_s20 + $0x40] sm:$0xf] %vm4975_vm8, %v5706_v63  ;;  %v5707_v62 = vpack.c.bf16 %v4832_v42, %v4832_v42  ;;  %v6205_v13 = vadd.f32 %v4698_v54, %v2673_v27  ;;  %v6037_v59 = vpop.f32.mrb[22].mxu1  ;;  %v6173_v47 = vpop.f32.mrb[22].mxu0 }
 0x291   : > { %4995 = vst.msk [vmem:[%s8715_s20 + $0x4c] sm:$0xf] %vm4975_vm8, %v5709_v41  ;;  %v4805_v18 = vadd.f32 %v6204_v10, %v8708_v53  ;;  %v6206_v25 = vadd.f32 %v6173_v47, %v6037_v59  ;;  %v2676_v61 = vpop.f32.mrb[23].mxu1  ;;  %v4701_v45 = vpop.f32.mrb[23].mxu0 }
 0x292   : > { %4993 = vst.msk [vmem:[%s8715_s20 + $0x44] sm:$0xf] %vm4975_vm8, %v5707_v62  ;;  %v4803_v40 = vadd.f32 %v6205_v13, %v8708_v53  ;;  %v6207_v51 = vadd.f32 %v4701_v45, %v2676_v61 }
 0x293   : > { %v4837_v22 = vmax.f32 %v4805_v18, 0.0  ;;  %v4806_v30 = vadd.f32 %v6206_v25, %v8708_v53 }
 0x294   : > { %v4835_v37 = vmax.f32 %v4803_v40, 0.0  ;;  %v4804_v14 = vadd.f32 %v6207_v51, %v8708_v53 }
 0x295   : > { %v5712_v57 = vpack.c.bf16 %v4837_v22, %v4837_v22  ;;  %v4838_v15 = vmax.f32 %v4806_v30, 0.0 }
 0x296   : > { %v5710_v36 = vpack.c.bf16 %v4835_v37, %v4835_v37  ;;  %v4836_v34 = vmax.f32 %v4804_v14, 0.0  ;;  %v6040_v35 = vpop.f32.mrb[24].mxu1  ;;  %v6176_v23 = vpop.f32.mrb[24].mxu0 }
 0x297   : > { %4998 = vst.msk [vmem:[%s8715_s20 + $0x58] sm:$0xf] %vm4975_vm8, %v5712_v57  ;;  %v5713_v56 = vpack.c.bf16 %v4838_v15, %v4838_v15  ;;  %v6208_v31 = vadd.f32 %v6176_v23, %v6040_v35  ;;  %v2689_v44 = vpop.f32.mrb[25].mxu1  ;;  %v4714_v28 = vpop.f32.mrb[25].mxu0 }
 0x298   : > { %4996 = vst.msk [vmem:[%s8715_s20 + $0x50] sm:$0xf] %vm4975_vm8, %v5710_v36  ;;  %v5711_v17 = vpack.c.bf16 %v4836_v34, %v4836_v34  ;;  %v6209_v58 = vadd.f32 %v4714_v28, %v2689_v44  ;;  %v6041_v26 = vpop.f32.mrb[26].mxu1  ;;  %v6177_v1 = vpop.f32.mrb[26].mxu0 }
 0x299   : > { %4999 = vst.msk [vmem:[%s8715_s20 + $0x5c] sm:$0xf] %vm4975_vm8, %v5713_v56  ;;  %v4809_v19 = vadd.f32 %v6208_v31, %v8708_v53  ;;  %v6210_v20 = vadd.f32 %v6177_v1, %v6041_v26  ;;  %v2692_v60 = vpop.f32.mrb[27].mxu1  ;;  %v4717_v48 = vpop.f32.mrb[27].mxu0 }
 0x29a   : > { %4997 = vst.msk [vmem:[%s8715_s20 + $0x54] sm:$0xf] %vm4975_vm8, %v5711_v17  ;;  %v4807_v21 = vadd.f32 %v6209_v58, %v8708_v53  ;;  %v6211_v2 = vadd.f32 %v4717_v48, %v2692_v60 }
 0x29b   : > { %v4841_v8 = vmax.f32 %v4809_v19, 0.0  ;;  %v4810_v0 = vadd.f32 %v6210_v20, %v8708_v53 }
 0x29c   : > { %v4839_v4 = vmax.f32 %v4807_v21, 0.0  ;;  %v4808_v52 = vadd.f32 %v6211_v2, %v8708_v53 }
 0x29d   : > { %v5716_v55 = vpack.c.bf16 %v4841_v8, %v4841_v8  ;;  %v4842_v29 = vmax.f32 %v4810_v0, 0.0 }
 0x29e   : > { %v5714_v50 = vpack.c.bf16 %v4839_v4, %v4839_v4  ;;  %v4840_v33 = vmax.f32 %v4808_v52, 0.0  ;;  %v6044_v7 = vpop.f32.mrb[28].mxu1  ;;  %v6180_v49 = vpop.f32.mrb[28].mxu0 }
 0x29f   : > { %5002 = vst.msk [vmem:[%s8715_s20 + $0x68] sm:$0xf] %vm4975_vm8, %v5716_v55  ;;  %v5717_v38 = vpack.c.bf16 %v4842_v29, %v4842_v29  ;;  %v6212_v11 = vadd.f32 %v6180_v49, %v6044_v7  ;;  %v2705_v46 = vpop.f32.mrb[29].mxu1  ;;  %v4730_v16 = vpop.f32.mrb[29].mxu0 }
 0x2a0   : > { %5000 = vst.msk [vmem:[%s8715_s20 + $0x60] sm:$0xf] %vm4975_vm8, %v5714_v50  ;;  %v5715_v39 = vpack.c.bf16 %v4840_v33, %v4840_v33  ;;  %v6213_v3 = vadd.f32 %v4730_v16, %v2705_v46  ;;  %v6045_v5 = vpop.f32.mrb[30].mxu1  ;;  %v6181_v6 = vpop.f32.mrb[30].mxu0 }
 0x2a1   : > { %5003 = vst.msk [vmem:[%s8715_s20 + $0x6c] sm:$0xf] %vm4975_vm8, %v5717_v38  ;;  %v4813_v43 = vadd.f32 %v6212_v11, %v8708_v53  ;;  %v6214_v32 = vadd.f32 %v6181_v6, %v6045_v5  ;;  %v2708_v24 = vpop.f32.mrb[31].mxu1  ;;  %v4733_v63 = vpop.f32.mrb[31].mxu0 }
 0x2a2   : > { %5001 = vst.msk [vmem:[%s8715_s20 + $0x64] sm:$0xf] %vm4975_vm8, %v5715_v39  ;;  %v4811_v42 = vadd.f32 %v6213_v3, %v8708_v53  ;;  %v6215_v12 = vadd.f32 %v4733_v63, %v2708_v24 }
 0x2a3   : > { %v4845_v9 = vmax.f32 %v4813_v43, 0.0  ;;  %v4814_v41 = vadd.f32 %v6214_v32, %v8708_v53 }
 0x2a4   : > { %v4843_v10 = vmax.f32 %v4811_v42, 0.0  ;;  %v4812_v27 = vadd.f32 %v6215_v12, %v8708_v53 }
 0x2a5   : > { %v5720_v54 = vpack.c.bf16 %v4845_v9, %v4845_v9  ;;  %v4846_v62 = vmax.f32 %v4814_v41, 0.0 }
 0x2a6   : > { %v5718_v13 = vpack.c.bf16 %v4843_v10, %v4843_v10  ;;  %v4844_v59 = vmax.f32 %v4812_v27, 0.0 }
 0x2a7   : > { %5006 = vst.msk [vmem:[%s8715_s20 + $0x78] sm:$0xf] %vm4975_vm8, %v5720_v54  ;;  %v5721_v47 = vpack.c.bf16 %v4846_v62, %v4846_v62 }
 0x2a8   : > { %5004 = vst.msk [vmem:[%s8715_s20 + $0x70] sm:$0xf] %vm4975_vm8, %v5718_v13  ;;  %v5719_v53 = vpack.c.bf16 %v4844_v59, %v4844_v59 }
 0x2a9   : > { %5007 = vst.msk [vmem:[%s8715_s20 + $0x7c] sm:$0xf] %vm4975_vm8, %v5721_v47 }
 0x2aa   : > { %5005 = vst.msk [vmem:[%s8715_s20 + $0x74] sm:$0xf] %vm4975_vm8, %v5719_v53 }
 0x2ab   : > { %6728 = shalt.err (!%p6725_p2)
}
 0x2ac   : > { %s6729_s17 = scalar_lea.hbm %s8814_s23, 2048  ;;  %s6733_s29 = scalar_lea.hbm %s8869_s3, 4096 }
 0x2ad   : > { %p6730_p13 = scmp.ne.s32.totalorder %s8814_s23, %s6729_s17  ;;  %p6734_p4 = scmp.lt.u32.totalorder %s8814_s23, %s8869_s3 }
 0x2ae   : > { %p6735_p5 = scmp.lt.u32.totalorder %s6733_s29, %s6729_s17  ;;  %p6737_p11 = scmp.lt.u32.totalorder %s6729_s17, %s8814_s23 }
 0x2af   : > { %p6731_p6 = pnand %p6730_p13, %p8969_p0 }
 0x2b0   : > { %p6736_p8 = por %p6735_p5, %p6734_p4 }
 0x2b1   : > { %p6732_p10 = pneg %p6731_p6 }
 0x2b2   : > { %p6738_p1 = por %p6737_p11, %p6736_p8 }
 0x2b4   : > { %p6739_p3 = pnand %p6738_p1, %p6732_p10 }
 0x2b6   : > { %6742 = shalt.err (!%p6739_p3)
}
 0x2b7   : > { %s6795_s18 = smov 64   ;;  %s6796_s20 = smov 4  }
 0x2b8   : > { %6463 = dma.vmem_to_hbm [thread:$0]  (%p8969_p0), %s8816_s24, 2048, %s8814_s23, %s5009_s16, %s6795_s18, %s6795_s18, %s6796_s20  }
 0x2b9 PF: > { %s5037_s11 = sand.u32 1, %s6773_s12   ;;  %p8970_p7 = scmp.ne.s32.totalorder %s8893_s19, 0 }
 0x2ba   : > { %p8971_p9 = scmp.ge.s32.totalorder %s6785_s15, 2  ;;  %s5038_s27 = scalar_lea.sflag [#allocation4], %s5037_s11 }
 0x2bc   : > { %p6477_p12 = pnand %p8971_p9, %p8970_p7 }
 0x2be   : > { %6768 = dma.done.wait (!%p6477_p12), %s5038_s27, 2048  }
 0x2bf   : > { %6770 = vsyncadd (!%p6477_p12), %s5038_s27, 4294965248  ;;  %p17_p2 = scmp.ge.s32.totalorder %s6928_s5, 4   ;;  %s8972_s12 = smov %s6777_s13 }
 0x2c0   : > { %s8973_s13 = smov %s6781_s14  ;;  %s8974_s14 = smov %s6944_s8 }
 0x2c1   : > { %s8975_s15 = smov %s6928_s5  ;;  %19 = sbr.rel (!%p17_p2) target bundleno = 6 (0x6), region = 95 }
 0x2c8   :  { %5043 = vsyncpa [#allocation3], 1 }
 0x2c9   :  { %5045 = vsyncpa [#allocation3 + $0x1], 1 }
 0x2ca   :  { %5046 = vsyncpa [#allocation6], 1 }
 0x2cb   :  { %5047 = vsyncpa [#allocation4], 1 }
 0x2cc   :  { %5049 = vsyncpa [#allocation4 + $0x1], 1 }

</bundles_post_ra>
